<compile_context>
chip_gen: v7x
topology: tpu7x:2x2x1
jax: 0.10.0
libtpu: 0.0.40
codegen_flags: <defaults>
</compile_context>

<pallas_src>
import jax
import jax.numpy as jnp
from jax.experimental import pallas as pl
from jax.experimental.pallas import tpu as pltpu

D_IN, D_H1, D_H2, D_H3 = 48, 96, 192, 384
D_OUT = 1
D_WO_PAD = 128   # zero-padded final-layer width (MXU lane alignment only)


def _mlp_kernel(x_ref, w1_ref, b1_ref, w2_ref, b2_ref, w3_ref, b3_ref,
                wo_ref, bo_ref, o_ref):
    # x arrives as f32 (half the wrapper-side traffic of a separate cast pass);
    # cast to bf16 on the VPU right before the first MXU op.
    x = x_ref[...].astype(jnp.bfloat16)
    # fc1 + relu (f32 accumulate, f32 epilogue)
    h = jnp.dot(x, w1_ref[...], preferred_element_type=jnp.float32)
    h = jnp.maximum(h + b1_ref[...], 0.0)
    # fc2 + relu
    h = jnp.dot(h.astype(jnp.bfloat16), w2_ref[...],
                preferred_element_type=jnp.float32)
    h = jnp.maximum(h + b2_ref[...], 0.0)
    # fc3 + relu
    h = jnp.dot(h.astype(jnp.bfloat16), w3_ref[...],
                preferred_element_type=jnp.float32)
    h = jnp.maximum(h + b3_ref[...], 0.0)
    # out: lane-padded weight for the MXU, then select the single real column.
    logits = jnp.dot(h.astype(jnp.bfloat16), wo_ref[...],
                     preferred_element_type=jnp.float32)
    logit = logits[:, :D_OUT] + bo_ref[...]                  # (tile_b, 1)
    # sigmoid via EUP exp + EUP approximate reciprocal (no VPU divide).
    o_ref[...] = pl.reciprocal(1.0 + jnp.exp(-logit), approx=True)


def prepare_params(params):
    """One-time (hoisted) dtype casts and final-layer lane padding."""
    wo_pad = (jnp.zeros((D_H3, D_WO_PAD), jnp.float32)
              .at[:, :D_OUT].set(params["wo"])).astype(jnp.bfloat16)
    return {
        "w1": params["w1"].astype(jnp.bfloat16),
        "w2": params["w2"].astype(jnp.bfloat16),
        "w3": params["w3"].astype(jnp.bfloat16),
        "wo": wo_pad,
        "b1": params["b1"], "b2": params["b2"], "b3": params["b3"],
        "bo": params["bo"],                       # (1, 1) f32
    }


def mlp_forward(x, prep, *, tile_b=512):
    """x: (B, 48) float32; prep: output of prepare_params().

    tile_b: multiple of 128 (v5e) / 256 (v6e, v7x); 512-1024 amortizes the
    per-grid-step overhead.  Returns (B, 1) float32 sigmoid outputs.
    """
    B = x.shape[0]
    B_pad = ((B + tile_b - 1) // tile_b) * tile_b
    if B_pad != B:
        x = jnp.pad(x, ((0, B_pad - B), (0, 0)))

    w1, w2, w3, wo = prep["w1"], prep["w2"], prep["w3"], prep["wo"]
    b1, b2, b3, bo = prep["b1"], prep["b2"], prep["b3"], prep["bo"]

    def rep(shape):
        # Small weight/bias tensors: whole tensor replicated to every batch tile.
        return pl.BlockSpec(shape, lambda i: (0, 0))

    flops = 2 * B_pad * (D_IN * D_H1 + D_H1 * D_H2 + D_H2 * D_H3
                         + D_H3 * D_WO_PAD)
    bytes_accessed = (B_pad * D_IN * 4                       # x (f32 in)
                      + (w1.size + w2.size + w3.size + wo.size) * 2
                      + (b1.size + b2.size + b3.size + bo.size) * 4
                      + B_pad * D_OUT * 4)                   # output (f32, 1 col)

    out = pl.pallas_call(
        _mlp_kernel,
        out_shape=jax.ShapeDtypeStruct((B_pad, D_OUT), jnp.float32),
        grid_spec=pltpu.PrefetchScalarGridSpec(
            num_scalar_prefetch=0,
            grid=(B_pad // tile_b,),
            in_specs=[
                pl.BlockSpec((tile_b, D_IN), lambda i: (i, 0)),   # x tile (f32)
                rep((D_IN, D_H1)), rep((1, D_H1)),                # fc1
                rep((D_H1, D_H2)), rep((1, D_H2)),                # fc2
                rep((D_H2, D_H3)), rep((1, D_H3)),                # fc3
                rep((D_H3, D_WO_PAD)), rep((1, D_OUT)),           # out
            ],
            out_specs=pl.BlockSpec((tile_b, D_OUT), lambda i: (i, 0)),
        ),
        compiler_params=pltpu.CompilerParams(
            dimension_semantics=("parallel",),
            vmem_limit_bytes=16 * 1024 * 1024),
        cost_estimate=pl.CostEstimate(
            flops=int(flops),
            transcendentals=int(2 * B_pad * D_OUT),   # exp + reciprocal
            bytes_accessed=int(bytes_accessed)),
    )(x, w1, b1, w2, b2, w3, b3, wo, bo)
    return out[:B]


def init_params(key):
    """Deterministic init mimicking PyTorch nn.Linear default:
    U(-1/sqrt(fan_in), 1/sqrt(fan_in)) for both weight and bias."""
    dims = [(D_IN, D_H1), (D_H1, D_H2), (D_H2, D_H3), (D_H3, D_OUT)]
    names = [("w1", "b1"), ("w2", "b2"), ("w3", "b3"), ("wo", "bo")]
    params = {}
    for (din, dout), (wn, bn) in zip(dims, names):
        key, kw, kb = jax.random.split(key, 3)
        bound = 1.0 / jnp.sqrt(jnp.float32(din))
        params[wn] = jax.random.uniform(kw, (din, dout), jnp.float32,
                                        -bound, bound)
        params[bn] = jax.random.uniform(kb, (1, dout), jnp.float32,
                                        -bound, bound)
    return params


def _reference(x, params):
    h = jnp.maximum(x @ params["w1"] + params["b1"], 0.0)
    h = jnp.maximum(h @ params["w2"] + params["b2"], 0.0)
    h = jnp.maximum(h @ params["w3"] + params["b3"], 0.0)
    return jax.nn.sigmoid(h @ params["wo"] + params["bo"])


if __name__ == "__main__":
    key = jax.random.PRNGKey(0)
    k_x, k_p = jax.random.split(key)
    B = 1024                      # 2 grid steps at tile_b=512 (feeds both v7x TCs)
    x = jax.random.normal(k_x, (B, D_IN), jnp.float32)
    params = init_params(k_p)
    prep = prepare_params(params)   # one-time casts / padding, out of hot path

    y = mlp_forward(x, prep, tile_b=512)
    y = jax.block_until_ready(y)

    y_ref = _reference(x, params)
    assert y.shape == (B, D_OUT)
    # bf16 matmul inputs + approx reciprocal -> loosened tolerance vs f32 reference.
    assert jnp.allclose(y, y_ref, atol=2e-2, rtol=2e-2), "mismatch vs reference"
    print("KERNEL_OK")
</pallas_src>

<mosaic_0001>
module attributes {stable_mosaic.version = 11 : i64} {
  func.func @_mlp_kernel(%arg0: i32, %arg1: memref<512x48xf32, #tpu.memory_space<vmem>>, %arg2: memref<48x96xbf16, #tpu.memory_space<vmem>>, %arg3: memref<1x96xf32, #tpu.memory_space<vmem>>, %arg4: memref<96x192xbf16, #tpu.memory_space<vmem>>, %arg5: memref<1x192xf32, #tpu.memory_space<vmem>>, %arg6: memref<192x384xbf16, #tpu.memory_space<vmem>>, %arg7: memref<1x384xf32, #tpu.memory_space<vmem>>, %arg8: memref<384x128xbf16, #tpu.memory_space<vmem>>, %arg9: memref<1x1xf32, #tpu.memory_space<vmem>>, %arg10: memref<512x1xf32, #tpu.memory_space<vmem>>) attributes {dimension_semantics = [#tpu.dimension_semantics<parallel>], iteration_bounds = array<i64: 2>, scalar_prefetch = 0 : i64, scratch_operands = 0 : i64, tpu.core_type = #tpu.core_type<tc>, window_params = [{transform_indices = @transform_0, window_bounds = array<i64: 512, 48>}, {pipeline_mode = #tpu.pipeline_mode<synchronous>, transform_indices = @transform_1, window_bounds = array<i64: 48, 96>}, {pipeline_mode = #tpu.pipeline_mode<synchronous>, transform_indices = @transform_2, window_bounds = array<i64: 1, 96>}, {pipeline_mode = #tpu.pipeline_mode<synchronous>, transform_indices = @transform_3, window_bounds = array<i64: 96, 192>}, {pipeline_mode = #tpu.pipeline_mode<synchronous>, transform_indices = @transform_4, window_bounds = array<i64: 1, 192>}, {pipeline_mode = #tpu.pipeline_mode<synchronous>, transform_indices = @transform_5, window_bounds = array<i64: 192, 384>}, {pipeline_mode = #tpu.pipeline_mode<synchronous>, transform_indices = @transform_6, window_bounds = array<i64: 1, 384>}, {pipeline_mode = #tpu.pipeline_mode<synchronous>, transform_indices = @transform_7, window_bounds = array<i64: 384, 128>}, {pipeline_mode = #tpu.pipeline_mode<synchronous>, transform_indices = @transform_8, window_bounds = array<i64: 1, 1>}, {transform_indices = @transform_9, window_bounds = array<i64: 512, 1>}]} {
    %c0 = arith.constant 0 : index
    %c0_0 = arith.constant 0 : index
    %0 = vector.load %arg1[%c0, %c0_0] : memref<512x48xf32, #tpu.memory_space<vmem>>, vector<512x48xf32>
    %1 = arith.truncf %0 : vector<512x48xf32> to vector<512x48xbf16>
    %c0_1 = arith.constant 0 : index
    %c0_2 = arith.constant 0 : index
    %2 = vector.load %arg2[%c0_1, %c0_2] : memref<48x96xbf16, #tpu.memory_space<vmem>>, vector<48x96xbf16>
    %cst = arith.constant dense<0.000000e+00> : vector<512x96xf32>
    %3 = tpu.matmul %1, %2, %cst {dimension_numbers = #tpu.dot_dimension_numbers<[1], [0], [0], [1], [0, 0, 1, 1], [], []>} : vector<512x48xbf16>, vector<48x96xbf16>, vector<512x96xf32> -> vector<512x96xf32>
    %c0_3 = arith.constant 0 : index
    %c0_4 = arith.constant 0 : index
    %4 = vector.load %arg3[%c0_3, %c0_4] : memref<1x96xf32, #tpu.memory_space<vmem>>, vector<1x96xf32>
    %5 = vector.broadcast %4 : vector<1x96xf32> to vector<512x96xf32>
    %6 = arith.addf %3, %5 : vector<512x96xf32>
    %cst_5 = arith.constant 0.000000e+00 : f32
    %7 = vector.broadcast %cst_5 : f32 to vector<512x96xf32>
    %8 = arith.maximumf %6, %7 : vector<512x96xf32>
    %9 = arith.truncf %8 : vector<512x96xf32> to vector<512x96xbf16>
    %c0_6 = arith.constant 0 : index
    %c0_7 = arith.constant 0 : index
    %10 = vector.load %arg4[%c0_6, %c0_7] : memref<96x192xbf16, #tpu.memory_space<vmem>>, vector<96x192xbf16>
    %cst_8 = arith.constant dense<0.000000e+00> : vector<512x192xf32>
    %11 = tpu.matmul %9, %10, %cst_8 {dimension_numbers = #tpu.dot_dimension_numbers<[1], [0], [0], [1], [0, 0, 1, 1], [], []>} : vector<512x96xbf16>, vector<96x192xbf16>, vector<512x192xf32> -> vector<512x192xf32>
    %c0_9 = arith.constant 0 : index
    %c0_10 = arith.constant 0 : index
    %12 = vector.load %arg5[%c0_9, %c0_10] : memref<1x192xf32, #tpu.memory_space<vmem>>, vector<1x192xf32>
    %13 = vector.broadcast %12 : vector<1x192xf32> to vector<512x192xf32>
    %14 = arith.addf %11, %13 : vector<512x192xf32>
    %cst_11 = arith.constant 0.000000e+00 : f32
    %15 = vector.broadcast %cst_11 : f32 to vector<512x192xf32>
    %16 = arith.maximumf %14, %15 : vector<512x192xf32>
    %17 = arith.truncf %16 : vector<512x192xf32> to vector<512x192xbf16>
    %c0_12 = arith.constant 0 : index
    %c0_13 = arith.constant 0 : index
    %18 = vector.load %arg6[%c0_12, %c0_13] : memref<192x384xbf16, #tpu.memory_space<vmem>>, vector<192x384xbf16>
    %cst_14 = arith.constant dense<0.000000e+00> : vector<512x384xf32>
    %19 = tpu.matmul %17, %18, %cst_14 {dimension_numbers = #tpu.dot_dimension_numbers<[1], [0], [0], [1], [0, 0, 1, 1], [], []>} : vector<512x192xbf16>, vector<192x384xbf16>, vector<512x384xf32> -> vector<512x384xf32>
    %c0_15 = arith.constant 0 : index
    %c0_16 = arith.constant 0 : index
    %20 = vector.load %arg7[%c0_15, %c0_16] : memref<1x384xf32, #tpu.memory_space<vmem>>, vector<1x384xf32>
    %21 = vector.broadcast %20 : vector<1x384xf32> to vector<512x384xf32>
    %22 = arith.addf %19, %21 : vector<512x384xf32>
    %cst_17 = arith.constant 0.000000e+00 : f32
    %23 = vector.broadcast %cst_17 : f32 to vector<512x384xf32>
    %24 = arith.maximumf %22, %23 : vector<512x384xf32>
    %25 = arith.truncf %24 : vector<512x384xf32> to vector<512x384xbf16>
    %c0_18 = arith.constant 0 : index
    %c0_19 = arith.constant 0 : index
    %26 = vector.load %arg8[%c0_18, %c0_19] : memref<384x128xbf16, #tpu.memory_space<vmem>>, vector<384x128xbf16>
    %cst_20 = arith.constant dense<0.000000e+00> : vector<512x128xf32>
    %27 = tpu.matmul %25, %26, %cst_20 {dimension_numbers = #tpu.dot_dimension_numbers<[1], [0], [0], [1], [0, 0, 1, 1], [], []>} : vector<512x384xbf16>, vector<384x128xbf16>, vector<512x128xf32> -> vector<512x128xf32>
    %28 = vector.extract_strided_slice %27 {offsets = [0, 0], sizes = [512, 1], strides = [1, 1]} : vector<512x128xf32> to vector<512x1xf32>
    %c0_21 = arith.constant 0 : index
    %c0_22 = arith.constant 0 : index
    %29 = vector.load %arg9[%c0_21, %c0_22] : memref<1x1xf32, #tpu.memory_space<vmem>>, vector<1x1xf32>
    %30 = vector.broadcast %29 : vector<1x1xf32> to vector<512x1xf32>
    %31 = arith.addf %28, %30 : vector<512x1xf32>
    %cst_23 = arith.constant 0.000000e+00 : f32
    %32 = vector.broadcast %cst_23 : f32 to vector<512x1xf32>
    %33 = arith.subf %32, %31 : vector<512x1xf32>
    %34 = math.exp %33 : vector<512x1xf32>
    %cst_24 = arith.constant 1.000000e+00 : f32
    %35 = vector.broadcast %cst_24 : f32 to vector<512x1xf32>
    %36 = arith.addf %35, %34 : vector<512x1xf32>
    %37 = tpu.reciprocal %36 {approx = true} : vector<512x1xf32> -> vector<512x1xf32>
    %c0_25 = arith.constant 0 : index
    %c0_26 = arith.constant 0 : index
    %38 = vector.load %arg10[%c0_25, %c0_26] : memref<512x1xf32, #tpu.memory_space<vmem>>, vector<512x1xf32>
    tpu.vector_store %arg10[%c0_25, %c0_26], %37 {strides = array<i32>} : memref<512x1xf32, #tpu.memory_space<vmem>>, vector<512x1xf32>,
    return
  }
  func.func @transform_0(%arg0: i32) -> (i32, i32) {
    %c0_i32 = arith.constant 0 : i32
    %c0_i32_0 = arith.constant 0 : i32
    return %arg0, %c0_i32 : i32, i32
  }
  func.func @transform_1(%arg0: i32) -> (i32, i32) {
    %c0_i32 = arith.constant 0 : i32
    %c0_i32_0 = arith.constant 0 : i32
    %c0_i32_1 = arith.constant 0 : i32
    return %c0_i32, %c0_i32_0 : i32, i32
  }
  func.func @transform_2(%arg0: i32) -> (i32, i32) {
    %c0_i32 = arith.constant 0 : i32
    %c0_i32_0 = arith.constant 0 : i32
    %c0_i32_1 = arith.constant 0 : i32
    return %c0_i32, %c0_i32_0 : i32, i32
  }
  func.func @transform_3(%arg0: i32) -> (i32, i32) {
    %c0_i32 = arith.constant 0 : i32
    %c0_i32_0 = arith.constant 0 : i32
    %c0_i32_1 = arith.constant 0 : i32
    return %c0_i32, %c0_i32_0 : i32, i32
  }
  func.func @transform_4(%arg0: i32) -> (i32, i32) {
    %c0_i32 = arith.constant 0 : i32
    %c0_i32_0 = arith.constant 0 : i32
    %c0_i32_1 = arith.constant 0 : i32
    return %c0_i32, %c0_i32_0 : i32, i32
  }
  func.func @transform_5(%arg0: i32) -> (i32, i32) {
    %c0_i32 = arith.constant 0 : i32
    %c0_i32_0 = arith.constant 0 : i32
    %c0_i32_1 = arith.constant 0 : i32
    return %c0_i32, %c0_i32_0 : i32, i32
  }
  func.func @transform_6(%arg0: i32) -> (i32, i32) {
    %c0_i32 = arith.constant 0 : i32
    %c0_i32_0 = arith.constant 0 : i32
    %c0_i32_1 = arith.constant 0 : i32
    return %c0_i32, %c0_i32_0 : i32, i32
  }
  func.func @transform_7(%arg0: i32) -> (i32, i32) {
    %c0_i32 = arith.constant 0 : i32
    %c0_i32_0 = arith.constant 0 : i32
    %c0_i32_1 = arith.constant 0 : i32
    return %c0_i32, %c0_i32_0 : i32, i32
  }
  func.func @transform_8(%arg0: i32) -> (i32, i32) {
    %c0_i32 = arith.constant 0 : i32
    %c0_i32_0 = arith.constant 0 : i32
    %c0_i32_1 = arith.constant 0 : i32
    return %c0_i32, %c0_i32_0 : i32, i32
  }
  func.func @transform_9(%arg0: i32) -> (i32, i32) {
    %c0_i32 = arith.constant 0 : i32
    %c0_i32_0 = arith.constant 0 : i32
    return %arg0, %c0_i32 : i32, i32
  }
}

</mosaic_0001>

<bundles_post_ra>
// kernel: tpu_custom_call.1
= control target key start
LH: loop header
LB: loop body
LE: loop exit
PB: predicated region body
PF: predicated region fallthrough
CT: control target
= control target key end

     0   :  { %s5102_s11 = smov 0   ;;  %s6783_s0 = inlined_call_operand.vmem [shape: f32[1024,48], index: 0, kind: input, shape index: {}]   ;;  %s6784_s1 = inlined_call_operand.vmem [shape: bf16[48,96], index: 1, kind: input, shape index: {}]   ;;  %s6785_s2 = inlined_call_operand.vmem [shape: f32[1,96], index: 2, kind: input, shape index: {}]   ;;  %s6786_s3 = inlined_call_operand.vmem [shape: bf16[96,192], index: 3, kind: input, shape index: {}]   ;;  %s6787_s4 = inlined_call_operand.vmem [shape: f32[1,192], index: 4, kind: input, shape index: {}]   ;;  %s6788_s5 = inlined_call_operand.vmem [shape: bf16[192,384], index: 5, kind: input, shape index: {}]   ;;  %s6789_s6 = inlined_call_operand.vmem [shape: f32[1,384], index: 6, kind: input, shape index: {}]   ;;  %s6790_s7 = inlined_call_operand.vmem [shape: bf16[384,128], index: 7, kind: input, shape index: {}]   ;;  %s6791_s8 = inlined_call_operand.<no memory space> [shape: f32[1,1], index: 8, kind: input, shape index: {}]   ;;  %s6792_s9 = inlined_call_operand.vmem [shape: f32[1024,1], index: 9, kind: output, shape index: {}]  }
   0x1   :  { %v14_v0 = vstv %s6791_s8 }
   0x2   :  { %15 = vst [vmem:[#allocation2] sm:$0x1] %v14_v0 }
   0x3 LB: > { %s4240_s12 = sadd.s32 4294967295, %s5046_s11   ;;  %p4244_p0 = scmp.ge.s32.totalorder %s5046_s11, 1  ;;  %s5046_s11 = sphi %s5102_s11, %s21_s11  }
   0x4   : > { %p290_p1 = scmp.lt.s32.totalorder %s5046_s11, 3 }
   0x6   : > { %p291_p2 = pnand %p4244_p0, %p290_p1 }
   0x7   : > { %v4690_v1 = vld [vmem:[%s6784_s1] sm:$0xff] (!%p291_p2)   ;;  %s4245_s8 = sshll.u32 (!%p291_p2), %s4240_s12, 6  ;;  %v4691_v2 = vld [vmem:[%s6784_s1 + $0x8] sm:$0xff] (!%p291_p2)   ;;  %v4692_v3 = vld [vmem:[%s6784_s1 + $0x10] sm:$0xff] (!%p291_p2)   ;;  %vm466_vm0 = vcmask (!%p291_p2), 392192   ;;  %vm1032_vm1 = vcmask (!%p291_p2), 785408  }
   0x8   : > { %294 = sbr.rel (%p291_p2) target bundleno = 1221 (0x4c5), region = 56  ;;  %p327_p3 = scmp.lt.s32.totalorder (!%p291_p2), %s4245_s8, 127  ;;  %4531 = vmatprep.subr.bf16.mxu0 (!%p291_p2), %v4690_v1  ;;  %v4693_v4 = vld [vmem:[%s6786_s3 + $0x4] ss:$8 sps:$4 sm:$0xff] (!%p291_p2)   ;;  %v4695_v5 = vld [vmem:[%s6786_s3] ss:$8 sps:$4 sm:$0xff] (!%p291_p2)  }
   0x9   : > { %4532 = vmatpush3.bf16.msra.mxu0 (!%p291_p2), %v4690_v1  ;;  %1129 = vmatprep.subr.bf16.mxu1 (!%p291_p2), %v4693_v4  ;;  %v4696_v6 = vld [vmem:[%s6786_s3 + $0x14] ss:$8 sps:$4 sm:$0xff] (!%p291_p2)   ;;  %v4698_v7 = vld [vmem:[%s6786_s3 + $0x10] ss:$8 sps:$4 sm:$0xff] (!%p291_p2)   ;;  %v4699_v8 = vld [vmem:[%s6786_s3 + $0x24] ss:$8 sps:$4 sm:$0xff] (!%p291_p2)  }
   0xa   : > { %4533 = vmatprep.subr.bf16.mxu0 (!%p291_p2), %v4691_v2  ;;  %1130 = vmatpush1.bf16.msra.mxu1 (!%p291_p2), %v4695_v5  ;;  %v4701_v17 = vld [vmem:[%s6786_s3 + $0x20] ss:$8 sps:$4 sm:$0xff] (!%p291_p2)   ;;  %v4702_v30 = vld [vmem:[%s6786_s3 + $0x34] ss:$8 sps:$4 sm:$0xff] (!%p291_p2)   ;;  %v4704_v31 = vld [vmem:[%s6786_s3 + $0x30] ss:$8 sps:$4 sm:$0xff] (!%p291_p2)  }
   0xb   : > { %1131 = vmatprep.subr.bf16.mxu1 (!%p291_p2), %v4696_v6  ;;  %vm1931_vm2 = vcmask (!%p291_p2), 523264   ;;  %vm4119_vm3 = vcmask (!%p291_p2), 7168  }
   0xd   : > { %4534 = vmatpush3.bf16.msra.mxu0 (!%p291_p2), %v4691_v2 }
   0xe   : > { %4535 = vmatprep.subr.bf16.mxu0 (!%p291_p2), %v4692_v3  ;;  %1132 = vmatpush1.bf16.msra.mxu1 (!%p291_p2), %v4698_v7 }
   0xf   : > { %s6794_s8 = smov (!%p327_p3, %s4245_s8), 127  ;;  %1133 = vmatprep.subr.bf16.mxu1 %v4699_v8 }
  0x10   : > { %s4246_s23 = sshll.u32 %s6794_s8, 3 }
  0x11   : > { %s5136_s28 = scalar_lea.vmem %s6783_s0, %s4246_s23  ;;  %4536 = vmatpush3.bf16.msra.mxu0 %v4692_v3  ;;  %s6599_s22 = scalar_lea.vmem %s6792_s9, %s4246_s23 }
  0x12   : > { %v339_v9 = vld [vmem:[%s5136_s28] sm:$0xff]  ;;  %v340_v10 = vld [vmem:[%s5136_s28 + $0x8] sm:$0xff]  ;;  %v341_v11 = vld [vmem:[%s5136_s28 + $0x10] sm:$0xff]  ;;  %1134 = vmatpush1.bf16.msra.mxu1 %v4701_v17 }
  0x13   : > { %v403_v12 = vpack.c.bf16 %v340_v10, %v339_v9  ;;  %v342_v13 = vld [vmem:[%s5136_s28 + $0x18] sm:$0xff]  ;;  %v343_v14 = vld [vmem:[%s5136_s28 + $0x20] sm:$0xff]  ;;  %v344_v15 = vld [vmem:[%s5136_s28 + $0x28] sm:$0xff]  ;;  %1135 = vmatprep.subr.bf16.mxu1 %v4702_v30 }
  0x14   : > { %v404_v16 = vpack.c.bf16 %v342_v13, %v341_v11  ;;  %v405_v18 = vpack.c.bf16 %v344_v15, %v343_v14  ;;  %v345_v19 = vld [vmem:[%s5136_s28 + $0x30] sm:$0xff]  ;;  %v346_v20 = vld [vmem:[%s5136_s28 + $0x38] sm:$0xff]  ;;  %v347_v21 = vld [vmem:[%s5136_s28 + $0x40] sm:$0xff] }
  0x15   : > { %4537 = vmatprep.mubr.msk.bf16.mxu0 %vm466_vm0, %v403_v12  ;;  %v348_v22 = vld [vmem:[%s5136_s28 + $0x48] sm:$0xff]  ;;  %v406_v23 = vpack.c.bf16 %v346_v20, %v345_v19  ;;  %v349_v25 = vld [vmem:[%s5136_s28 + $0x50] sm:$0xff]  ;;  %v350_v26 = vld [vmem:[%s5136_s28 + $0x58] sm:$0xff] }
  0x16   : > { %4538 = vmatmul.mubr.msk.bf16.vlgmr.msra.gmra.mrb[0].mxu0 %vm466_vm0, %v404_v16  ;;  %v407_v24 = vpack.c.bf16 %v348_v22, %v347_v21  ;;  %v351_v27 = vld [vmem:[%s5136_s28 + $0x60] sm:$0xff]  ;;  %v352_v28 = vld [vmem:[%s5136_s28 + $0x68] sm:$0xff]  ;;  %v408_v29 = vpack.c.bf16 %v350_v26, %v349_v25  ;;  %v353_v33 = vld [vmem:[%s5136_s28 + $0x70] sm:$0xff]  ;;  %1136 = vmatpush1.bf16.msra.mxu1 %v4704_v31 }
  0x17   : > { %4541 = vmatprep.mubr.msk.bf16.mxu0 %vm466_vm0, %v405_v18  ;;  %v409_v32 = vpack.c.bf16 %v352_v28, %v351_v27  ;;  %v354_v34 = vld [vmem:[%s5136_s28 + $0x78] sm:$0xff]  ;;  %v355_v35 = vld [vmem:[%s5136_s28 + $0x80] sm:$0xff]  ;;  %v356_v36 = vld [vmem:[%s5136_s28 + $0x88] sm:$0xff] }
  0x18   : > { %v410_v37 = vpack.c.bf16 %v354_v34, %v353_v33  ;;  %v411_v38 = vpack.c.bf16 %v356_v36, %v355_v35  ;;  %v357_v39 = vld [vmem:[%s5136_s28 + $0x90] sm:$0xff]  ;;  %v358_v40 = vld [vmem:[%s5136_s28 + $0x98] sm:$0xff]  ;;  %v359_v41 = vld [vmem:[%s5136_s28 + $0xa0] sm:$0xff] }
  0x19   : > { %v360_v42 = vld [vmem:[%s5136_s28 + $0xa8] sm:$0xff]  ;;  %v412_v43 = vpack.c.bf16 %v358_v40, %v357_v39  ;;  %v361_v45 = vld [vmem:[%s5136_s28 + $0xb0] sm:$0xff]  ;;  %v362_v46 = vld [vmem:[%s5136_s28 + $0xb8] sm:$0xff] }
  0x1a   : > { %v413_v44 = vpack.c.bf16 %v360_v42, %v359_v41  ;;  %v363_v47 = vld [vmem:[%s5136_s28 + $0xc0] sm:$0xff]  ;;  %v364_v48 = vld [vmem:[%s5136_s28 + $0xc8] sm:$0xff]  ;;  %v414_v49 = vpack.c.bf16 %v362_v46, %v361_v45  ;;  %v365_v51 = vld [vmem:[%s5136_s28 + $0xd0] sm:$0xff] }
  0x1b   : > { %v415_v50 = vpack.c.bf16 %v364_v48, %v363_v47  ;;  %v366_v52 = vld [vmem:[%s5136_s28 + $0xd8] sm:$0xff]  ;;  %v367_v53 = vld [vmem:[%s5136_s28 + $0xe0] sm:$0xff]  ;;  %v368_v54 = vld [vmem:[%s5136_s28 + $0xe8] sm:$0xff] }
  0x1c   : > { %v416_v55 = vpack.c.bf16 %v366_v52, %v365_v51  ;;  %v417_v56 = vpack.c.bf16 %v368_v54, %v367_v53  ;;  %v369_v57 = vld [vmem:[%s5136_s28 + $0xf0] sm:$0xff]  ;;  %v370_v58 = vld [vmem:[%s5136_s28 + $0xf8] sm:$0xff]  ;;  %v371_v59 = vld [vmem:[%s5136_s28 + $0x100] sm:$0xff] }
  0x1d   : > { %v372_v60 = vld [vmem:[%s5136_s28 + $0x108] sm:$0xff]  ;;  %v418_v61 = vpack.c.bf16 %v370_v58, %v369_v57  ;;  %v373_v63 = vld [vmem:[%s5136_s28 + $0x110] sm:$0xff]  ;;  %v374_v0 = vld [vmem:[%s5136_s28 + $0x118] sm:$0xff] }
  0x1e   : > { %4542 = vmatmul.mubr.msk.bf16.gmra.mrb[4].mxu0 %vm466_vm0, %v406_v23  ;;  %v419_v62 = vpack.c.bf16 %v372_v60, %v371_v59  ;;  %v375_v1 = vld [vmem:[%s5136_s28 + $0x120] sm:$0xff]  ;;  %v376_v2 = vld [vmem:[%s5136_s28 + $0x128] sm:$0xff]  ;;  %v420_v3 = vpack.c.bf16 %v374_v0, %v373_v63  ;;  %v377_v5 = vld [vmem:[%s5136_s28 + $0x130] sm:$0xff] }
  0x1f   : > { %4545 = vmatprep.mubr.msk.bf16.mxu0 %vm466_vm0, %v407_v24  ;;  %v421_v4 = vpack.c.bf16 %v376_v2, %v375_v1  ;;  %v378_v6 = vld [vmem:[%s5136_s28 + $0x138] sm:$0xff]  ;;  %v379_v7 = vld [vmem:[%s5136_s28 + $0x140] sm:$0xff]  ;;  %v380_v8 = vld [vmem:[%s5136_s28 + $0x148] sm:$0xff] }
  0x20   : > { %v422_v9 = vpack.c.bf16 %v378_v6, %v377_v5  ;;  %v423_v10 = vpack.c.bf16 %v380_v8, %v379_v7  ;;  %v381_v11 = vld [vmem:[%s5136_s28 + $0x150] sm:$0xff]  ;;  %v382_v12 = vld [vmem:[%s5136_s28 + $0x158] sm:$0xff]  ;;  %v383_v13 = vld [vmem:[%s5136_s28 + $0x160] sm:$0xff] }
  0x21   : > { %v384_v14 = vld [vmem:[%s5136_s28 + $0x168] sm:$0xff]  ;;  %v424_v15 = vpack.c.bf16 %v382_v12, %v381_v11  ;;  %v385_v17 = vld [vmem:[%s5136_s28 + $0x170] sm:$0xff]  ;;  %v386_v18 = vld [vmem:[%s5136_s28 + $0x178] sm:$0xff] }
  0x22   : > { %v425_v16 = vpack.c.bf16 %v384_v14, %v383_v13  ;;  %v387_v19 = vld [vmem:[%s5136_s28 + $0x180] sm:$0xff]  ;;  %v388_v20 = vld [vmem:[%s5136_s28 + $0x188] sm:$0xff]  ;;  %v426_v22 = vpack.c.bf16 %v386_v18, %v385_v17  ;;  %v4708_v25 = vld [vmem:[%s6786_s3 + $0x54] ss:$8 sps:$4 sm:$0xff]  }
  0x23   : > { %v4705_v21 = vld [vmem:[%s6786_s3 + $0x44] ss:$8 sps:$4 sm:$0xff]   ;;  %v4707_v23 = vld [vmem:[%s6786_s3 + $0x40] ss:$8 sps:$4 sm:$0xff]   ;;  %v427_v24 = vpack.c.bf16 %v388_v20, %v387_v19  ;;  %v4710_v26 = vld [vmem:[%s6786_s3 + $0x50] ss:$8 sps:$4 sm:$0xff]  }
  0x24   : > { %1137 = vmatprep.subr.bf16.mxu1 %v4705_v21  ;;  %v389_v27 = vld [vmem:[%s5136_s28 + $0x190] sm:$0xff]  ;;  %v390_v28 = vld [vmem:[%s5136_s28 + $0x198] sm:$0xff]  ;;  %v392_v30 = vld [vmem:[%s5136_s28 + $0x1a8] sm:$0xff] }
  0x25   : > { %1138 = vmatpush1.bf16.msra.mxu1 %v4707_v23  ;;  %v428_v31 = vpack.c.bf16 %v390_v28, %v389_v27  ;;  %v393_v34 = vld [vmem:[%s5136_s28 + $0x1b0] sm:$0xff]  ;;  %v394_v35 = vld [vmem:[%s5136_s28 + $0x1b8] sm:$0xff]  ;;  %v395_v36 = vld [vmem:[%s5136_s28 + $0x1c0] sm:$0xff] }
  0x26   : > { %4546 = vmatmul.mubr.msk.bf16.gmra.mrb[8].mxu0 %vm466_vm0, %v408_v29  ;;  %1139 = vmatprep.subr.bf16.mxu1 %v4708_v25  ;;  %v391_v29 = vld [vmem:[%s5136_s28 + $0x1a0] sm:$0xff]  ;;  %v397_v40 = vld [vmem:[%s5136_s28 + $0x1d0] sm:$0xff]  ;;  %v398_v41 = vld [vmem:[%s5136_s28 + $0x1d8] sm:$0xff] }
  0x27   : > { %4549 = vmatprep.mubr.msk.bf16.mxu0 %vm466_vm0, %v409_v32  ;;  %v5048_v32 = vmov 0   ;;  %v429_v33 = vpack.c.bf16 %v392_v30, %v391_v29  ;;  %v399_v42 = vld [vmem:[%s5136_s28 + $0x1e0] sm:$0xff]  ;;  %v401_v46 = vld [vmem:[%s5136_s28 + $0x1f0] sm:$0xff]  ;;  %v402_v47 = vld [vmem:[%s5136_s28 + $0x1f8] sm:$0xff] }
  0x28   : > { %1161 = vmatprep.mubr.bf16.mxu1 %v5048_v32  ;;  %v434_v48 = vpack.c.bf16 %v402_v47, %v401_v46  ;;  %v4719_v51 = vld [vmem:[%s6788_s5 + $0x18] ss:$12 sps:$4 sm:$0xff]   ;;  %v4721_v52 = vld [vmem:[%s6788_s5 + $0x1c] ss:$12 sps:$4 sm:$0xff]   ;;  %v4725_v54 = vld [vmem:[%s6788_s5 + $0x34] ss:$12 sps:$4 sm:$0xff]  }
  0x29   : > { %1140 = vmatpush1.bf16.msra.mxu1 %v4710_v26  ;;  %v4723_v53 = vld [vmem:[%s6788_s5 + $0x30] ss:$12 sps:$4 sm:$0xff]   ;;  %v4711_v7 = vld [vmem:[%s6788_s5 + $0x8] ss:$12 sps:$4 sm:$0xff]   ;;  %v4712_v17 = vld [vmem:[%s6788_s5 + $0x20] ss:$12 sps:$4 sm:$0xff]  }
  0x2a   : > { %2381 = vmatprep.subr.bf16.mxu1 %v5048_v32  ;;  %v4713_v23 = vld [vmem:[%s6788_s5 + $0x38] ss:$12 sps:$4 sm:$0xff]   ;;  %v4730_v30 = vld [vmem:[%s6788_s5 + $0x60] ss:$12 sps:$4 sm:$0xff]  }
  0x2e   : > { %4550 = vmatmul.mubr.msk.bf16.gmra.mrb[12].mxu0 %vm466_vm0, %v410_v37  ;;  %v396_v37 = vld [vmem:[%s5136_s28 + $0x1c8] sm:$0xff] }
  0x2f   : > { %4553 = vmatprep.mubr.msk.bf16.mxu0 %vm466_vm0, %v411_v38  ;;  %v430_v38 = vpack.c.bf16 %v394_v35, %v393_v34  ;;  %v431_v39 = vpack.c.bf16 %v396_v37, %v395_v36  ;;  %v4714_v36 = vld [vmem:[%s6788_s5 + $0x50] ss:$12 sps:$4 sm:$0xff]  }
  0x36   : > { %4554 = vmatmul.mubr.msk.bf16.gmra.mrb[16].mxu0 %vm466_vm0, %v412_v43  ;;  %v400_v43 = vld [vmem:[%s5136_s28 + $0x1e8] sm:$0xff] }
  0x37   : > { %4557 = vmatprep.mubr.msk.bf16.mxu0 %vm466_vm0, %v413_v44  ;;  %v432_v44 = vpack.c.bf16 %v398_v41, %v397_v40  ;;  %v433_v45 = vpack.c.bf16 %v400_v43, %v399_v42  ;;  %v4715_v42 = vld [vmem:[%s6788_s5 + $0x68] ss:$12 sps:$4 sm:$0xff]  }
  0x3e   : > { %4558 = vmatmul.mubr.msk.bf16.gmra.mrb[20].mxu0 %vm466_vm0, %v414_v49  ;;  %v4716_v49 = vld [vmem:[%s6788_s5] ss:$12 sps:$4 sm:$0xff]  }
  0x3f   : > { %4561 = vmatprep.mubr.msk.bf16.mxu0 %vm466_vm0, %v415_v50  ;;  %v4718_v50 = vld [vmem:[%s6788_s5 + $0x4] ss:$12 sps:$4 sm:$0xff]  }
  0x40   : > { %2028 = vmatprep.subr.bf16.mxu0 %v4718_v50  ;;  %v4735_v50 = vld [vmem:[%s6788_s5 + $0x7c] ss:$12 sps:$4 sm:$0xff]  }
  0x41   : > { %2029 = vmatpush1.bf16.msra.mxu0 %v4716_v49  ;;  %v4733_v49 = vld [vmem:[%s6788_s5 + $0x78] ss:$12 sps:$4 sm:$0xff]  }
  0x42   : > { %2030 = vmatprep.subr.bf16.mxu0 %v4721_v52 }
  0x45   : > { %2031 = vmatpush1.bf16.msra.mxu0 %v4719_v51 }
  0x46   : > { %4562 = vmatmul.mubr.msk.bf16.gmra.mrb[24].mxu0 %vm466_vm0, %v416_v55  ;;  %2032 = vmatprep.subr.bf16.mxu0 %v4725_v54  ;;  %v5284_v55 = vld [vmem:[%s6785_s2] ss:$0 sm:$0xff] }
  0x47   : > { %4565 = vmatprep.mubr.msk.bf16.mxu0 %vm466_vm0, %v417_v56  ;;  %v4722_v54 = vld [vmem:[%s6788_s5 + $0x80] ss:$12 sps:$4 sm:$0xff]  }
  0x49   : > { %2033 = vmatpush1.bf16.msra.mxu0 %v4723_v53 }
  0x4e   : > { %4566 = vmatmul.mubr.msk.bf16.gmra.mrb[28].mxu0 %vm466_vm0, %v418_v61  ;;  %v4726_v61 = vld [vmem:[%s6788_s5 + $0x48] ss:$12 sps:$4 sm:$0xff]  }
  0x4f   : > { %4569 = vmatprep.mubr.msk.bf16.mxu0 %vm466_vm0, %v419_v62  ;;  %v4728_v62 = vld [vmem:[%s6788_s5 + $0x4c] ss:$12 sps:$4 sm:$0xff]  }
  0x50   : > { %2034 = vmatprep.subr.bf16.mxu0 %v4728_v62 }
  0x51   : > { %2035 = vmatpush1.bf16.msra.mxu0 %v4726_v61  ;;  %v4729_v61 = vld [vmem:[%s6788_s5 + $0x98] ss:$12 sps:$4 sm:$0xff]  }
  0x56   : > { %4570 = vmatmul.mubr.msk.bf16.gmra.mrb[32].mxu0 %vm466_vm0, %v420_v3 }
  0x57   : > { %4573 = vmatprep.mubr.msk.bf16.mxu0 %vm466_vm0, %v421_v4 }
  0x5e   : > { %4574 = vmatmul.mubr.msk.bf16.gmra.mrb[36].mxu0 %vm466_vm0, %v422_v9 }
  0x5f   : > { %4577 = vmatprep.mubr.msk.bf16.mxu0 %vm466_vm0, %v423_v10 }
  0x66   : > { %4578 = vmatmul.mubr.msk.bf16.gmra.mrb[40].mxu0 %vm466_vm0, %v424_v15 }
  0x67   : > { %4581 = vmatprep.mubr.msk.bf16.mxu0 %vm466_vm0, %v425_v16 }
  0x6e   : > { %4582 = vmatmul.mubr.msk.bf16.gmra.mrb[44].mxu0 %vm466_vm0, %v426_v22 }
  0x6f   : > { %4585 = vmatprep.mubr.msk.bf16.mxu0 %vm466_vm0, %v427_v24 }
  0x76   : > { %4586 = vmatmul.mubr.msk.bf16.gmra.mrb[48].mxu0 %vm466_vm0, %v428_v31  ;;  %v4732_v31 = vld [vmem:[%s6788_s5 + $0x64] ss:$12 sps:$4 sm:$0xff]  }
  0x77   : > { %4589 = vmatprep.mubr.msk.bf16.mxu0 %vm466_vm0, %v429_v33  ;;  %2036 = vmatprep.subr.bf16.mxu0 %v4732_v31 }
  0x78   : > { %2037 = vmatpush1.bf16.msra.mxu0 %v4730_v30 }
  0x79   : > { %2038 = vmatprep.subr.bf16.mxu0 %v4735_v50 }
  0x7c   : > { %2039 = vmatpush1.bf16.msra.mxu0 %v4733_v49 }
  0x7e   : > { %4590 = vmatmul.mubr.msk.bf16.gmra.mrb[52].mxu0 %vm466_vm0, %v430_v38 }
  0x7f   : > { %4593 = vmatprep.mubr.msk.bf16.mxu0 %vm466_vm0, %v431_v39 }
  0x86   : > { %4594 = vmatmul.mubr.msk.bf16.gmra.mrb[56].mxu0 %vm466_vm0, %v432_v44 }
  0x87   : > { %4597 = vmatprep.mubr.msk.bf16.mxu0 %vm466_vm0, %v433_v45 }
  0x8e   : > { %4598 = vmatmul.mubr.msk.bf16.gmra.mrb[60].mxu0 %vm466_vm0, %v434_v48 }
  0xe9   : > { %v4539_v56 = vpop.f32.mrb[0].mxu0 }
  0xea   : > { %v606_v57 = vadd.f32 %v4539_v56, %v5284_v55  ;;  %v597_v58 = vpop.f32.mrb[1].mxu0 }
  0xeb   : > { %v598_v59 = vadd.f32 %v5284_v55, %v597_v58  ;;  %v4540_v60 = vpop.f32.mrb[2].mxu0 }
  0xec   : > { %v609_v63 = vadd.f32 %v4540_v60, %v5284_v55  ;;  %v600_v0 = vpop.f32.mrb[3].mxu0  ;;  %v854_v2 = vmax.f32 %v606_v57, 0.0 }
  0xed   : > { %v601_v1 = vadd.f32 %v5284_v55, %v600_v0  ;;  %v852_v4 = vmax.f32 %v598_v59, 0.0 }
  0xee   : > { %v855_v3 = vmax.f32 %v609_v63, 0.0 }
  0xef   : > { %v853_v5 = vmax.f32 %v601_v1, 0.0 }
  0xf0   : > { %v917_v6 = vpack.c.bf16 %v855_v3, %v854_v2 }
  0xf1   : > { %v916_v8 = vpack.c.bf16 %v853_v5, %v852_v4  ;;  %v4543_v9 = vpop.f32.mrb[4].mxu0  ;;  %v4737_v4 = vld [vmem:[%s6788_s5 + $0x90] ss:$12 sps:$4 sm:$0xff]   ;;  %v4739_v5 = vld [vmem:[%s6788_s5 + $0x94] ss:$12 sps:$4 sm:$0xff]  }
  0xf2   : > { %v622_v10 = vadd.f32 %v4543_v9, %v5284_v55  ;;  %v613_v11 = vpop.f32.mrb[5].mxu0  ;;  %v4736_v9 = vld [vmem:[%s6788_s5 + $0xb0] ss:$12 sps:$4 sm:$0xff]   ;;  %2040 = vmatprep.subr.bf16.mxu0 %v4739_v5 }
  0xf3   : > { %4297 = vmatmul.mubr.msk.bf16.vlgmr.msra.gmra.mrb[0].mxu1 %vm1032_vm1, %v916_v8  ;;  %v614_v12 = vadd.f32 %v5284_v55, %v613_v11  ;;  %v4544_v13 = vpop.f32.mrb[6].mxu0  ;;  %2041 = vmatpush1.bf16.msra.mxu0 %v4737_v4 }
  0xf4   : > { %2382 = vmatpush1.bf16.msra.mxu1 %v4711_v7  ;;  %v858_v14 = vmax.f32 %v622_v10, 0.0  ;;  %v625_v15 = vadd.f32 %v4544_v13, %v5284_v55  ;;  %v616_v16 = vpop.f32.mrb[7].mxu0  ;;  %1171 = vmatprep.mubr.bf16.mxu1 %v5048_v32 }
  0xf5   : > { %v856_v18 = vmax.f32 %v614_v12, 0.0  ;;  %v617_v19 = vadd.f32 %v5284_v55, %v616_v16  ;;  %2383 = vmatprep.subr.bf16.mxu1 %v5048_v32 }
  0xf6   : > { %v859_v20 = vmax.f32 %v625_v15, 0.0 }
  0xf7   : > { %v857_v21 = vmax.f32 %v617_v19, 0.0 }
  0xf8   : > { %v919_v22 = vpack.c.bf16 %v859_v20, %v858_v14  ;;  %2384 = vmatpush1.bf16.msra.mxu1 %v4712_v17 }
  0xf9   : > { %v918_v24 = vpack.c.bf16 %v857_v21, %v856_v18  ;;  %v4547_v25 = vpop.f32.mrb[8].mxu0  ;;  %2385 = vmatprep.subr.bf16.mxu1 %v5048_v32 }
  0xfa   : > { %v638_v26 = vadd.f32 %v4547_v25, %v5284_v55  ;;  %v629_v27 = vpop.f32.mrb[9].mxu0 }
  0xfb   : > { %4298 = vmatmul.mubr.msk.bf16.gmra.mrb[4].mxu1 %vm1032_vm1, %v917_v6  ;;  %v630_v28 = vadd.f32 %v5284_v55, %v629_v27  ;;  %v4548_v29 = vpop.f32.mrb[10].mxu0 }
  0xfc   : > { %1181 = vmatprep.mubr.bf16.mxu1 %v5048_v32  ;;  %v862_v33 = vmax.f32 %v638_v26, 0.0  ;;  %v641_v34 = vadd.f32 %v4548_v29, %v5284_v55  ;;  %v632_v35 = vpop.f32.mrb[11].mxu0  ;;  %2386 = vmatpush1.bf16.msra.mxu1 %v4713_v23 }
  0xfd   : > { %v860_v37 = vmax.f32 %v630_v28, 0.0  ;;  %v633_v38 = vadd.f32 %v5284_v55, %v632_v35  ;;  %2387 = vmatprep.subr.bf16.mxu1 %v5048_v32 }
  0xfe   : > { %v863_v39 = vmax.f32 %v641_v34, 0.0 }
  0xff   : > { %v861_v40 = vmax.f32 %v633_v38, 0.0 }
 0x100   : > { %v5329_v41 = vpack.c.bf16 %v863_v39, %v862_v33  ;;  %2388 = vmatpush1.bf16.msra.mxu1 %v4714_v36  ;;  %v4740_v36 = vld [vmem:[%s6788_s5 + $0xa8] ss:$12 sps:$4 sm:$0xff]  }
 0x101   : > { %v920_v43 = vpack.c.bf16 %v861_v40, %v860_v37  ;;  %v4551_v44 = vpop.f32.mrb[12].mxu0  ;;  %2389 = vmatprep.subr.bf16.mxu1 %v5048_v32  ;;  %v4742_v37 = vld [vmem:[%s6788_s5 + $0xac] ss:$12 sps:$4 sm:$0xff]  }
 0x102   : > { %v654_v45 = vadd.f32 %v4551_v44, %v5284_v55  ;;  %v645_v46 = vpop.f32.mrb[13].mxu0  ;;  %2042 = vmatprep.subr.bf16.mxu0 %v4742_v37 }
 0x103   : > { %4299 = vmatmul.mubr.msk.bf16.gmra.mrb[8].mxu1 %vm1032_vm1, %v918_v24  ;;  %v646_v47 = vadd.f32 %v5284_v55, %v645_v46  ;;  %v4552_v48 = vpop.f32.mrb[14].mxu0  ;;  %2043 = vmatpush1.bf16.msra.mxu0 %v4740_v36 }
 0x104   : > { %1191 = vmatprep.mubr.bf16.mxu1 %v5048_v32  ;;  %v866_v51 = vmax.f32 %v654_v45, 0.0  ;;  %v657_v52 = vadd.f32 %v4552_v48, %v5284_v55  ;;  %v648_v53 = vpop.f32.mrb[15].mxu0  ;;  %2390 = vmatpush1.bf16.msra.mxu1 %v4715_v42 }
 0x105   : > { %v864_v56 = vmax.f32 %v646_v47, 0.0  ;;  %v649_v57 = vadd.f32 %v5284_v55, %v648_v53  ;;  %2391 = vmatprep.subr.bf16.mxu1 %v5048_v32  ;;  %v4744_v53 = vld [vmem:[%s6788_s5 + $0xc0] ss:$12 sps:$4 sm:$0xff]  }
 0x106   : > { %v867_v58 = vmax.f32 %v657_v52, 0.0 }
 0x107   : > { %v865_v59 = vmax.f32 %v649_v57, 0.0 }
 0x108   : > { %v5351_v60 = vpack.c.bf16 %v867_v58, %v866_v51  ;;  %2392 = vmatpush1.bf16.msra.mxu1 %v4722_v54  ;;  %v4746_v54 = vld [vmem:[%s6788_s5 + $0xc4] ss:$12 sps:$4 sm:$0xff]  }
 0x109   : > { %v5356_v62 = vpack.c.bf16 %v865_v59, %v864_v56  ;;  %v4555_v63 = vpop.f32.mrb[16].mxu0  ;;  %2393 = vmatprep.subr.bf16.mxu1 %v5048_v32  ;;  %2044 = vmatprep.subr.bf16.mxu0 %v4746_v54 }
 0x10a   : > { %v670_v0 = vadd.f32 %v4555_v63, %v5284_v55  ;;  %v661_v1 = vpop.f32.mrb[17].mxu0  ;;  %2045 = vmatpush1.bf16.msra.mxu0 %v4744_v53 }
 0x10b   : > { %4300 = vmatmul.mubr.msk.bf16.gmra.mrb[12].mxu1 %vm1032_vm1, %v919_v22  ;;  %v662_v2 = vadd.f32 %v5284_v55, %v661_v1  ;;  %v4556_v3 = vpop.f32.mrb[18].mxu0 }
 0x10c   : > { %1201 = vmatprep.mubr.bf16.mxu1 %v5048_v32  ;;  %v870_v6 = vmax.f32 %v670_v0, 0.0  ;;  %v673_v7 = vadd.f32 %v4556_v3, %v5284_v55  ;;  %v664_v8 = vpop.f32.mrb[19].mxu0  ;;  %2394 = vmatpush1.bf16.msra.mxu1 %v4729_v61 }
 0x10d   : > { %v868_v10 = vmax.f32 %v662_v2, 0.0  ;;  %v665_v11 = vadd.f32 %v5284_v55, %v664_v8  ;;  %2395 = vmatprep.subr.bf16.mxu1 %v5048_v32  ;;  %v4749_v8 = vld [vmem:[%s6788_s5 + $0xdc] ss:$12 sps:$4 sm:$0xff]  }
 0x10e   : > { %v871_v12 = vmax.f32 %v673_v7, 0.0  ;;  %v4747_v7 = vld [vmem:[%s6788_s5 + $0xd8] ss:$12 sps:$4 sm:$0xff]   ;;  %2046 = vmatprep.subr.bf16.mxu0 %v4749_v8 }
 0x10f   : > { %v869_v13 = vmax.f32 %v665_v11, 0.0  ;;  %2047 = vmatpush1.bf16.msra.mxu0 %v4747_v7  ;;  %v4756_v8 = vld [vmem:[%s6788_s5 + $0x10c] ss:$12 sps:$4 sm:$0xff]  }
 0x110   : > { %v5375_v14 = vpack.c.bf16 %v871_v12, %v870_v6  ;;  %2396 = vmatpush1.bf16.msra.mxu1 %v4736_v9 }
 0x111   : > { %v5377_v15 = vpack.c.bf16 %v869_v13, %v868_v10  ;;  %v4559_v16 = vpop.f32.mrb[20].mxu0  ;;  %2397 = vmatprep.subr.bf16.mxu1 %v5048_v32 }
 0x112   : > { %v686_v17 = vadd.f32 %v4559_v16, %v5284_v55  ;;  %v677_v18 = vpop.f32.mrb[21].mxu0 }
 0x113   : > { %4301 = vmatmul.mubr.msk.bf16.gmra.mrb[16].mxu1 %vm1032_vm1, %v920_v43  ;;  %v678_v19 = vadd.f32 %v5284_v55, %v677_v18  ;;  %v4560_v20 = vpop.f32.mrb[22].mxu0 }
 0x114   : > { %1211 = vmatprep.mubr.bf16.mxu1 %v5048_v32  ;;  %v874_v21 = vmax.f32 %v686_v17, 0.0  ;;  %v689_v22 = vadd.f32 %v4560_v20, %v5284_v55  ;;  %v680_v23 = vpop.f32.mrb[23].mxu0 }
 0x115   : > { %v872_v24 = vmax.f32 %v678_v19, 0.0  ;;  %v681_v25 = vadd.f32 %v5284_v55, %v680_v23 }
 0x116   : > { %v875_v26 = vmax.f32 %v689_v22, 0.0 }
 0x117   : > { %v873_v27 = vmax.f32 %v681_v25, 0.0 }
 0x118   : > { %v5386_v28 = vpack.c.bf16 %v875_v26, %v874_v21 }
 0x119   : > { %v5388_v29 = vpack.c.bf16 %v873_v27, %v872_v24  ;;  %v4563_v30 = vpop.f32.mrb[24].mxu0  ;;  %v4750_v24 = vld [vmem:[%s6788_s5 + $0xe0] ss:$12 sps:$4 sm:$0xff]  }
 0x11a   : > { %v702_v31 = vadd.f32 %v4563_v30, %v5284_v55  ;;  %v693_v33 = vpop.f32.mrb[25].mxu0 }
 0x11b   : > { %4302 = vmatmul.mubr.msk.bf16.gmra.mrb[20].mxu1 %vm1032_vm1, %v5329_v41  ;;  %v694_v34 = vadd.f32 %v5284_v55, %v693_v33  ;;  %v4564_v35 = vpop.f32.mrb[26].mxu0  ;;  %v4743_v41 = vld [vmem:[%s6788_s5 + $0xc8] ss:$12 sps:$4 sm:$0xff]  }
 0x11c   : > { %1221 = vmatprep.mubr.bf16.mxu1 %v5048_v32  ;;  %v878_v38 = vmax.f32 %v702_v31, 0.0  ;;  %v705_v39 = vadd.f32 %v4564_v35, %v5284_v55  ;;  %v696_v40 = vpop.f32.mrb[27].mxu0  ;;  %2398 = vmatpush1.bf16.msra.mxu1 %v4743_v41  ;;  %v4751_v41 = vld [vmem:[%s6788_s5 + $0xf0] ss:$12 sps:$4 sm:$0xff]  }
 0x11d   : > { %v876_v42 = vmax.f32 %v694_v34, 0.0  ;;  %v697_v43 = vadd.f32 %v5284_v55, %v696_v40  ;;  %2399 = vmatprep.subr.bf16.mxu1 %v5048_v32 }
 0x11e   : > { %v879_v44 = vmax.f32 %v705_v39, 0.0 }
 0x11f   : > { %v877_v45 = vmax.f32 %v697_v43, 0.0 }
 0x120   : > { %v5407_v46 = vpack.c.bf16 %v879_v44, %v878_v38  ;;  %2400 = vmatpush1.bf16.msra.mxu1 %v4750_v24 }
 0x121   : > { %v5409_v47 = vpack.c.bf16 %v877_v45, %v876_v42  ;;  %v4567_v48 = vpop.f32.mrb[28].mxu0  ;;  %2401 = vmatprep.subr.bf16.mxu1 %v5048_v32  ;;  %v4753_v42 = vld [vmem:[%s6788_s5 + $0xf4] ss:$12 sps:$4 sm:$0xff]  }
 0x122   : > { %v718_v49 = vadd.f32 %v4567_v48, %v5284_v55  ;;  %v709_v50 = vpop.f32.mrb[29].mxu0  ;;  %2048 = vmatprep.subr.bf16.mxu0 %v4753_v42 }
 0x123   : > { %4303 = vmatmul.mubr.msk.bf16.gmra.mrb[24].mxu1 %vm1032_vm1, %v5356_v62  ;;  %v710_v51 = vadd.f32 %v5284_v55, %v709_v50  ;;  %v4568_v52 = vpop.f32.mrb[30].mxu0  ;;  %2049 = vmatpush1.bf16.msra.mxu0 %v4751_v41 }
 0x124   : > { %1231 = vmatprep.mubr.bf16.mxu1 %v5048_v32  ;;  %v882_v56 = vmax.f32 %v718_v49, 0.0  ;;  %v721_v57 = vadd.f32 %v4568_v52, %v5284_v55  ;;  %v712_v58 = vpop.f32.mrb[31].mxu0  ;;  %2050 = vmatprep.subr.bf16.mxu0 %v4756_v8 }
 0x125   : > { %v880_v59 = vmax.f32 %v710_v51, 0.0  ;;  %v713_v61 = vadd.f32 %v5284_v55, %v712_v58 }
 0x126   : > { %v883_v62 = vmax.f32 %v721_v57, 0.0 }
 0x127   : > { %v881_v63 = vmax.f32 %v713_v61, 0.0 }
 0x128   : > { %v5424_v0 = vpack.c.bf16 %v883_v62, %v882_v56 }
 0x129   : > { %v5426_v1 = vpack.c.bf16 %v881_v63, %v880_v59  ;;  %v4571_v2 = vpop.f32.mrb[32].mxu0 }
 0x12a   : > { %v734_v3 = vadd.f32 %v4571_v2, %v5284_v55  ;;  %v725_v4 = vpop.f32.mrb[33].mxu0 }
 0x12b   : > { %4304 = vmatmul.mubr.msk.bf16.gmra.mrb[28].mxu1 %vm1032_vm1, %v5351_v60  ;;  %v726_v5 = vadd.f32 %v5284_v55, %v725_v4  ;;  %v4572_v6 = vpop.f32.mrb[34].mxu0 }
 0x12c   : > { %1241 = vmatprep.mubr.bf16.mxu1 %v5048_v32  ;;  %v886_v9 = vmax.f32 %v734_v3, 0.0  ;;  %v737_v10 = vadd.f32 %v4572_v6, %v5284_v55  ;;  %v728_v11 = vpop.f32.mrb[35].mxu0 }
 0x12d   : > { %v884_v12 = vmax.f32 %v726_v5, 0.0  ;;  %v729_v60 = vadd.f32 %v5284_v55, %v728_v11 }
 0x12e   : > { %v887_v13 = vmax.f32 %v737_v10, 0.0 }
 0x12f   : > { %v885_v16 = vmax.f32 %v729_v60, 0.0 }
 0x130   : > { %v5441_v17 = vpack.c.bf16 %v887_v13, %v886_v9 }
 0x131   : > { %v5443_v18 = vpack.c.bf16 %v885_v16, %v884_v12  ;;  %v4575_v19 = vpop.f32.mrb[36].mxu0 }
 0x132   : > { %v750_v20 = vadd.f32 %v4575_v19, %v5284_v55  ;;  %v741_v21 = vpop.f32.mrb[37].mxu0 }
 0x133   : > { %4305 = vmatmul.mubr.msk.bf16.gmra.mrb[32].mxu1 %vm1032_vm1, %v5377_v15  ;;  %v742_v22 = vadd.f32 %v5284_v55, %v741_v21  ;;  %v4576_v23 = vpop.f32.mrb[38].mxu0 }
 0x134   : > { %1251 = vmatprep.mubr.bf16.mxu1 %v5048_v32  ;;  %v890_v25 = vmax.f32 %v750_v20, 0.0  ;;  %v753_v26 = vadd.f32 %v4576_v23, %v5284_v55  ;;  %v744_v27 = vpop.f32.mrb[39].mxu0 }
 0x135   : > { %v888_v30 = vmax.f32 %v742_v22, 0.0  ;;  %v745_v31 = vadd.f32 %v5284_v55, %v744_v27 }
 0x136   : > { %v891_v33 = vmax.f32 %v753_v26, 0.0 }
 0x137   : > { %v889_v15 = vmax.f32 %v745_v31, 0.0 }
 0x138   : > { %v5456_v34 = vpack.c.bf16 %v891_v33, %v890_v25 }
 0x139   : > { %v5458_v35 = vpack.c.bf16 %v889_v15, %v888_v30  ;;  %v4579_v36 = vpop.f32.mrb[40].mxu0 }
 0x13a   : > { %v766_v37 = vadd.f32 %v4579_v36, %v5284_v55  ;;  %v757_v38 = vpop.f32.mrb[41].mxu0 }
 0x13b   : > { %4306 = vmatmul.mubr.msk.bf16.gmra.mrb[36].mxu1 %vm1032_vm1, %v5375_v14  ;;  %v758_v39 = vadd.f32 %v5284_v55, %v757_v38  ;;  %v4580_v40 = vpop.f32.mrb[42].mxu0 }
 0x13c   : > { %1261 = vmatprep.mubr.bf16.mxu1 %v5048_v32  ;;  %v894_v43 = vmax.f32 %v766_v37, 0.0  ;;  %v769_v44 = vadd.f32 %v4580_v40, %v5284_v55  ;;  %v760_v45 = vpop.f32.mrb[43].mxu0 }
 0x13d   : > { %v892_v48 = vmax.f32 %v758_v39, 0.0  ;;  %v761_v14 = vadd.f32 %v5284_v55, %v760_v45 }
 0x13e   : > { %v895_v49 = vmax.f32 %v769_v44, 0.0 }
 0x13f   : > { %v893_v50 = vmax.f32 %v761_v14, 0.0 }
 0x140   : > { %v5473_v51 = vpack.c.bf16 %v895_v49, %v894_v43 }
 0x141   : > { %v5475_v52 = vpack.c.bf16 %v893_v50, %v892_v48  ;;  %v4583_v53 = vpop.f32.mrb[44].mxu0 }
 0x142   : > { %v782_v54 = vadd.f32 %v4583_v53, %v5284_v55  ;;  %v773_v56 = vpop.f32.mrb[45].mxu0 }
 0x143   : > { %4307 = vmatmul.mubr.msk.bf16.gmra.mrb[40].mxu1 %vm1032_vm1, %v5388_v29  ;;  %v774_v57 = vadd.f32 %v5284_v55, %v773_v56  ;;  %v4584_v58 = vpop.f32.mrb[46].mxu0  ;;  %v4754_v29 = vld [vmem:[%s6788_s5 + $0x108] ss:$12 sps:$4 sm:$0xff]  }
 0x144   : > { %1271 = vmatprep.mubr.bf16.mxu1 %v5048_v32  ;;  %v898_v59 = vmax.f32 %v782_v54, 0.0  ;;  %v785_v61 = vadd.f32 %v4584_v58, %v5284_v55  ;;  %v776_v62 = vpop.f32.mrb[47].mxu0  ;;  %2051 = vmatpush1.bf16.msra.mxu0 %v4754_v29 }
 0x145   : > { %v896_v63 = vmax.f32 %v774_v57, 0.0  ;;  %v777_v2 = vadd.f32 %v5284_v55, %v776_v62  ;;  %3150 = vmatprep.subr.bf16.mxu0 %v5048_v32 }
 0x146   : > { %v899_v3 = vmax.f32 %v785_v61, 0.0 }
 0x147   : > { %v897_v4 = vmax.f32 %v777_v2, 0.0 }
 0x148   : > { %v5484_v5 = vpack.c.bf16 %v899_v3, %v898_v59 }
 0x149   : > { %v5486_v6 = vpack.c.bf16 %v897_v4, %v896_v63  ;;  %v4587_v7 = vpop.f32.mrb[48].mxu0  ;;  %v4759_v63 = vld [vmem:[%s6788_s5 + $0x110] ss:$12 sps:$4 sm:$0xff]  }
 0x14a   : > { %v798_v9 = vadd.f32 %v4587_v7, %v5284_v55  ;;  %v789_v10 = vpop.f32.mrb[49].mxu0 }
 0x14b   : > { %4308 = vmatmul.mubr.msk.bf16.gmra.mrb[44].mxu1 %vm1032_vm1, %v5386_v28  ;;  %v790_v11 = vadd.f32 %v5284_v55, %v789_v10  ;;  %v4588_v12 = vpop.f32.mrb[50].mxu0  ;;  %v4757_v28 = vld [vmem:[%s6788_s5 + $0xf8] ss:$12 sps:$4 sm:$0xff]  }
 0x14c   : > { %1281 = vmatprep.mubr.bf16.mxu1 %v5048_v32  ;;  %v902_v60 = vmax.f32 %v798_v9, 0.0  ;;  %v801_v13 = vadd.f32 %v4588_v12, %v5284_v55  ;;  %v792_v16 = vpop.f32.mrb[51].mxu0  ;;  %2402 = vmatpush1.bf16.msra.mxu1 %v4757_v28 }
 0x14d   : > { %v900_v19 = vmax.f32 %v790_v11, 0.0  ;;  %v793_v20 = vadd.f32 %v5284_v55, %v792_v16  ;;  %2403 = vmatprep.subr.bf16.mxu1 %v5048_v32 }
 0x14e   : > { %v903_v21 = vmax.f32 %v801_v13, 0.0 }
 0x14f   : > { %v901_v22 = vmax.f32 %v793_v20, 0.0 }
 0x150   : > { %v5505_v23 = vpack.c.bf16 %v903_v21, %v902_v60  ;;  %2404 = vmatpush1.bf16.msra.mxu1 %v4759_v63 }
 0x151   : > { %v5507_v24 = vpack.c.bf16 %v901_v22, %v900_v19  ;;  %v4591_v25 = vpop.f32.mrb[52].mxu0 }
 0x152   : > { %v814_v26 = vadd.f32 %v4591_v25, %v5284_v55  ;;  %v805_v27 = vpop.f32.mrb[53].mxu0 }
 0x153   : > { %4309 = vmatmul.mubr.msk.bf16.gmra.mrb[48].mxu1 %vm1032_vm1, %v5409_v47  ;;  %v806_v30 = vadd.f32 %v5284_v55, %v805_v27  ;;  %v4592_v31 = vpop.f32.mrb[54].mxu0  ;;  %v4758_v27 = vld [vmem:[%s6790_s7] sm:$0xff]  }
 0x154   : > { %1291 = vmatprep.mubr.bf16.mxu1 %v5048_v32  ;;  %v906_v33 = vmax.f32 %v814_v26, 0.0  ;;  %v817_v15 = vadd.f32 %v4592_v31, %v5284_v55  ;;  %v808_v36 = vpop.f32.mrb[55].mxu0 }
 0x155   : > { %v904_v37 = vmax.f32 %v806_v30, 0.0  ;;  %v809_v38 = vadd.f32 %v5284_v55, %v808_v36 }
 0x156   : > { %v907_v39 = vmax.f32 %v817_v15, 0.0 }
 0x157   : > { %v905_v40 = vmax.f32 %v809_v38, 0.0 }
 0x158   : > { %v5517_v41 = vpack.c.bf16 %v907_v39, %v906_v33  ;;  %v4760_v39 = vld [vmem:[%s6790_s7 + $0x8] sm:$0xff]  }
 0x159   : > { %v942_v42 = vpack.c.bf16 %v905_v40, %v904_v37  ;;  %v4595_v43 = vpop.f32.mrb[56].mxu0  ;;  %v5621_v40 = vld [vmem:[%s6790_s7 + $0x80] sm:$0xff]  }
 0x15a   : > { %v830_v47 = vadd.f32 %v4595_v43, %v5284_v55  ;;  %v821_v44 = vpop.f32.mrb[57].mxu0  ;;  %4601 = vmatprep.subr.bf16.mxu1 %v5621_v40 }
 0x15b   : > { %4310 = vmatmul.mubr.msk.bf16.gmra.mrb[52].mxu1 %vm1032_vm1, %v5407_v46  ;;  %v822_v45 = vadd.f32 %v5284_v55, %v821_v44  ;;  %v4596_v48 = vpop.f32.mrb[58].mxu0 }
 0x15c   : > { %1301 = vmatprep.mubr.bf16.mxu1 %v5048_v32  ;;  %v910_v14 = vmax.f32 %v830_v47, 0.0  ;;  %v833_v49 = vadd.f32 %v4596_v48, %v5284_v55  ;;  %v824_v50 = vpop.f32.mrb[59].mxu0 }
 0x15d   : > { %v908_v53 = vmax.f32 %v822_v45, 0.0  ;;  %v825_v54 = vadd.f32 %v5284_v55, %v824_v50 }
 0x15e   : > { %v911_v56 = vmax.f32 %v833_v49, 0.0 }
 0x15f   : > { %v909_v57 = vmax.f32 %v825_v54, 0.0 }
 0x160   : > { %v5526_v58 = vpack.c.bf16 %v911_v56, %v910_v14  ;;  %v4761_v14 = vld [vmem:[%s6790_s7 + $0x10] sm:$0xff]  }
 0x161   : > { %v5528_v59 = vpack.c.bf16 %v909_v57, %v908_v53  ;;  %v4599_v61 = vpop.f32.mrb[60].mxu0 }
 0x162   : > { %v846_v46 = vadd.f32 %v4599_v61, %v5284_v55  ;;  %v837_v62 = vpop.f32.mrb[61].mxu0  ;;  %v4762_v61 = vld [vmem:[%s6790_s7 + $0x18] sm:$0xff]  }
 0x163   : > { %4311 = vmatmul.mubr.msk.bf16.gmra.mrb[56].mxu1 %vm1032_vm1, %v5426_v1  ;;  %v838_v2 = vadd.f32 %v5284_v55, %v837_v62  ;;  %v4600_v3 = vpop.f32.mrb[62].mxu0 }
 0x164   : > { %1311 = vmatprep.mubr.bf16.mxu1 %v5048_v32  ;;  %v914_v4 = vmax.f32 %v846_v46, 0.0  ;;  %v849_v7 = vadd.f32 %v4600_v3, %v5284_v55  ;;  %v840_v29 = vpop.f32.mrb[63].mxu0 }
 0x165   : > { %v912_v8 = vmax.f32 %v838_v2, 0.0  ;;  %v841_v9 = vadd.f32 %v5284_v55, %v840_v29  ;;  %v962_v55 = vlaneseq  ;;  %v4763_v29 = vld [vmem:[%s6790_s7 + $0x20] sm:$0xff]  }
 0x166   : > { %v915_v10 = vmax.f32 %v849_v7, 0.0 }
 0x167   : > { %v913_v11 = vmax.f32 %v841_v9, 0.0 }
 0x168   : > { %v5540_v12 = vpack.c.bf16 %v915_v10, %v914_v4 }
 0x169   : > { %v5542_v60 = vpack.c.bf16 %v913_v11, %v912_v8 }
 0x16b   : > { %4312 = vmatmul.mubr.msk.bf16.gmra.mrb[60].mxu1 %vm1032_vm1, %v5424_v0  ;;  %v5576_v0 = vshrl.u32 %v962_v55, 7 }
 0x16c   : > { %1321 = vmatprep.mubr.bf16.mxu1 %v5048_v32 }
 0x16d   : > { %v964_v1 = vsub.s32 0, %v5576_v0 }
 0x173   : > { %4313 = vmatmul.mubr.msk.bf16.gmra.mrb[64].mxu1 %vm1032_vm1, %v5443_v18  ;;  %v968_v18 = vsub.s32 1, %v5576_v0 }
 0x174   : > { %1331 = vmatprep.mubr.bf16.mxu1 %v5048_v32 }
 0x17b   : > { %4314 = vmatmul.mubr.msk.bf16.gmra.mrb[68].mxu1 %vm1032_vm1, %v5441_v17  ;;  %v960_v17 = vld [vmem:[%s6787_s4] sm:$0x3] }
 0x17c   : > { %1341 = vmatprep.mubr.bf16.mxu1 %v5048_v32 }
 0x183   : > { %4315 = vmatmul.mubr.msk.bf16.gmra.mrb[72].mxu1 %vm1032_vm1, %v5458_v35  ;;  %v5591_v35 = vrot.slane %v960_v17, %v968_v18 }
 0x184   : > { %1351 = vmatprep.mubr.bf16.mxu1 %v5048_v32 }
 0x18b   : > { %4316 = vmatmul.mubr.msk.bf16.gmra.mrb[76].mxu1 %vm1032_vm1, %v5456_v34  ;;  %v5587_v34 = vrot.slane %v960_v17, %v964_v1 }
 0x18c   : > { %1361 = vmatprep.mubr.bf16.mxu1 %v5048_v32 }
 0x193   : > { %4317 = vmatmul.mubr.msk.bf16.gmra.mrb[80].mxu1 %vm1032_vm1, %v5475_v52 }
 0x194   : > { %1371 = vmatprep.mubr.bf16.mxu1 %v5048_v32 }
 0x19b   : > { %4318 = vmatmul.mubr.msk.bf16.gmra.mrb[84].mxu1 %vm1032_vm1, %v5473_v51 }
 0x19c   : > { %1381 = vmatprep.mubr.bf16.mxu1 %v5048_v32 }
 0x1a3   : > { %4319 = vmatmul.mubr.msk.bf16.gmra.mrb[88].mxu1 %vm1032_vm1, %v5486_v6 }
 0x1a4   : > { %1391 = vmatprep.mubr.bf16.mxu1 %v5048_v32 }
 0x1ab   : > { %4320 = vmatmul.mubr.msk.bf16.gmra.mrb[92].mxu1 %vm1032_vm1, %v5484_v5 }
 0x1ac   : > { %1401 = vmatprep.mubr.bf16.mxu1 %v5048_v32 }
 0x1b3   : > { %4321 = vmatmul.mubr.msk.bf16.gmra.mrb[96].mxu1 %vm1032_vm1, %v5507_v24 }
 0x1b4   : > { %1411 = vmatprep.mubr.bf16.mxu1 %v5048_v32 }
 0x1bb   : > { %4322 = vmatmul.mubr.msk.bf16.gmra.mrb[100].mxu1 %vm1032_vm1, %v5505_v23 }
 0x1bc   : > { %1421 = vmatprep.mubr.bf16.mxu1 %v5048_v32 }
 0x1c3   : > { %4323 = vmatmul.mubr.msk.bf16.gmra.mrb[104].mxu1 %vm1032_vm1, %v942_v42 }
 0x1c4   : > { %1431 = vmatprep.mubr.bf16.mxu1 %v5048_v32 }
 0x1c6   : > { %v1163_v51 = vpop.f32.mrb[0].mxu1 }
 0x1c7   : > { %v1164_v52 = vadd.f32 %v1163_v51, %v5587_v34  ;;  %v1165_v5 = vpop.f32.mrb[1].mxu1  ;;  %v4764_v51 = vld [vmem:[%s6790_s7 + $0x28] sm:$0xff]  }
 0x1c8   : > { %v1166_v6 = vadd.f32 %v1165_v5, %v5591_v35  ;;  %v1167_v13 = vpop.f32.mrb[2].mxu1 }
 0x1c9   : > { %v1168_v16 = vadd.f32 %v1167_v13, %v5587_v34  ;;  %v1169_v19 = vpop.f32.mrb[3].mxu1  ;;  %v1482_v21 = vmax.f32 %v1164_v52, 0.0 }
 0x1ca   : > { %v1170_v20 = vadd.f32 %v1169_v19, %v5591_v35  ;;  %v1483_v22 = vmax.f32 %v1166_v6, 0.0 }
 0x1cb   : > { %v1484_v28 = vmax.f32 %v1168_v16, 0.0  ;;  %4324 = vmatmul.mubr.msk.bf16.gmra.mrb[108].mxu1 %vm1032_vm1, %v5517_v41 }
 0x1cc   : > { %v1485_v23 = vmax.f32 %v1170_v20, 0.0  ;;  %1441 = vmatprep.mubr.bf16.mxu1 %v5048_v32 }
 0x1cd   : > { %v5601_v24 = vpack.c.bf16 %v1484_v28, %v1482_v21  ;;  %v4765_v21 = vld [vmem:[%s6790_s7 + $0x30] sm:$0xff]  }
 0x1ce   : > { %v5603_v25 = vpack.c.bf16 %v1485_v23, %v1483_v22  ;;  %v1173_v26 = vpop.f32.mrb[4].mxu1 }
 0x1cf   : > { %v1174_v30 = vadd.f32 %v1173_v26, %v5587_v34  ;;  %v1175_v31 = vpop.f32.mrb[5].mxu1 }
 0x1d0   : > { %v1176_v33 = vadd.f32 %v1175_v31, %v5591_v35  ;;  %v1177_v15 = vpop.f32.mrb[6].mxu1  ;;  %4365 = vmatprep.mubr.msk.bf16.mxu0 %vm1931_vm2, %v5603_v25  ;;  %v4766_v31 = vld [vmem:[%s6790_s7 + $0x38] sm:$0xff]  }
 0x1d1   : > { %v1178_v36 = vadd.f32 %v1177_v15, %v5587_v34  ;;  %v1179_v37 = vpop.f32.mrb[7].mxu1  ;;  %2061 = vmatmul.mubr.bf16.vlgmr.msra.gmra.mrb[64].mxu0 %v5601_v24  ;;  %v1486_v41 = vmax.f32 %v1174_v30, 0.0 }
 0x1d2   : > { %v1180_v38 = vadd.f32 %v1179_v37, %v5591_v35  ;;  %3151 = vmatpush1.bf16.msra.mxu0 %v4758_v27  ;;  %v1487_v43 = vmax.f32 %v1176_v33, 0.0 }
 0x1d3   : > { %v1488_v42 = vmax.f32 %v1178_v36, 0.0  ;;  %4325 = vmatmul.mubr.msk.bf16.gmra.mrb[112].mxu1 %vm1032_vm1, %v5528_v59  ;;  %3152 = vmatprep.subr.bf16.mxu0 %v5048_v32 }
 0x1d4   : > { %v1489_v47 = vmax.f32 %v1180_v38, 0.0  ;;  %1451 = vmatprep.mubr.bf16.mxu1 %v5048_v32 }
 0x1d5   : > { %v5628_v44 = vpack.c.bf16 %v1488_v42, %v1486_v41  ;;  %v4768_v42 = vld [vmem:[%s6790_s7 + $0x40] sm:$0xff]  }
 0x1d6   : > { %v5630_v45 = vpack.c.bf16 %v1489_v47, %v1487_v43  ;;  %v1183_v48 = vpop.f32.mrb[8].mxu1  ;;  %3153 = vmatpush1.bf16.msra.mxu0 %v4760_v39 }
 0x1d7   : > { %v1184_v49 = vadd.f32 %v1183_v48, %v5587_v34  ;;  %v1185_v50 = vpop.f32.mrb[9].mxu1  ;;  %3154 = vmatprep.subr.bf16.mxu0 %v5048_v32 }
 0x1d8   : > { %v1186_v53 = vadd.f32 %v1185_v50, %v5591_v35  ;;  %v1187_v54 = vpop.f32.mrb[10].mxu1  ;;  %4366 = vmatprep.mubr.msk.bf16.mxu0 %vm1931_vm2, %v5630_v45  ;;  %v4769_v50 = vld [vmem:[%s6790_s7 + $0x48] sm:$0xff]  }
 0x1d9   : > { %v1188_v56 = vadd.f32 %v1187_v54, %v5587_v34  ;;  %v1189_v57 = vpop.f32.mrb[11].mxu1  ;;  %2071 = vmatmul.mubr.bf16.gmra.mrb[68].mxu0 %v5628_v44  ;;  %v1490_v46 = vmax.f32 %v1184_v49, 0.0 }
 0x1da   : > { %v1190_v59 = vadd.f32 %v1189_v57, %v5591_v35  ;;  %3155 = vmatpush1.bf16.msra.mxu0 %v4761_v14  ;;  %v1491_v63 = vmax.f32 %v1186_v53, 0.0  ;;  %v4770_v53 = vld [vmem:[%s6790_s7 + $0x88] sm:$0xff]  }
 0x1db   : > { %v1492_v62 = vmax.f32 %v1188_v56, 0.0  ;;  %4326 = vmatmul.mubr.msk.bf16.gmra.mrb[116].mxu1 %vm1032_vm1, %v5526_v58  ;;  %3156 = vmatprep.subr.bf16.mxu0 %v5048_v32 }
 0x1dc   : > { %v1493_v2 = vmax.f32 %v1190_v59, 0.0  ;;  %1461 = vmatprep.mubr.bf16.mxu1 %v5048_v32 }
 0x1dd   : > { %v5650_v3 = vpack.c.bf16 %v1492_v62, %v1490_v46 }
 0x1de   : > { %v5652_v4 = vpack.c.bf16 %v1493_v2, %v1491_v63  ;;  %v1193_v7 = vpop.f32.mrb[12].mxu1  ;;  %3157 = vmatpush1.bf16.msra.mxu0 %v4762_v61 }
 0x1df   : > { %v1194_v8 = vadd.f32 %v1193_v7, %v5587_v34  ;;  %v1195_v9 = vpop.f32.mrb[13].mxu1  ;;  %3158 = vmatprep.subr.bf16.mxu0 %v5048_v32 }
 0x1e0   : > { %v1196_v58 = vadd.f32 %v1195_v9, %v5591_v35  ;;  %v1197_v10 = vpop.f32.mrb[14].mxu1  ;;  %4367 = vmatprep.mubr.msk.bf16.mxu0 %vm1931_vm2, %v5652_v4 }
 0x1e1   : > { %v1198_v11 = vadd.f32 %v1197_v10, %v5587_v34  ;;  %v1199_v55 = vpop.f32.mrb[15].mxu1  ;;  %2081 = vmatmul.mubr.bf16.gmra.mrb[72].mxu0 %v5650_v3  ;;  %v1494_v52 = vmax.f32 %v1194_v8, 0.0 }
 0x1e2   : > { %v1200_v17 = vadd.f32 %v1199_v55, %v5591_v35  ;;  %3159 = vmatpush1.bf16.msra.mxu0 %v4763_v29  ;;  %v1495_v6 = vmax.f32 %v1196_v58, 0.0 }
 0x1e3   : > { %v1496_v5 = vmax.f32 %v1198_v11, 0.0  ;;  %4327 = vmatmul.mubr.msk.bf16.gmra.mrb[120].mxu1 %vm1032_vm1, %v5542_v60  ;;  %3160 = vmatprep.subr.bf16.mxu0 %v5048_v32 }
 0x1e4   : > { %v1497_v13 = vmax.f32 %v1200_v17, 0.0  ;;  %1471 = vmatprep.mubr.bf16.mxu1 %v5048_v32 }
 0x1e5   : > { %v5672_v16 = vpack.c.bf16 %v1496_v5, %v1494_v52 }
 0x1e6   : > { %v5674_v19 = vpack.c.bf16 %v1497_v13, %v1495_v6  ;;  %v1203_v20 = vpop.f32.mrb[16].mxu1  ;;  %3161 = vmatpush1.bf16.msra.mxu0 %v4764_v51 }
 0x1e7   : > { %v1204_v28 = vadd.f32 %v1203_v20, %v5587_v34  ;;  %v1205_v22 = vpop.f32.mrb[17].mxu1  ;;  %3162 = vmatprep.subr.bf16.mxu0 %v5048_v32 }
 0x1e8   : > { %v1206_v60 = vadd.f32 %v1205_v22, %v5591_v35  ;;  %v1207_v23 = vpop.f32.mrb[18].mxu1  ;;  %4368 = vmatprep.mubr.msk.bf16.mxu0 %vm1931_vm2, %v5674_v19 }
 0x1e9   : > { %v1208_v26 = vadd.f32 %v1207_v23, %v5587_v34  ;;  %v1209_v27 = vpop.f32.mrb[19].mxu1  ;;  %2091 = vmatmul.mubr.bf16.gmra.mrb[76].mxu0 %v5672_v16  ;;  %v1498_v33 = vmax.f32 %v1204_v28, 0.0 }
 0x1ea   : > { %v1210_v30 = vadd.f32 %v1209_v27, %v5591_v35  ;;  %3163 = vmatpush1.bf16.msra.mxu0 %v4765_v21  ;;  %v1499_v36 = vmax.f32 %v1206_v60, 0.0 }
 0x1eb   : > { %v1500_v15 = vmax.f32 %v1208_v26, 0.0  ;;  %4328 = vmatmul.mubr.msk.bf16.gmra.mrb[124].mxu1 %vm1032_vm1, %v5540_v12  ;;  %3164 = vmatprep.subr.bf16.mxu0 %v5048_v32 }
 0x1ec   : > { %v1501_v37 = vmax.f32 %v1210_v30, 0.0  ;;  %4397 = vmatprep.mubr.msk.bf16.mxu1 %vm1931_vm2, %v5603_v25  ;;  %v4772_v30 = vld [vmem:[%s6790_s7 + $0x58] sm:$0xff]  }
 0x1ed   : > { %v5695_v38 = vpack.c.bf16 %v1500_v15, %v1498_v33 }
 0x1ee   : > { %v5697_v39 = vpack.c.bf16 %v1501_v37, %v1499_v36  ;;  %v1213_v41 = vpop.f32.mrb[20].mxu1  ;;  %3165 = vmatpush1.bf16.msra.mxu0 %v4766_v31 }
 0x1ef   : > { %v1214_v43 = vadd.f32 %v1213_v41, %v5587_v34  ;;  %v1215_v12 = vpop.f32.mrb[21].mxu1  ;;  %3166 = vmatprep.subr.bf16.mxu0 %v5048_v32 }
 0x1f0   : > { %v1216_v47 = vadd.f32 %v1215_v12, %v5591_v35  ;;  %v1217_v48 = vpop.f32.mrb[22].mxu1  ;;  %4369 = vmatprep.mubr.msk.bf16.mxu0 %vm1931_vm2, %v5697_v39 }
 0x1f1   : > { %v1218_v25 = vadd.f32 %v1217_v48, %v5587_v34  ;;  %v1219_v14 = vpop.f32.mrb[23].mxu1  ;;  %2101 = vmatmul.mubr.bf16.gmra.mrb[80].mxu0 %v5695_v38  ;;  %v1502_v54 = vmax.f32 %v1214_v43, 0.0 }
 0x1f2   : > { %v1220_v49 = vadd.f32 %v1219_v14, %v5591_v35  ;;  %3167 = vmatpush1.bf16.msra.mxu0 %v4768_v42  ;;  %v1503_v57 = vmax.f32 %v1216_v47, 0.0 }
 0x1f3   : > { %v1504_v56 = vmax.f32 %v1218_v25, 0.0  ;;  %2414 = vmatmul.mubr.bf16.vlgmr.msra.gmra.mrb[128].mxu1 %v5601_v24  ;;  %3168 = vmatprep.subr.bf16.mxu0 %v5048_v32  ;;  %v4771_v24 = vld [vmem:[%s6790_s7 + $0x50] sm:$0xff]  }
 0x1f4   : > { %v1505_v59 = vmax.f32 %v1220_v49, 0.0  ;;  %4398 = vmatprep.mubr.msk.bf16.mxu1 %vm1931_vm2, %v5630_v45  ;;  %4602 = vmatpush3.bf16.msra.mxu1 %v5621_v40 }
 0x1f5   : > { %v5721_v61 = vpack.c.bf16 %v1504_v56, %v1502_v54  ;;  %4603 = vmatprep.subr.bf16.mxu1 %v4770_v53  ;;  %v4773_v56 = vld [vmem:[%s6790_s7 + $0x90] sm:$0xff]  }
 0x1f6   : > { %v5723_v46 = vpack.c.bf16 %v1505_v59, %v1503_v57  ;;  %v1223_v62 = vpop.f32.mrb[24].mxu1  ;;  %3169 = vmatpush1.bf16.msra.mxu0 %v4769_v50 }
 0x1f7   : > { %v1224_v63 = vadd.f32 %v1223_v62, %v5587_v34  ;;  %v1225_v2 = vpop.f32.mrb[25].mxu1  ;;  %3170 = vmatprep.subr.bf16.mxu0 %v5048_v32 }
 0x1f8   : > { %v1226_v45 = vadd.f32 %v1225_v2, %v5591_v35  ;;  %v1227_v7 = vpop.f32.mrb[26].mxu1  ;;  %4370 = vmatprep.mubr.msk.bf16.mxu0 %vm1931_vm2, %v5723_v46  ;;  %4604 = vmatpush3.bf16.msra.mxu1 %v4770_v53 }
 0x1f9   : > { %v1228_v40 = vadd.f32 %v1227_v7, %v5587_v34  ;;  %v1229_v29 = vpop.f32.mrb[27].mxu1  ;;  %2111 = vmatmul.mubr.bf16.gmra.mrb[84].mxu0 %v5721_v61  ;;  %v1506_v9 = vmax.f32 %v1224_v63, 0.0  ;;  %4605 = vmatprep.subr.bf16.mxu1 %v4773_v56  ;;  %v4774_v7 = vld [vmem:[%s6790_s7 + $0x60] sm:$0xff]  }
 0x1fa   : > { %v1230_v8 = vadd.f32 %v1229_v29, %v5591_v35  ;;  %3171 = vmatpush1.bf16.msra.mxu0 %v4771_v24  ;;  %v1507_v10 = vmax.f32 %v1226_v45, 0.0 }
 0x1fb   : > { %v1508_v58 = vmax.f32 %v1228_v40, 0.0  ;;  %2422 = vmatmul.mubr.bf16.gmra.mrb[132].mxu1 %v5628_v44  ;;  %3172 = vmatprep.subr.bf16.mxu0 %v5048_v32 }
 0x1fc   : > { %v1509_v11 = vmax.f32 %v1230_v8, 0.0  ;;  %4399 = vmatprep.mubr.msk.bf16.mxu1 %vm1931_vm2, %v5652_v4  ;;  %4606 = vmatpush3.bf16.msra.mxu1 %v4773_v56 }
 0x1fd   : > { %v5740_v55 = vpack.c.bf16 %v1508_v58, %v1506_v9 }
 0x1fe   : > { %v5742_v17 = vpack.c.bf16 %v1509_v11, %v1507_v10  ;;  %v1233_v51 = vpop.f32.mrb[28].mxu1  ;;  %3173 = vmatpush1.bf16.msra.mxu0 %v4772_v30 }
 0x1ff   : > { %v1234_v52 = vadd.f32 %v1233_v51, %v5587_v34  ;;  %v1235_v5 = vpop.f32.mrb[29].mxu1  ;;  %3174 = vmatprep.subr.bf16.mxu0 %v5048_v32 }
 0x200   : > { %v1236_v6 = vadd.f32 %v1235_v5, %v5591_v35  ;;  %v1237_v13 = vpop.f32.mrb[30].mxu1  ;;  %4371 = vmatprep.mubr.msk.bf16.mxu0 %vm1931_vm2, %v5742_v17 }
 0x201   : > { %v1238_v44 = vadd.f32 %v1237_v13, %v5587_v34  ;;  %v1239_v20 = vpop.f32.mrb[31].mxu1  ;;  %2121 = vmatmul.mubr.bf16.gmra.mrb[88].mxu0 %v5740_v55  ;;  %v1510_v21 = vmax.f32 %v1234_v52, 0.0 }
 0x202   : > { %v1240_v4 = vadd.f32 %v1239_v20, %v5591_v35  ;;  %v1511_v22 = vmax.f32 %v1236_v6, 0.0  ;;  %3175 = vmatpush1.bf16.msra.mxu0 %v4774_v7  ;;  %v4776_v7 = vld [vmem:[%s6790_s7 + $0x98] sm:$0xff]  }
 0x203   : > { %v1512_v28 = vmax.f32 %v1238_v44, 0.0  ;;  %2430 = vmatmul.mubr.bf16.gmra.mrb[136].mxu1 %v5650_v3  ;;  %3176 = vmatprep.subr.bf16.mxu0 %v5048_v32 }
 0x204   : > { %v1513_v60 = vmax.f32 %v1240_v4, 0.0  ;;  %4400 = vmatprep.mubr.msk.bf16.mxu1 %vm1931_vm2, %v5674_v19  ;;  %4607 = vmatprep.subr.bf16.mxu1 %v4776_v7 }
 0x205   : > { %v5754_v23 = vpack.c.bf16 %v1512_v28, %v1510_v21  ;;  %4608 = vmatpush3.bf16.msra.mxu1 %v4776_v7 }
 0x206   : > { %v5756_v26 = vpack.c.bf16 %v1513_v60, %v1511_v22  ;;  %v1243_v27 = vpop.f32.mrb[32].mxu1 }
 0x207   : > { %v1244_v31 = vadd.f32 %v1243_v27, %v5587_v34  ;;  %v1245_v33 = vpop.f32.mrb[33].mxu1 }
 0x208   : > { %v1246_v15 = vadd.f32 %v1245_v33, %v5591_v35  ;;  %v1247_v3 = vpop.f32.mrb[34].mxu1  ;;  %4372 = vmatprep.mubr.msk.bf16.mxu0 %vm1931_vm2, %v5756_v26 }
 0x209   : > { %v1248_v19 = vadd.f32 %v1247_v3, %v5587_v34  ;;  %v1249_v36 = vpop.f32.mrb[35].mxu1  ;;  %2131 = vmatmul.mubr.bf16.gmra.mrb[92].mxu0 %v5754_v23  ;;  %v1514_v41 = vmax.f32 %v1244_v31, 0.0  ;;  %v4775_v3 = vld [vmem:[%s6790_s7 + $0x68] sm:$0xff]  }
 0x20a   : > { %v1250_v37 = vadd.f32 %v1249_v36, %v5591_v35  ;;  %v1515_v43 = vmax.f32 %v1246_v15, 0.0  ;;  %3177 = vmatpush1.bf16.msra.mxu0 %v4775_v3 }
 0x20b   : > { %v1516_v42 = vmax.f32 %v1248_v19, 0.0  ;;  %2438 = vmatmul.mubr.bf16.gmra.mrb[140].mxu1 %v5672_v16  ;;  %3178 = vmatprep.subr.bf16.mxu0 %v5048_v32 }
 0x20c   : > { %v1517_v12 = vmax.f32 %v1250_v37, 0.0  ;;  %4401 = vmatprep.mubr.msk.bf16.mxu1 %vm1931_vm2, %v5697_v39 }
 0x20d   : > { %v5772_v47 = vpack.c.bf16 %v1516_v42, %v1514_v41 }
 0x20e   : > { %v5774_v48 = vpack.c.bf16 %v1517_v12, %v1515_v43  ;;  %v1253_v25 = vpop.f32.mrb[36].mxu1 }
 0x20f   : > { %v1254_v14 = vadd.f32 %v1253_v25, %v5587_v34  ;;  %v1255_v49 = vpop.f32.mrb[37].mxu1 }
 0x210   : > { %v1256_v50 = vadd.f32 %v1255_v49, %v5591_v35  ;;  %v1257_v53 = vpop.f32.mrb[38].mxu1  ;;  %4373 = vmatprep.mubr.msk.bf16.mxu0 %vm1931_vm2, %v5774_v48 }
 0x211   : > { %v1258_v16 = vadd.f32 %v1257_v53, %v5587_v34  ;;  %v1259_v54 = vpop.f32.mrb[39].mxu1  ;;  %2141 = vmatmul.mubr.bf16.gmra.mrb[96].mxu0 %v5772_v47  ;;  %v1518_v57 = vmax.f32 %v1254_v14, 0.0 }
 0x212   : > { %v1260_v39 = vadd.f32 %v1259_v54, %v5591_v35  ;;  %v1519_v62 = vmax.f32 %v1256_v50, 0.0 }
 0x213   : > { %v1520_v59 = vmax.f32 %v1258_v16, 0.0  ;;  %2446 = vmatmul.mubr.bf16.gmra.mrb[144].mxu1 %v5695_v38 }
 0x214   : > { %v1521_v24 = vmax.f32 %v1260_v39, 0.0  ;;  %4402 = vmatprep.mubr.msk.bf16.mxu1 %vm1931_vm2, %v5723_v46 }
 0x215   : > { %v5789_v63 = vpack.c.bf16 %v1520_v59, %v1518_v57 }
 0x216   : > { %v5791_v2 = vpack.c.bf16 %v1521_v24, %v1519_v62  ;;  %v1263_v45 = vpop.f32.mrb[40].mxu1 }
 0x217   : > { %v1264_v40 = vadd.f32 %v1263_v45, %v5587_v34  ;;  %v1265_v29 = vpop.f32.mrb[41].mxu1 }
 0x218   : > { %v1266_v38 = vadd.f32 %v1265_v29, %v5591_v35  ;;  %v1267_v8 = vpop.f32.mrb[42].mxu1  ;;  %4374 = vmatprep.mubr.msk.bf16.mxu0 %vm1931_vm2, %v5791_v2 }
 0x219   : > { %v1268_v46 = vadd.f32 %v1267_v8, %v5587_v34  ;;  %v1269_v9 = vpop.f32.mrb[43].mxu1  ;;  %2151 = vmatmul.mubr.bf16.gmra.mrb[100].mxu0 %v5789_v63  ;;  %v1522_v10 = vmax.f32 %v1264_v40, 0.0  ;;  %v4777_v8 = vld [vmem:[%s6790_s7 + $0x70] sm:$0xff]  }
 0x21a   : > { %v1270_v58 = vadd.f32 %v1269_v9, %v5591_v35  ;;  %v1523_v51 = vmax.f32 %v1266_v38, 0.0  ;;  %3179 = vmatpush1.bf16.msra.mxu0 %v4777_v8 }
 0x21b   : > { %v1524_v11 = vmax.f32 %v1268_v46, 0.0  ;;  %2454 = vmatmul.mubr.bf16.gmra.mrb[148].mxu1 %v5721_v61  ;;  %3180 = vmatprep.subr.bf16.mxu0 %v5048_v32 }
 0x21c   : > { %v1525_v52 = vmax.f32 %v1270_v58, 0.0  ;;  %4403 = vmatprep.mubr.msk.bf16.mxu1 %vm1931_vm2, %v5742_v17 }
 0x21d   : > { %v5807_v5 = vpack.c.bf16 %v1524_v11, %v1522_v10 }
 0x21e   : > { %v5809_v6 = vpack.c.bf16 %v1525_v52, %v1523_v51  ;;  %v1273_v13 = vpop.f32.mrb[44].mxu1 }
 0x21f   : > { %v1274_v44 = vadd.f32 %v1273_v13, %v5587_v34  ;;  %v1275_v20 = vpop.f32.mrb[45].mxu1 }
 0x220   : > { %v1276_v4 = vadd.f32 %v1275_v20, %v5591_v35  ;;  %v1277_v21 = vpop.f32.mrb[46].mxu1  ;;  %4375 = vmatprep.mubr.msk.bf16.mxu0 %vm1931_vm2, %v5809_v6 }
 0x221   : > { %v1278_v61 = vadd.f32 %v1277_v21, %v5587_v34  ;;  %v1279_v28 = vpop.f32.mrb[47].mxu1  ;;  %2161 = vmatmul.mubr.bf16.gmra.mrb[104].mxu0 %v5807_v5  ;;  %v1526_v22 = vmax.f32 %v1274_v44, 0.0 }
 0x222   : > { %v1280_v17 = vadd.f32 %v1279_v28, %v5591_v35  ;;  %v1527_v27 = vmax.f32 %v1276_v4, 0.0 }
 0x223   : > { %v1528_v60 = vmax.f32 %v1278_v61, 0.0  ;;  %2462 = vmatmul.mubr.bf16.gmra.mrb[152].mxu1 %v5740_v55 }
 0x224   : > { %v1529_v30 = vmax.f32 %v1280_v17, 0.0  ;;  %4404 = vmatprep.mubr.msk.bf16.mxu1 %vm1931_vm2, %v5756_v26 }
 0x225   : > { %v5821_v31 = vpack.c.bf16 %v1528_v60, %v1526_v22 }
 0x226   : > { %v5823_v33 = vpack.c.bf16 %v1529_v30, %v1527_v27  ;;  %v1283_v15 = vpop.f32.mrb[48].mxu1 }
 0x227   : > { %v1284_v19 = vadd.f32 %v1283_v15, %v5587_v34  ;;  %v1285_v36 = vpop.f32.mrb[49].mxu1 }
 0x228   : > { %v1286_v37 = vadd.f32 %v1285_v36, %v5591_v35  ;;  %v1287_v55 = vpop.f32.mrb[50].mxu1  ;;  %4376 = vmatprep.mubr.msk.bf16.mxu0 %vm1931_vm2, %v5823_v33 }
 0x229   : > { %v1288_v26 = vadd.f32 %v1287_v55, %v5587_v34  ;;  %v1289_v41 = vpop.f32.mrb[51].mxu1  ;;  %2171 = vmatmul.mubr.bf16.gmra.mrb[108].mxu0 %v5821_v31  ;;  %v1530_v43 = vmax.f32 %v1284_v19, 0.0 }
 0x22a   : > { %v1290_v42 = vadd.f32 %v1289_v41, %v5591_v35  ;;  %v1531_v25 = vmax.f32 %v1286_v37, 0.0  ;;  %v4778_v37 = vld [vmem:[%s6790_s7 + $0x78] sm:$0xff]  }
 0x22b   : > { %v1532_v12 = vmax.f32 %v1288_v26, 0.0  ;;  %2470 = vmatmul.mubr.bf16.gmra.mrb[156].mxu1 %v5754_v23  ;;  %3181 = vmatpush1.bf16.msra.mxu0 %v4778_v37  ;;  %v4780_v37 = vld [vmem:[%s6790_s7 + $0xa8] sm:$0xff]  }
 0x22c   : > { %v1533_v14 = vmax.f32 %v1290_v42, 0.0  ;;  %4405 = vmatprep.mubr.msk.bf16.mxu1 %vm1931_vm2, %v5774_v48 }
 0x22d   : > { %v5839_v49 = vpack.c.bf16 %v1532_v12, %v1530_v43 }
 0x22e   : > { %v5841_v50 = vpack.c.bf16 %v1533_v14, %v1531_v25  ;;  %v1293_v53 = vpop.f32.mrb[52].mxu1 }
 0x22f   : > { %v1294_v16 = vadd.f32 %v1293_v53, %v5587_v34  ;;  %v1295_v54 = vpop.f32.mrb[53].mxu1 }
 0x230   : > { %v1296_v39 = vadd.f32 %v1295_v54, %v5591_v35  ;;  %v1297_v56 = vpop.f32.mrb[54].mxu1  ;;  %4377 = vmatprep.mubr.msk.bf16.mxu0 %vm1931_vm2, %v5841_v50 }
 0x231   : > { %v1298_v23 = vadd.f32 %v1297_v56, %v5587_v34  ;;  %v1299_v57 = vpop.f32.mrb[55].mxu1  ;;  %2181 = vmatmul.mubr.bf16.gmra.mrb[112].mxu0 %v5839_v49  ;;  %v1534_v59 = vmax.f32 %v1294_v16, 0.0 }
 0x232   : > { %v1300_v48 = vadd.f32 %v1299_v57, %v5591_v35  ;;  %v1535_v24 = vmax.f32 %v1296_v39, 0.0 }
 0x233   : > { %v1536_v62 = vmax.f32 %v1298_v23, 0.0  ;;  %2478 = vmatmul.mubr.bf16.gmra.mrb[160].mxu1 %v5772_v47 }
 0x234   : > { %v1537_v45 = vmax.f32 %v1300_v48, 0.0  ;;  %4406 = vmatprep.mubr.msk.bf16.mxu1 %vm1931_vm2, %v5791_v2 }
 0x235   : > { %v5856_v40 = vpack.c.bf16 %v1536_v62, %v1534_v59 }
 0x236   : > { %v5858_v29 = vpack.c.bf16 %v1537_v45, %v1535_v24  ;;  %v1303_v38 = vpop.f32.mrb[56].mxu1 }
 0x237   : > { %v1304_v47 = vadd.f32 %v1303_v38, %v5587_v34  ;;  %v1305_v46 = vpop.f32.mrb[57].mxu1  ;;  %v4779_v38 = vld [vmem:[%s6790_s7 + $0xa0] sm:$0xff]  }
 0x238   : > { %v1306_v2 = vadd.f32 %v1305_v46, %v5591_v35  ;;  %v1307_v9 = vpop.f32.mrb[58].mxu1  ;;  %4378 = vmatprep.mubr.msk.bf16.mxu0 %vm1931_vm2, %v5858_v29  ;;  %4609 = vmatprep.subr.bf16.mxu1 %v4779_v38 }
 0x239   : > { %v1308_v58 = vadd.f32 %v1307_v9, %v5587_v34  ;;  %v1309_v10 = vpop.f32.mrb[59].mxu1  ;;  %2191 = vmatmul.mubr.bf16.gmra.mrb[116].mxu0 %v5856_v40  ;;  %v1538_v51 = vmax.f32 %v1304_v47, 0.0  ;;  %4610 = vmatpush3.bf16.msra.mxu1 %v4779_v38 }
 0x23a   : > { %v1310_v11 = vadd.f32 %v1309_v10, %v5591_v35  ;;  %v1539_v13 = vmax.f32 %v1306_v2, 0.0  ;;  %4611 = vmatprep.subr.bf16.mxu1 %v4780_v37 }
 0x23b   : > { %v1540_v52 = vmax.f32 %v1308_v58, 0.0  ;;  %2486 = vmatmul.mubr.bf16.gmra.mrb[164].mxu1 %v5789_v63 }
 0x23c   : > { %v1541_v44 = vmax.f32 %v1310_v11, 0.0  ;;  %4407 = vmatprep.mubr.msk.bf16.mxu1 %vm1931_vm2, %v5809_v6 }
 0x23d   : > { %v5874_v20 = vpack.c.bf16 %v1540_v52, %v1538_v51  ;;  %4612 = vmatpush3.bf16.msra.mxu1 %v4780_v37 }
 0x23e   : > { %v5876_v4 = vpack.c.bf16 %v1541_v44, %v1539_v13  ;;  %v1313_v21 = vpop.f32.mrb[60].mxu1 }
 0x23f   : > { %v1314_v61 = vadd.f32 %v1313_v21, %v5587_v34  ;;  %v1315_v28 = vpop.f32.mrb[61].mxu1 }
 0x240   : > { %v1316_v32 = vadd.f32 %v1315_v28, %v5591_v35  ;;  %v1317_v17 = vpop.f32.mrb[62].mxu1  ;;  %4379 = vmatprep.mubr.msk.bf16.mxu0 %vm1931_vm2, %v5876_v4 }
 0x241   : > { %v1318_v63 = vadd.f32 %v1317_v17, %v5587_v34  ;;  %v1319_v22 = vpop.f32.mrb[63].mxu1  ;;  %2201 = vmatmul.mubr.bf16.gmra.mrb[120].mxu0 %v5874_v20  ;;  %v1542_v60 = vmax.f32 %v1314_v61, 0.0 }
 0x242   : > { %v1320_v6 = vadd.f32 %v1319_v22, %v5591_v35  ;;  %v1543_v30 = vmax.f32 %v1316_v32, 0.0 }
 0x243   : > { %v1544_v27 = vmax.f32 %v1318_v63, 0.0  ;;  %2494 = vmatmul.mubr.bf16.gmra.mrb[168].mxu1 %v5807_v5 }
 0x244   : > { %v1545_v15 = vmax.f32 %v1320_v6, 0.0  ;;  %4408 = vmatprep.mubr.msk.bf16.mxu1 %vm1931_vm2, %v5823_v33 }
 0x245   : > { %v5888_v3 = vpack.c.bf16 %v1544_v27, %v1542_v60 }
 0x246   : > { %v5890_v19 = vpack.c.bf16 %v1545_v15, %v1543_v30  ;;  %v1323_v36 = vpop.f32.mrb[64].mxu1 }
 0x247   : > { %v1324_v55 = vadd.f32 %v1323_v36, %v5587_v34  ;;  %v1325_v26 = vpop.f32.mrb[65].mxu1 }
 0x248   : > { %v1326_v41 = vadd.f32 %v1325_v26, %v5591_v35  ;;  %v1327_v5 = vpop.f32.mrb[66].mxu1  ;;  %4380 = vmatprep.mubr.msk.bf16.mxu0 %vm1931_vm2, %v5890_v19 }
 0x249   : > { %v1328_v33 = vadd.f32 %v1327_v5, %v5587_v34  ;;  %v1329_v42 = vpop.f32.mrb[67].mxu1  ;;  %2211 = vmatmul.mubr.bf16.gmra.mrb[124].mxu0 %v5888_v3  ;;  %v1546_v12 = vmax.f32 %v1324_v55, 0.0 }
 0x24a   : > { %v1330_v43 = vadd.f32 %v1329_v42, %v5591_v35  ;;  %v1547_v14 = vmax.f32 %v1326_v41, 0.0 }
 0x24b   : > { %v1548_v25 = vmax.f32 %v1328_v33, 0.0  ;;  %2502 = vmatmul.mubr.bf16.gmra.mrb[172].mxu1 %v5821_v31 }
 0x24c   : > { %v1549_v53 = vmax.f32 %v1330_v43, 0.0  ;;  %4409 = vmatprep.mubr.msk.bf16.mxu1 %vm1931_vm2, %v5841_v50  ;;  %v4781_v43 = vld [vmem:[%s6790_s7 + $0xb0] sm:$0xff]  }
 0x24d   : > { %v5905_v16 = vpack.c.bf16 %v1548_v25, %v1546_v12  ;;  %4613 = vmatprep.subr.bf16.mxu1 %v4781_v43 }
 0x24e   : > { %v5907_v54 = vpack.c.bf16 %v1549_v53, %v1547_v14  ;;  %v1333_v39 = vpop.f32.mrb[68].mxu1  ;;  %4614 = vmatpush3.bf16.msra.mxu1 %v4781_v43 }
 0x24f   : > { %v1334_v56 = vadd.f32 %v1333_v39, %v5587_v34  ;;  %v1335_v23 = vpop.f32.mrb[69].mxu1 }
 0x250   : > { %v1336_v57 = vadd.f32 %v1335_v23, %v5591_v35  ;;  %v1337_v48 = vpop.f32.mrb[70].mxu1  ;;  %4381 = vmatprep.mubr.msk.bf16.mxu0 %vm1931_vm2, %v5907_v54  ;;  %v4782_v23 = vld [vmem:[%s6790_s7 + $0xb8] sm:$0xff]  }
 0x251   : > { %v1338_v31 = vadd.f32 %v1337_v48, %v5587_v34  ;;  %v1339_v59 = vpop.f32.mrb[71].mxu1  ;;  %2221 = vmatmul.mubr.bf16.gmra.mrb[128].mxu0 %v5905_v16  ;;  %v1550_v62 = vmax.f32 %v1334_v56, 0.0  ;;  %4615 = vmatprep.subr.bf16.mxu1 %v4782_v23 }
 0x252   : > { %v1340_v50 = vadd.f32 %v1339_v59, %v5591_v35  ;;  %v1551_v45 = vmax.f32 %v1336_v57, 0.0  ;;  %4616 = vmatpush3.bf16.msra.mxu1 %v4782_v23 }
 0x253   : > { %v1552_v24 = vmax.f32 %v1338_v31, 0.0  ;;  %2510 = vmatmul.mubr.bf16.gmra.mrb[176].mxu1 %v5839_v49 }
 0x254   : > { %v1553_v7 = vmax.f32 %v1340_v50, 0.0  ;;  %4410 = vmatprep.mubr.msk.bf16.mxu1 %vm1931_vm2, %v5858_v29 }
 0x255   : > { %v5922_v8 = vpack.c.bf16 %v1552_v24, %v1550_v62 }
 0x256   : > { %v5924_v47 = vpack.c.bf16 %v1553_v7, %v1551_v45  ;;  %v1343_v46 = vpop.f32.mrb[72].mxu1 }
 0x257   : > { %v1344_v2 = vadd.f32 %v1343_v46, %v5587_v34  ;;  %v1345_v9 = vpop.f32.mrb[73].mxu1 }
 0x258   : > { %v1346_v49 = vadd.f32 %v1345_v9, %v5591_v35  ;;  %v1347_v58 = vpop.f32.mrb[74].mxu1  ;;  %4382 = vmatprep.mubr.msk.bf16.mxu0 %vm1931_vm2, %v5924_v47 }
 0x259   : > { %v1348_v29 = vadd.f32 %v1347_v58, %v5587_v34  ;;  %v1349_v10 = vpop.f32.mrb[75].mxu1  ;;  %2231 = vmatmul.mubr.bf16.gmra.mrb[132].mxu0 %v5922_v8  ;;  %v1554_v51 = vmax.f32 %v1344_v2, 0.0 }
 0x25a   : > { %v1350_v11 = vadd.f32 %v1349_v10, %v5591_v35  ;;  %v1555_v13 = vmax.f32 %v1346_v49, 0.0 }
 0x25b   : > { %v1556_v52 = vmax.f32 %v1348_v29, 0.0  ;;  %2518 = vmatmul.mubr.bf16.gmra.mrb[180].mxu1 %v5856_v40 }
 0x25c   : > { %v1557_v44 = vmax.f32 %v1350_v11, 0.0  ;;  %4411 = vmatprep.mubr.msk.bf16.mxu1 %vm1931_vm2, %v5876_v4 }
 0x25d   : > { %v5936_v21 = vpack.c.bf16 %v1556_v52, %v1554_v51 }
 0x25e   : > { %v5938_v61 = vpack.c.bf16 %v1557_v44, %v1555_v13  ;;  %v1353_v28 = vpop.f32.mrb[76].mxu1 }
 0x25f   : > { %v1354_v32 = vadd.f32 %v1353_v28, %v5587_v34  ;;  %v1355_v17 = vpop.f32.mrb[77].mxu1 }
 0x260   : > { %v1356_v63 = vadd.f32 %v1355_v17, %v5591_v35  ;;  %v1357_v22 = vpop.f32.mrb[78].mxu1  ;;  %4383 = vmatprep.mubr.msk.bf16.mxu0 %vm1931_vm2, %v5938_v61 }
 0x261   : > { %v1358_v40 = vadd.f32 %v1357_v22, %v5587_v34  ;;  %v1359_v6 = vpop.f32.mrb[79].mxu1  ;;  %2241 = vmatmul.mubr.bf16.gmra.mrb[136].mxu0 %v5936_v21  ;;  %v1558_v60 = vmax.f32 %v1354_v32, 0.0 }
 0x262   : > { %v1360_v4 = vadd.f32 %v1359_v6, %v5591_v35  ;;  %v1559_v30 = vmax.f32 %v1356_v63, 0.0 }
 0x263   : > { %v1560_v27 = vmax.f32 %v1358_v40, 0.0  ;;  %2526 = vmatmul.mubr.bf16.gmra.mrb[184].mxu1 %v5874_v20 }
 0x264   : > { %v1561_v15 = vmax.f32 %v1360_v4, 0.0  ;;  %4412 = vmatprep.mubr.msk.bf16.mxu1 %vm1931_vm2, %v5890_v19 }
 0x265   : > { %v5950_v36 = vpack.c.bf16 %v1560_v27, %v1558_v60 }
 0x266   : > { %v5955_v55 = vpack.c.bf16 %v1561_v15, %v1559_v30  ;;  %v1363_v26 = vpop.f32.mrb[80].mxu1 }
 0x267   : > { %v1364_v41 = vadd.f32 %v1363_v26, %v5587_v34  ;;  %v1365_v5 = vpop.f32.mrb[81].mxu1 }
 0x268   : > { %v1366_v20 = vadd.f32 %v1365_v5, %v5591_v35  ;;  %v1367_v33 = vpop.f32.mrb[82].mxu1  ;;  %4384 = vmatprep.mubr.msk.bf16.mxu0 %vm1931_vm2, %v5955_v55 }
 0x269   : > { %v1368_v19 = vadd.f32 %v1367_v33, %v5587_v34  ;;  %v1369_v42 = vpop.f32.mrb[83].mxu1  ;;  %2251 = vmatmul.mubr.bf16.gmra.mrb[140].mxu0 %v5950_v36  ;;  %v1562_v25 = vmax.f32 %v1364_v41, 0.0 }
 0x26a   : > { %v1370_v12 = vadd.f32 %v1369_v42, %v5591_v35  ;;  %v1563_v53 = vmax.f32 %v1366_v20, 0.0 }
 0x26b   : > { %v1564_v14 = vmax.f32 %v1368_v19, 0.0  ;;  %2534 = vmatmul.mubr.bf16.gmra.mrb[188].mxu1 %v5888_v3 }
 0x26c   : > { %v1565_v39 = vmax.f32 %v1370_v12, 0.0  ;;  %4413 = vmatprep.mubr.msk.bf16.mxu1 %vm1931_vm2, %v5907_v54 }
 0x26d   : > { %v5970_v56 = vpack.c.bf16 %v1564_v14, %v1562_v25 }
 0x26e   : > { %v5975_v57 = vpack.c.bf16 %v1565_v39, %v1563_v53  ;;  %v1373_v48 = vpop.f32.mrb[84].mxu1 }
 0x26f   : > { %v1374_v31 = vadd.f32 %v1373_v48, %v5587_v34  ;;  %v1375_v59 = vpop.f32.mrb[85].mxu1 }
 0x270   : > { %v1376_v3 = vadd.f32 %v1375_v59, %v5591_v35  ;;  %v1377_v50 = vpop.f32.mrb[86].mxu1  ;;  %4385 = vmatprep.mubr.msk.bf16.mxu0 %vm1931_vm2, %v5975_v57 }
 0x271   : > { %v1378_v54 = vadd.f32 %v1377_v50, %v5587_v34  ;;  %v1379_v62 = vpop.f32.mrb[87].mxu1  ;;  %2261 = vmatmul.mubr.bf16.gmra.mrb[144].mxu0 %v5970_v56  ;;  %v1566_v45 = vmax.f32 %v1374_v31, 0.0 }
 0x272   : > { %v1380_v24 = vadd.f32 %v1379_v62, %v5591_v35  ;;  %v1567_v38 = vmax.f32 %v1376_v3, 0.0 }
 0x273   : > { %v1568_v7 = vmax.f32 %v1378_v54, 0.0  ;;  %2542 = vmatmul.mubr.bf16.gmra.mrb[192].mxu1 %v5905_v16 }
 0x274   : > { %v1569_v46 = vmax.f32 %v1380_v24, 0.0  ;;  %4414 = vmatprep.mubr.msk.bf16.mxu1 %vm1931_vm2, %v5924_v47 }
 0x275   : > { %v5987_v2 = vpack.c.bf16 %v1568_v7, %v1566_v45 }
 0x276   : > { %v5989_v9 = vpack.c.bf16 %v1569_v46, %v1567_v38  ;;  %v1383_v49 = vpop.f32.mrb[88].mxu1 }
 0x277   : > { %v1384_v58 = vadd.f32 %v1383_v49, %v5587_v34  ;;  %v1385_v29 = vpop.f32.mrb[89].mxu1 }
 0x278   : > { %v1386_v10 = vadd.f32 %v1385_v29, %v5591_v35  ;;  %v1387_v11 = vpop.f32.mrb[90].mxu1  ;;  %4386 = vmatprep.mubr.msk.bf16.mxu0 %vm1931_vm2, %v5989_v9 }
 0x279   : > { %v1388_v16 = vadd.f32 %v1387_v11, %v5587_v34  ;;  %v1389_v51 = vpop.f32.mrb[91].mxu1  ;;  %2271 = vmatmul.mubr.bf16.gmra.mrb[148].mxu0 %v5987_v2  ;;  %v1570_v52 = vmax.f32 %v1384_v58, 0.0 }
 0x27a   : > { %v1390_v47 = vadd.f32 %v1389_v51, %v5591_v35  ;;  %v1571_v44 = vmax.f32 %v1386_v10, 0.0 }
 0x27b   : > { %v1572_v13 = vmax.f32 %v1388_v16, 0.0  ;;  %2550 = vmatmul.mubr.bf16.gmra.mrb[196].mxu1 %v5922_v8 }
 0x27c   : > { %v1573_v28 = vmax.f32 %v1390_v47, 0.0  ;;  %4415 = vmatprep.mubr.msk.bf16.mxu1 %vm1931_vm2, %v5938_v61 }
 0x27d   : > { %v6001_v32 = vpack.c.bf16 %v1572_v13, %v1570_v52 }
 0x27e   : > { %v6003_v17 = vpack.c.bf16 %v1573_v28, %v1571_v44  ;;  %v1393_v63 = vpop.f32.mrb[92].mxu1 }
 0x27f   : > { %v1394_v22 = vadd.f32 %v1393_v63, %v5587_v34  ;;  %v1395_v40 = vpop.f32.mrb[93].mxu1 }
 0x280   : > { %v1396_v6 = vadd.f32 %v1395_v40, %v5591_v35  ;;  %v1397_v4 = vpop.f32.mrb[94].mxu1  ;;  %4387 = vmatprep.mubr.msk.bf16.mxu0 %vm1931_vm2, %v6003_v17 }
 0x281   : > { %v1398_v8 = vadd.f32 %v1397_v4, %v5587_v34  ;;  %v1399_v60 = vpop.f32.mrb[95].mxu1  ;;  %2281 = vmatmul.mubr.bf16.gmra.mrb[152].mxu0 %v6001_v32  ;;  %v1574_v27 = vmax.f32 %v1394_v22, 0.0  ;;  %v6064_v22 = vld [vmem:[%s6789_s6] sm:$0x7] }
 0x282   : > { %v1400_v61 = vadd.f32 %v1399_v60, %v5591_v35  ;;  %v1575_v15 = vmax.f32 %v1396_v6, 0.0  ;;  %v6075_v60 = vrot.slane %v6064_v22, %v964_v1 }
 0x283   : > { %v1576_v30 = vmax.f32 %v1398_v8, 0.0  ;;  %2558 = vmatmul.mubr.bf16.gmra.mrb[200].mxu1 %v5936_v21 }
 0x284   : > { %v1577_v37 = vmax.f32 %v1400_v61, 0.0  ;;  %4416 = vmatprep.mubr.msk.bf16.mxu1 %vm1931_vm2, %v5955_v55 }
 0x285   : > { %v6015_v26 = vpack.c.bf16 %v1576_v30, %v1574_v27  ;;  %v6081_v27 = vrot.slane %v6064_v22, %v968_v18 }
 0x286   : > { %v6017_v41 = vpack.c.bf16 %v1577_v37, %v1575_v15  ;;  %v1403_v5 = vpop.f32.mrb[96].mxu1 }
 0x287   : > { %v1404_v20 = vadd.f32 %v1403_v5, %v5587_v34  ;;  %v1405_v33 = vpop.f32.mrb[97].mxu1 }
 0x288   : > { %v1406_v19 = vadd.f32 %v1405_v33, %v5591_v35  ;;  %v1407_v42 = vpop.f32.mrb[98].mxu1  ;;  %4388 = vmatprep.mubr.msk.bf16.mxu0 %vm1931_vm2, %v6017_v41 }
 0x289   : > { %v1408_v21 = vadd.f32 %v1407_v42, %v5587_v34  ;;  %v1409_v43 = vpop.f32.mrb[99].mxu1  ;;  %2291 = vmatmul.mubr.bf16.gmra.mrb[156].mxu0 %v6015_v26  ;;  %v1578_v12 = vmax.f32 %v1404_v20, 0.0 }
 0x28a   : > { %v1410_v55 = vadd.f32 %v1409_v43, %v5591_v35  ;;  %v1579_v14 = vmax.f32 %v1406_v19, 0.0 }
 0x28b   : > { %v1580_v25 = vmax.f32 %v1408_v21, 0.0  ;;  %2566 = vmatmul.mubr.bf16.gmra.mrb[204].mxu1 %v5950_v36 }
 0x28c   : > { %v1581_v53 = vmax.f32 %v1410_v55, 0.0  ;;  %4417 = vmatprep.mubr.msk.bf16.mxu1 %vm1931_vm2, %v5975_v57 }
 0x28d   : > { %v6029_v39 = vpack.c.bf16 %v1580_v25, %v1578_v12 }
 0x28e   : > { %v6031_v23 = vpack.c.bf16 %v1581_v53, %v1579_v14  ;;  %v1413_v48 = vpop.f32.mrb[100].mxu1 }
 0x28f   : > { %v1414_v31 = vadd.f32 %v1413_v48, %v5587_v34  ;;  %v1415_v59 = vpop.f32.mrb[101].mxu1 }
 0x290   : > { %v1416_v3 = vadd.f32 %v1415_v59, %v5591_v35  ;;  %v1417_v50 = vpop.f32.mrb[102].mxu1  ;;  %4389 = vmatprep.mubr.msk.bf16.mxu0 %vm1931_vm2, %v6031_v23 }
 0x291   : > { %v1418_v36 = vadd.f32 %v1417_v50, %v5587_v34  ;;  %v1419_v54 = vpop.f32.mrb[103].mxu1  ;;  %2301 = vmatmul.mubr.bf16.gmra.mrb[160].mxu0 %v6029_v39  ;;  %v1582_v62 = vmax.f32 %v1414_v31, 0.0 }
 0x292   : > { %v1420_v57 = vadd.f32 %v1419_v54, %v5591_v35  ;;  %v1583_v45 = vmax.f32 %v1416_v3, 0.0 }
 0x293   : > { %v1584_v24 = vmax.f32 %v1418_v36, 0.0  ;;  %2574 = vmatmul.mubr.bf16.gmra.mrb[208].mxu1 %v5970_v56 }
 0x294   : > { %v1585_v7 = vmax.f32 %v1420_v57, 0.0  ;;  %4418 = vmatprep.mubr.msk.bf16.mxu1 %vm1931_vm2, %v5989_v9 }
 0x295   : > { %v6043_v38 = vpack.c.bf16 %v1584_v24, %v1582_v62 }
 0x296   : > { %v6045_v46 = vpack.c.bf16 %v1585_v7, %v1583_v45  ;;  %v1423_v49 = vpop.f32.mrb[104].mxu1 }
 0x297   : > { %v1424_v58 = vadd.f32 %v1423_v49, %v5587_v34  ;;  %v1425_v29 = vpop.f32.mrb[105].mxu1 }
 0x298   : > { %v1426_v10 = vadd.f32 %v1425_v29, %v5591_v35  ;;  %v1427_v11 = vpop.f32.mrb[106].mxu1  ;;  %4390 = vmatprep.mubr.msk.bf16.mxu0 %vm1931_vm2, %v6045_v46 }
 0x299   : > { %v1428_v56 = vadd.f32 %v1427_v11, %v5587_v34  ;;  %v1429_v16 = vpop.f32.mrb[107].mxu1  ;;  %2311 = vmatmul.mubr.bf16.gmra.mrb[164].mxu0 %v6043_v38  ;;  %v1586_v51 = vmax.f32 %v1424_v58, 0.0 }
 0x29a   : > { %v1430_v9 = vadd.f32 %v1429_v16, %v5591_v35  ;;  %v1587_v52 = vmax.f32 %v1426_v10, 0.0 }
 0x29b   : > { %v1588_v47 = vmax.f32 %v1428_v56, 0.0  ;;  %2582 = vmatmul.mubr.bf16.gmra.mrb[212].mxu1 %v5987_v2 }
 0x29c   : > { %v1589_v13 = vmax.f32 %v1430_v9, 0.0  ;;  %4419 = vmatprep.mubr.msk.bf16.mxu1 %vm1931_vm2, %v6003_v17 }
 0x29d   : > { %v6057_v44 = vpack.c.bf16 %v1588_v47, %v1586_v51 }
 0x29e   : > { %v6059_v28 = vpack.c.bf16 %v1589_v13, %v1587_v52  ;;  %v1433_v63 = vpop.f32.mrb[108].mxu1 }
 0x29f   : > { %v1434_v40 = vadd.f32 %v1433_v63, %v5587_v34  ;;  %v1435_v6 = vpop.f32.mrb[109].mxu1 }
 0x2a0   : > { %v1436_v2 = vadd.f32 %v1435_v6, %v5591_v35  ;;  %v1437_v4 = vpop.f32.mrb[110].mxu1  ;;  %4391 = vmatprep.mubr.msk.bf16.mxu0 %vm1931_vm2, %v6059_v28 }
 0x2a1   : > { %v1438_v17 = vadd.f32 %v1437_v4, %v5587_v34  ;;  %v1439_v8 = vpop.f32.mrb[111].mxu1  ;;  %2321 = vmatmul.mubr.bf16.gmra.mrb[168].mxu0 %v6057_v44  ;;  %v1590_v30 = vmax.f32 %v1434_v40, 0.0 }
 0x2a2   : > { %v1440_v61 = vadd.f32 %v1439_v8, %v5591_v35  ;;  %v1591_v37 = vmax.f32 %v1436_v2, 0.0 }
 0x2a3   : > { %v1592_v15 = vmax.f32 %v1438_v17, 0.0  ;;  %2590 = vmatmul.mubr.bf16.gmra.mrb[216].mxu1 %v6001_v32 }
 0x2a4   : > { %v1593_v5 = vmax.f32 %v1440_v61, 0.0  ;;  %v2062_v20 = vpop.f32.mrb[64].mxu0  ;;  %4420 = vmatprep.mubr.msk.bf16.mxu1 %vm1931_vm2, %v6017_v41 }
 0x2a5   : > { %v6086_v33 = vpack.c.bf16 %v1592_v15, %v1590_v30  ;;  %v2063_v1 = vadd.f32 %v2062_v20, %v6075_v60  ;;  %v2064_v19 = vpop.f32.mrb[65].mxu0 }
 0x2a6   : > { %v6089_v42 = vpack.c.bf16 %v1593_v5, %v1591_v37  ;;  %v2065_v18 = vadd.f32 %v2064_v19, %v6081_v27  ;;  %v1443_v21 = vpop.f32.mrb[112].mxu1  ;;  %v2066_v43 = vpop.f32.mrb[66].mxu0 }
 0x2a7   : > { %v1444_v55 = vadd.f32 %v1443_v21, %v5587_v34  ;;  %v2067_v32 = vadd.f32 %v2066_v43, %v6075_v60  ;;  %v1445_v12 = vpop.f32.mrb[113].mxu1  ;;  %v2068_v25 = vpop.f32.mrb[67].mxu0  ;;  %v2670_v48 = vmax.f32 %v2063_v1, 0.0 }
 0x2a8   : > { %v1446_v14 = vadd.f32 %v1445_v12, %v5591_v35  ;;  %v2069_v41 = vadd.f32 %v2068_v25, %v6081_v27  ;;  %v1447_v53 = vpop.f32.mrb[114].mxu1  ;;  %4392 = vmatprep.mubr.msk.bf16.mxu0 %vm1931_vm2, %v6089_v42  ;;  %v2671_v50 = vmax.f32 %v2065_v18, 0.0 }
 0x2a9   : > { %v2673_v31 = vmax.f32 %v2067_v32, 0.0  ;;  %v1448_v59 = vadd.f32 %v1447_v53, %v5587_v34  ;;  %v1449_v3 = vpop.f32.mrb[115].mxu1  ;;  %2331 = vmatmul.mubr.bf16.gmra.mrb[172].mxu0 %v6086_v33  ;;  %v1594_v57 = vmax.f32 %v1444_v55, 0.0 }
 0x2aa   : > { %v2674_v36 = vmax.f32 %v2069_v41, 0.0  ;;  %v1450_v54 = vadd.f32 %v1449_v3, %v5591_v35  ;;  %v1595_v45 = vmax.f32 %v1446_v14, 0.0 }
 0x2ab   : > { %v6101_v62 = vpack.c.bf16 %v2673_v31, %v2670_v48  ;;  %v1596_v24 = vmax.f32 %v1448_v59, 0.0  ;;  %2598 = vmatmul.mubr.bf16.gmra.mrb[220].mxu1 %v6015_v26 }
 0x2ac   : > { %v6104_v7 = vpack.c.bf16 %v2674_v36, %v2671_v50  ;;  %v1597_v49 = vmax.f32 %v1450_v54, 0.0  ;;  %v2072_v58 = vpop.f32.mrb[68].mxu0  ;;  %4421 = vmatprep.mubr.msk.bf16.mxu1 %vm1931_vm2, %v6031_v23 }
 0x2ad   : > { %v6108_v29 = vpack.c.bf16 %v1596_v24, %v1594_v57  ;;  %v2073_v10 = vadd.f32 %v2072_v58, %v6075_v60  ;;  %v2074_v11 = vpop.f32.mrb[69].mxu0 }
 0x2ae   : > { %v6111_v56 = vpack.c.bf16 %v1597_v49, %v1595_v45  ;;  %v2075_v16 = vadd.f32 %v2074_v11, %v6081_v27  ;;  %v1453_v9 = vpop.f32.mrb[116].mxu1  ;;  %v2076_v51 = vpop.f32.mrb[70].mxu0 }
 0x2af   : > { %v1454_v26 = vadd.f32 %v1453_v9, %v5587_v34  ;;  %v2077_v47 = vadd.f32 %v2076_v51, %v6075_v60  ;;  %v1455_v52 = vpop.f32.mrb[117].mxu1  ;;  %v2078_v13 = vpop.f32.mrb[71].mxu0  ;;  %v2676_v6 = vmax.f32 %v2073_v10, 0.0 }
 0x2b0   : > { %v1456_v63 = vadd.f32 %v1455_v52, %v5591_v35  ;;  %v2079_v23 = vadd.f32 %v2078_v13, %v6081_v27  ;;  %v1457_v40 = vpop.f32.mrb[118].mxu1  ;;  %4393 = vmatprep.mubr.msk.bf16.mxu0 %vm1931_vm2, %v6111_v56  ;;  %v2677_v8 = vmax.f32 %v2075_v16, 0.0 }
 0x2b1   : > { %v2679_v2 = vmax.f32 %v2077_v47, 0.0  ;;  %v1458_v4 = vadd.f32 %v1457_v40, %v5587_v34  ;;  %v1459_v17 = vpop.f32.mrb[119].mxu1  ;;  %2341 = vmatmul.mubr.bf16.gmra.mrb[176].mxu0 %v6108_v29  ;;  %v1598_v15 = vmax.f32 %v1454_v26, 0.0 }
 0x2b2   : > { %v2680_v61 = vmax.f32 %v2079_v23, 0.0  ;;  %v1460_v30 = vadd.f32 %v1459_v17, %v5591_v35  ;;  %v1599_v20 = vmax.f32 %v1456_v63, 0.0  ;;  %v1734_v17 = vsub.s32 2, %v5576_v0 }
 0x2b3   : > { %v6123_v37 = vpack.c.bf16 %v2679_v2, %v2676_v6  ;;  %v1600_v5 = vmax.f32 %v1458_v4, 0.0  ;;  %2606 = vmatmul.mubr.bf16.gmra.mrb[224].mxu1 %v6029_v39 }
 0x2b4   : > { %v6126_v1 = vpack.c.bf16 %v2680_v61, %v2677_v8  ;;  %v1601_v19 = vmax.f32 %v1460_v30, 0.0  ;;  %v2082_v18 = vpop.f32.mrb[72].mxu0  ;;  %4422 = vmatprep.mubr.msk.bf16.mxu1 %vm1931_vm2, %v6045_v46 }
 0x2b5   : > { %v6130_v21 = vpack.c.bf16 %v1600_v5, %v1598_v15  ;;  %v2083_v43 = vadd.f32 %v2082_v18, %v6075_v60  ;;  %v2084_v55 = vpop.f32.mrb[73].mxu0 }
 0x2b6   : > { %v6133_v32 = vpack.c.bf16 %v1601_v19, %v1599_v20  ;;  %v2085_v12 = vadd.f32 %v2084_v55, %v6081_v27  ;;  %v1463_v25 = vpop.f32.mrb[120].mxu1  ;;  %v2086_v14 = vpop.f32.mrb[74].mxu0 }
 0x2b7   : > { %v1464_v39 = vadd.f32 %v1463_v25, %v5587_v34  ;;  %v2087_v41 = vadd.f32 %v2086_v14, %v6075_v60  ;;  %v1465_v53 = vpop.f32.mrb[121].mxu1  ;;  %v2088_v48 = vpop.f32.mrb[75].mxu0  ;;  %v2682_v3 = vmax.f32 %v2083_v43, 0.0  ;;  %v6172_v25 = vrot.slane %v6064_v22, %v1734_v17 }
 0x2b8   : > { %v1466_v31 = vadd.f32 %v1465_v53, %v5591_v35  ;;  %v2089_v46 = vadd.f32 %v2088_v48, %v6081_v27  ;;  %v1467_v59 = vpop.f32.mrb[122].mxu1  ;;  %4394 = vmatprep.mubr.msk.bf16.mxu0 %vm1931_vm2, %v6133_v32  ;;  %v2683_v57 = vmax.f32 %v2085_v12, 0.0 }
 0x2b9   : > { %v2685_v50 = vmax.f32 %v2087_v41, 0.0  ;;  %v1468_v36 = vadd.f32 %v1467_v59, %v5587_v34  ;;  %v1469_v54 = vpop.f32.mrb[123].mxu1  ;;  %2351 = vmatmul.mubr.bf16.gmra.mrb[180].mxu0 %v6130_v21  ;;  %v1602_v49 = vmax.f32 %v1464_v39, 0.0 }
 0x2ba   : > { %v2686_v24 = vmax.f32 %v2089_v46, 0.0  ;;  %v1470_v45 = vadd.f32 %v1469_v54, %v5591_v35  ;;  %v1603_v11 = vmax.f32 %v1466_v31, 0.0 }
 0x2bb   : > { %v6145_v58 = vpack.c.bf16 %v2685_v50, %v2682_v3  ;;  %v1604_v10 = vmax.f32 %v1468_v36, 0.0  ;;  %2614 = vmatmul.mubr.bf16.gmra.mrb[228].mxu1 %v6043_v38 }
 0x2bc   : > { %v6148_v16 = vpack.c.bf16 %v2686_v24, %v2683_v57  ;;  %v1605_v9 = vmax.f32 %v1470_v45, 0.0  ;;  %v2092_v51 = vpop.f32.mrb[76].mxu0  ;;  %4423 = vmatprep.mubr.msk.bf16.mxu1 %vm1931_vm2, %v6059_v28 }
 0x2bd   : > { %v6152_v26 = vpack.c.bf16 %v1604_v10, %v1602_v49  ;;  %v2093_v47 = vadd.f32 %v2092_v51, %v6075_v60  ;;  %v2094_v52 = vpop.f32.mrb[77].mxu0 }
 0x2be   : > { %v6155_v13 = vpack.c.bf16 %v1605_v9, %v1603_v11  ;;  %v2095_v63 = vadd.f32 %v2094_v52, %v6081_v27  ;;  %v1473_v23 = vpop.f32.mrb[124].mxu1  ;;  %v2096_v40 = vpop.f32.mrb[78].mxu0 }
 0x2bf   : > { %v1474_v38 = vadd.f32 %v1473_v23, %v5587_v34  ;;  %v2097_v6 = vadd.f32 %v2096_v40, %v6075_v60  ;;  %v1475_v2 = vpop.f32.mrb[125].mxu1  ;;  %v2098_v4 = vpop.f32.mrb[79].mxu0  ;;  %v2688_v30 = vmax.f32 %v2093_v47, 0.0 }
 0x2c0   : > { %v1476_v28 = vadd.f32 %v1475_v2, %v5591_v35  ;;  %v2099_v8 = vadd.f32 %v2098_v4, %v6081_v27  ;;  %v1477_v61 = vpop.f32.mrb[126].mxu1  ;;  %4395 = vmatprep.mubr.msk.bf16.mxu0 %vm1931_vm2, %v6155_v13  ;;  %v2689_v19 = vmax.f32 %v2095_v63, 0.0 }
 0x2c1   : > { %v2691_v15 = vmax.f32 %v2097_v6, 0.0  ;;  %v1478_v5 = vadd.f32 %v1477_v61, %v5587_v34  ;;  %v1479_v20 = vpop.f32.mrb[127].mxu1  ;;  %2361 = vmatmul.mubr.bf16.gmra.mrb[184].mxu0 %v6152_v26  ;;  %v1606_v0 = vmax.f32 %v1474_v38, 0.0 }
 0x2c2   : > { %v2692_v18 = vmax.f32 %v2099_v8, 0.0  ;;  %v1480_v43 = vadd.f32 %v1479_v20, %v5591_v35  ;;  %v1607_v14 = vmax.f32 %v1476_v28, 0.0 }
 0x2c3   : > { %v6168_v55 = vpack.c.bf16 %v2691_v15, %v2688_v30  ;;  %v1608_v12 = vmax.f32 %v1478_v5, 0.0  ;;  %2622 = vmatmul.mubr.bf16.gmra.mrb[232].mxu1 %v6057_v44 }
 0x2c4   : > { %v6174_v39 = vpack.c.bf16 %v2692_v18, %v2689_v19  ;;  %v1609_v34 = vmax.f32 %v1480_v43, 0.0  ;;  %v2102_v41 = vpop.f32.mrb[80].mxu0  ;;  %4424 = vmatprep.mubr.msk.bf16.mxu1 %vm1931_vm2, %v6089_v42 }
 0x2c5   : > { %v6178_v53 = vpack.c.bf16 %v1608_v12, %v1606_v0  ;;  %v2103_v35 = vadd.f32 %v2102_v41, %v6075_v60  ;;  %v2104_v48 = vpop.f32.mrb[81].mxu0 }
 0x2c6   : > { %v6181_v31 = vpack.c.bf16 %v1609_v34, %v1607_v14  ;;  %v2105_v44 = vadd.f32 %v2104_v48, %v6081_v27  ;;  %v2106_v46 = vpop.f32.mrb[82].mxu0  ;;  %v2415_v22 = vpop.f32.mrb[128].mxu1 }
 0x2c7   : > { %v2107_v59 = vadd.f32 %v2106_v46, %v6075_v60  ;;  %v2416_v3 = vadd.f32 %v2415_v22, %v6172_v25  ;;  %v2108_v50 = vpop.f32.mrb[83].mxu0  ;;  %v2417_v36 = vpop.f32.mrb[129].mxu1  ;;  %v2694_v57 = vmax.f32 %v2103_v35, 0.0 }
 0x2c8   : > { %v2109_v54 = vadd.f32 %v2108_v50, %v6081_v27  ;;  %4396 = vmatprep.mubr.msk.bf16.mxu0 %vm1931_vm2, %v6181_v31  ;;  %v2418_v42 = vpop.f32.mrb[130].mxu1  ;;  %v2695_v10 = vmax.f32 %v2105_v44, 0.0 }
 0x2c9   : > { %v2697_v24 = vmax.f32 %v2107_v59, 0.0  ;;  %v2419_v45 = vadd.f32 %v2418_v42, %v6172_v25  ;;  %2371 = vmatmul.mubr.bf16.gmra.mrb[188].mxu0 %v6178_v53  ;;  %v2420_v49 = vpop.f32.mrb[131].mxu1  ;;  %v2672_v51 = vmax.f32 %v2416_v3, 0.0 }
 0x2ca   : > { %v2698_v11 = vmax.f32 %v2109_v54, 0.0  ;;  %3182 = vmatprep.mubr.bf16.mxu0 %v6104_v7 }
 0x2cb   : > { %v6192_v9 = vpack.c.bf16 %v2697_v24, %v2694_v57  ;;  %v2675_v47 = vmax.f32 %v2419_v45, 0.0  ;;  %2630 = vmatmul.mubr.bf16.gmra.mrb[236].mxu1 %v6086_v33 }
 0x2cc   : > { %v6195_v52 = vpack.c.bf16 %v2698_v11, %v2695_v10  ;;  %v2112_v63 = vpop.f32.mrb[84].mxu0  ;;  %4425 = vmatprep.mubr.msk.bf16.mxu1 %vm1931_vm2, %v6111_v56 }
 0x2cd   : > { %v6199_v23 = vpack.c.bf16 %v2675_v47, %v2672_v51  ;;  %v2113_v40 = vadd.f32 %v2112_v63, %v6075_v60  ;;  %v2114_v38 = vpop.f32.mrb[85].mxu0 }
 0x2ce   : > { %v2115_v6 = vadd.f32 %v2114_v38, %v6081_v27  ;;  %v2116_v7 = vpop.f32.mrb[86].mxu0  ;;  %v2423_v2 = vpop.f32.mrb[132].mxu1 }
 0x2cf   : > { %v2117_v4 = vadd.f32 %v2116_v7, %v6075_v60  ;;  %v2424_v17 = vadd.f32 %v2423_v2, %v6172_v25  ;;  %v2118_v33 = vpop.f32.mrb[87].mxu0  ;;  %v2425_v28 = vpop.f32.mrb[133].mxu1  ;;  %v2700_v30 = vmax.f32 %v2113_v40, 0.0 }
 0x2d0   : > { %v2119_v8 = vadd.f32 %v2118_v33, %v6081_v27  ;;  %v2426_v61 = vpop.f32.mrb[134].mxu1  ;;  %v2701_v20 = vmax.f32 %v2115_v6, 0.0 }
 0x2d1   : > { %v2703_v56 = vmax.f32 %v2117_v4, 0.0  ;;  %v2427_v15 = vadd.f32 %v2426_v61, %v6172_v25  ;;  %v2428_v5 = vpop.f32.mrb[135].mxu1  ;;  %3183 = vmatmul.mubr.bf16.vlgmr.msra.gmra.mrb[192].mxu0 %v6101_v62  ;;  %v2678_v43 = vmax.f32 %v2424_v17, 0.0 }
 0x2d2   : > { %v2704_v19 = vmax.f32 %v2119_v8, 0.0  ;;  %3190 = vmatprep.mubr.bf16.mxu0 %v6126_v1 }
 0x2d3   : > { %v6209_v18 = vpack.c.bf16 %v2703_v56, %v2700_v30  ;;  %v2681_v0 = vmax.f32 %v2427_v15, 0.0  ;;  %2638 = vmatmul.mubr.bf16.gmra.mrb[240].mxu1 %v6108_v29 }
 0x2d4   : > { %v6212_v12 = vpack.c.bf16 %v2704_v19, %v2701_v20  ;;  %v2122_v14 = vpop.f32.mrb[88].mxu0  ;;  %4426 = vmatprep.mubr.msk.bf16.mxu1 %vm1931_vm2, %v6133_v32 }
 0x2d5   : > { %v6216_v34 = vpack.c.bf16 %v2681_v0, %v2678_v43  ;;  %v2123_v62 = vadd.f32 %v2122_v14, %v6075_v60  ;;  %v2124_v41 = vpop.f32.mrb[89].mxu0 }
 0x2d6   : > { %v2125_v35 = vadd.f32 %v2124_v41, %v6081_v27  ;;  %v2126_v1 = vpop.f32.mrb[90].mxu0  ;;  %v2431_v48 = vpop.f32.mrb[136].mxu1 }
 0x2d7   : > { %v2127_v44 = vadd.f32 %v2126_v1, %v6075_v60  ;;  %v2432_v46 = vadd.f32 %v2431_v48, %v6172_v25  ;;  %v2128_v29 = vpop.f32.mrb[91].mxu0  ;;  %v2433_v22 = vpop.f32.mrb[137].mxu1  ;;  %v2706_v50 = vmax.f32 %v2123_v62, 0.0 }
 0x2d8   : > { %v2129_v59 = vadd.f32 %v2128_v29, %v6081_v27  ;;  %v2434_v3 = vpop.f32.mrb[138].mxu1  ;;  %v2707_v42 = vmax.f32 %v2125_v35, 0.0 }
 0x2d9   : > { %v2709_v32 = vmax.f32 %v2127_v44, 0.0  ;;  %v2435_v36 = vadd.f32 %v2434_v3, %v6172_v25  ;;  %v2436_v54 = vpop.f32.mrb[139].mxu1  ;;  %3191 = vmatmul.mubr.bf16.gmra.mrb[196].mxu0 %v6123_v37  ;;  %v2684_v45 = vmax.f32 %v2432_v46, 0.0 }
 0x2da   : > { %v2710_v57 = vmax.f32 %v2129_v59, 0.0  ;;  %3198 = vmatprep.mubr.bf16.mxu0 %v6148_v16 }
 0x2db   : > { %v6226_v24 = vpack.c.bf16 %v2709_v32, %v2706_v50  ;;  %v2687_v49 = vmax.f32 %v2435_v36, 0.0  ;;  %2646 = vmatmul.mubr.bf16.gmra.mrb[244].mxu1 %v6130_v21 }
 0x2dc   : > { %v6229_v10 = vpack.c.bf16 %v2710_v57, %v2707_v42  ;;  %v2132_v11 = vpop.f32.mrb[92].mxu0  ;;  %4427 = vmatprep.mubr.msk.bf16.mxu1 %vm1931_vm2, %v6155_v13 }
 0x2dd   : > { %v6233_v51 = vpack.c.bf16 %v2687_v49, %v2684_v45  ;;  %v2133_v37 = vadd.f32 %v2132_v11, %v6075_v60  ;;  %v2134_v47 = vpop.f32.mrb[93].mxu0 }
 0x2de   : > { %v2135_v63 = vadd.f32 %v2134_v47, %v6081_v27  ;;  %v2136_v16 = vpop.f32.mrb[94].mxu0  ;;  %v2439_v40 = vpop.f32.mrb[140].mxu1 }
 0x2df   : > { %v2137_v38 = vadd.f32 %v2136_v16, %v6075_v60  ;;  %v2440_v6 = vadd.f32 %v2439_v40, %v6172_v25  ;;  %v2138_v21 = vpop.f32.mrb[95].mxu0  ;;  %v2441_v7 = vpop.f32.mrb[141].mxu1  ;;  %v2712_v17 = vmax.f32 %v2133_v37, 0.0 }
 0x2e0   : > { %v2139_v2 = vadd.f32 %v2138_v21, %v6081_v27  ;;  %v2442_v4 = vpop.f32.mrb[142].mxu1  ;;  %v2713_v8 = vmax.f32 %v2135_v63, 0.0 }
 0x2e1   : > { %v2715_v13 = vmax.f32 %v2137_v38, 0.0  ;;  %v2443_v33 = vadd.f32 %v2442_v4, %v6172_v25  ;;  %v2444_v28 = vpop.f32.mrb[143].mxu1  ;;  %3199 = vmatmul.mubr.bf16.gmra.mrb[200].mxu0 %v6145_v58  ;;  %v2690_v56 = vmax.f32 %v2440_v6, 0.0 }
 0x2e2   : > { %v2716_v61 = vmax.f32 %v2139_v2, 0.0  ;;  %3206 = vmatprep.mubr.bf16.mxu0 %v6174_v39 }
 0x2e3   : > { %v6243_v30 = vpack.c.bf16 %v2715_v13, %v2712_v17  ;;  %v2693_v15 = vmax.f32 %v2443_v33, 0.0  ;;  %2654 = vmatmul.mubr.bf16.gmra.mrb[248].mxu1 %v6152_v26 }
 0x2e4   : > { %v6246_v5 = vpack.c.bf16 %v2716_v61, %v2713_v8  ;;  %v2142_v20 = vpop.f32.mrb[96].mxu0  ;;  %4428 = vmatprep.mubr.msk.bf16.mxu1 %vm1931_vm2, %v6181_v31 }
 0x2e5   : > { %v6250_v19 = vpack.c.bf16 %v2693_v15, %v2690_v56  ;;  %v2143_v58 = vadd.f32 %v2142_v20, %v6075_v60  ;;  %v2144_v43 = vpop.f32.mrb[97].mxu0 }
 0x2e6   : > { %v2145_v0 = vadd.f32 %v2144_v43, %v6081_v27  ;;  %v2146_v39 = vpop.f32.mrb[98].mxu0  ;;  %v2447_v14 = vpop.f32.mrb[144].mxu1 }
 0x2e7   : > { %v2147_v62 = vadd.f32 %v2146_v39, %v6075_v60  ;;  %v2448_v41 = vadd.f32 %v2447_v14, %v6172_v25  ;;  %v2148_v26 = vpop.f32.mrb[99].mxu0  ;;  %v2449_v35 = vpop.f32.mrb[145].mxu1  ;;  %v2718_v44 = vmax.f32 %v2143_v58, 0.0 }
 0x2e8   : > { %v2149_v1 = vadd.f32 %v2148_v26, %v6081_v27  ;;  %v2450_v48 = vpop.f32.mrb[146].mxu1  ;;  %v2719_v22 = vmax.f32 %v2145_v0, 0.0 }
 0x2e9   : > { %v2721_v31 = vmax.f32 %v2147_v62, 0.0  ;;  %v2451_v46 = vadd.f32 %v2450_v48, %v6172_v25  ;;  %v2452_v29 = vpop.f32.mrb[147].mxu1  ;;  %3207 = vmatmul.mubr.bf16.gmra.mrb[204].mxu0 %v6168_v55  ;;  %v2696_v50 = vmax.f32 %v2448_v41, 0.0 }
 0x2ea   : > { %v2722_v59 = vmax.f32 %v2149_v1, 0.0  ;;  %3214 = vmatprep.mubr.bf16.mxu0 %v6195_v52 }
 0x2eb   : > { %v6260_v3 = vpack.c.bf16 %v2721_v31, %v2718_v44  ;;  %v2699_v32 = vmax.f32 %v2451_v46, 0.0  ;;  %2662 = vmatmul.mubr.bf16.gmra.mrb[252].mxu1 %v6178_v53 }
 0x2ec   : > { %v6263_v36 = vpack.c.bf16 %v2722_v59, %v2719_v22  ;;  %v2152_v54 = vpop.f32.mrb[100].mxu0  ;;  %4617 = vmatprep.mubr.bf16.mxu1 %v6199_v23 }
 0x2ed   : > { %v2876_v42 = vpack.c.bf16 %v2699_v32, %v2696_v50  ;;  %v2153_v57 = vadd.f32 %v2152_v54, %v6075_v60  ;;  %v2154_v45 = vpop.f32.mrb[101].mxu0 }
 0x2ee   : > { %v2155_v55 = vadd.f32 %v2154_v45, %v6081_v27  ;;  %v2156_v49 = vpop.f32.mrb[102].mxu0  ;;  %v2455_v11 = vpop.f32.mrb[148].mxu1 }
 0x2ef   : > { %v2157_v52 = vadd.f32 %v2156_v49, %v6075_v60  ;;  %v2456_v37 = vadd.f32 %v2455_v11, %v6172_v25  ;;  %v2158_v47 = vpop.f32.mrb[103].mxu0  ;;  %v2457_v63 = vpop.f32.mrb[149].mxu1  ;;  %v2724_v40 = vmax.f32 %v2153_v57, 0.0 }
 0x2f0   : > { %v2159_v53 = vadd.f32 %v2158_v47, %v6081_v27  ;;  %v2458_v16 = vpop.f32.mrb[150].mxu1  ;;  %v2725_v21 = vmax.f32 %v2155_v55, 0.0 }
 0x2f1   : > { %v2727_v38 = vmax.f32 %v2157_v52, 0.0  ;;  %v2459_v23 = vadd.f32 %v2458_v16, %v6172_v25  ;;  %v2460_v6 = vpop.f32.mrb[151].mxu1  ;;  %3215 = vmatmul.mubr.bf16.gmra.mrb[208].mxu0 %v6192_v9  ;;  %v2702_v4 = vmax.f32 %v2456_v37, 0.0 }
 0x2f2   : > { %v2728_v7 = vmax.f32 %v2159_v53, 0.0  ;;  %3222 = vmatprep.mubr.bf16.mxu0 %v6212_v12 }
 0x2f3   : > { %v6274_v2 = vpack.c.bf16 %v2727_v38, %v2724_v40  ;;  %v2705_v17 = vmax.f32 %v2459_v23, 0.0  ;;  %4618 = vmatmul.mubr.bf16.vlgmr.msra.gmra.mrb[0].mxu1 %v6216_v34 }
 0x2f4   : > { %v6277_v13 = vpack.c.bf16 %v2728_v7, %v2725_v21  ;;  %v2162_v33 = vpop.f32.mrb[104].mxu0  ;;  %4621 = vmatprep.mubr.bf16.mxu1 %v6233_v51 }
 0x2f5   : > { %v2879_v28 = vpack.c.bf16 %v2705_v17, %v2702_v4  ;;  %v2163_v8 = vadd.f32 %v2162_v33, %v6075_v60  ;;  %v2164_v61 = vpop.f32.mrb[105].mxu0 }
 0x2f6   : > { %v2165_v9 = vadd.f32 %v2164_v61, %v6081_v27  ;;  %v2166_v56 = vpop.f32.mrb[106].mxu0  ;;  %v2463_v15 = vpop.f32.mrb[152].mxu1 }
 0x2f7   : > { %v2167_v12 = vadd.f32 %v2166_v56, %v6075_v60  ;;  %v2464_v20 = vadd.f32 %v2463_v15, %v6172_v25  ;;  %v2168_v58 = vpop.f32.mrb[107].mxu0  ;;  %v2465_v43 = vpop.f32.mrb[153].mxu1  ;;  %v2730_v39 = vmax.f32 %v2163_v8, 0.0 }
 0x2f8   : > { %v2169_v34 = vadd.f32 %v2168_v58, %v6081_v27  ;;  %v2466_v0 = vpop.f32.mrb[154].mxu1  ;;  %v2731_v41 = vmax.f32 %v2165_v9, 0.0 }
 0x2f9   : > { %v2733_v14 = vmax.f32 %v2167_v12, 0.0  ;;  %v2467_v51 = vadd.f32 %v2466_v0, %v6172_v25  ;;  %v2468_v62 = vpop.f32.mrb[155].mxu1  ;;  %3223 = vmatmul.mubr.bf16.gmra.mrb[212].mxu0 %v6209_v18  ;;  %v2708_v1 = vmax.f32 %v2464_v20, 0.0 }
 0x2fa   : > { %v2734_v26 = vmax.f32 %v2169_v34, 0.0  ;;  %3230 = vmatprep.mubr.bf16.mxu0 %v6229_v10 }
 0x2fb   : > { %v6288_v35 = vpack.c.bf16 %v2733_v14, %v2730_v39  ;;  %v2711_v48 = vmax.f32 %v2467_v51, 0.0  ;;  %4622 = vmatmul.mubr.bf16.gmra.mrb[4].mxu1 %v6250_v19 }
 0x2fc   : > { %v6291_v44 = vpack.c.bf16 %v2734_v26, %v2731_v41  ;;  %v2172_v31 = vpop.f32.mrb[108].mxu0  ;;  %4625 = vmatprep.mubr.bf16.mxu1 %v2876_v42 }
 0x2fd   : > { %v2882_v46 = vpack.c.bf16 %v2711_v48, %v2708_v1  ;;  %v2173_v29 = vadd.f32 %v2172_v31, %v6075_v60  ;;  %v2174_v22 = vpop.f32.mrb[109].mxu0 }
 0x2fe   : > { %v2175_v18 = vadd.f32 %v2174_v22, %v6081_v27  ;;  %v2176_v59 = vpop.f32.mrb[110].mxu0  ;;  %v2471_v50 = vpop.f32.mrb[156].mxu1 }
 0x2ff   : > { %v2177_v10 = vadd.f32 %v2176_v59, %v6075_v60  ;;  %v2472_v32 = vadd.f32 %v2471_v50, %v6172_v25  ;;  %v2178_v54 = vpop.f32.mrb[111].mxu0  ;;  %v2473_v57 = vpop.f32.mrb[157].mxu1  ;;  %v2736_v55 = vmax.f32 %v2173_v29, 0.0 }
 0x300   : > { %v2179_v19 = vadd.f32 %v2178_v54, %v6081_v27  ;;  %v2474_v45 = vpop.f32.mrb[158].mxu1  ;;  %v2737_v52 = vmax.f32 %v2175_v18, 0.0 }
 0x301   : > { %v2739_v49 = vmax.f32 %v2177_v10, 0.0  ;;  %v2475_v42 = vadd.f32 %v2474_v45, %v6172_v25  ;;  %v2476_v11 = vpop.f32.mrb[159].mxu1  ;;  %3231 = vmatmul.mubr.bf16.gmra.mrb[216].mxu0 %v6226_v24  ;;  %v2714_v63 = vmax.f32 %v2472_v32, 0.0 }
 0x302   : > { %v2740_v37 = vmax.f32 %v2179_v19, 0.0  ;;  %3238 = vmatprep.mubr.bf16.mxu0 %v6246_v5 }
 0x303   : > { %v6301_v47 = vpack.c.bf16 %v2739_v49, %v2736_v55  ;;  %v2717_v53 = vmax.f32 %v2475_v42, 0.0  ;;  %4626 = vmatmul.mubr.bf16.gmra.mrb[8].mxu1 %v2879_v28 }
 0x304   : > { %v6303_v16 = vpack.c.bf16 %v2740_v37, %v2737_v52  ;;  %v2182_v40 = vpop.f32.mrb[112].mxu0  ;;  %4629 = vmatprep.mubr.bf16.mxu1 %v2882_v46 }
 0x305   : > { %v2885_v38 = vpack.c.bf16 %v2717_v53, %v2714_v63  ;;  %v2183_v23 = vadd.f32 %v2182_v40, %v6075_v60  ;;  %v2184_v6 = vpop.f32.mrb[113].mxu0 }
 0x306   : > { %v2185_v21 = vadd.f32 %v2184_v6, %v6081_v27  ;;  %v2186_v24 = vpop.f32.mrb[114].mxu0  ;;  %v2479_v7 = vpop.f32.mrb[160].mxu1 }
 0x307   : > { %v2187_v4 = vadd.f32 %v2186_v24, %v6075_v60  ;;  %v2480_v5 = vadd.f32 %v2479_v7, %v6172_v25  ;;  %v2188_v17 = vpop.f32.mrb[115].mxu0  ;;  %v2481_v33 = vpop.f32.mrb[161].mxu1  ;;  %v2742_v61 = vmax.f32 %v2183_v23, 0.0 }
 0x308   : > { %v2189_v28 = vadd.f32 %v2188_v17, %v6081_v27  ;;  %v2482_v8 = vpop.f32.mrb[162].mxu1  ;;  %v2743_v12 = vmax.f32 %v2185_v21, 0.0 }
 0x309   : > { %v2745_v9 = vmax.f32 %v2187_v4, 0.0  ;;  %v2483_v56 = vadd.f32 %v2482_v8, %v6172_v25  ;;  %v2484_v15 = vpop.f32.mrb[163].mxu1  ;;  %3239 = vmatmul.mubr.bf16.gmra.mrb[220].mxu0 %v6243_v30  ;;  %v2720_v43 = vmax.f32 %v2480_v5, 0.0 }
 0x30a   : > { %v2746_v20 = vmax.f32 %v2189_v28, 0.0  ;;  %3246 = vmatprep.mubr.bf16.mxu0 %v6263_v36 }
 0x30b   : > { %v6313_v58 = vpack.c.bf16 %v2745_v9, %v2742_v61  ;;  %v2723_v34 = vmax.f32 %v2483_v56, 0.0  ;;  %4630 = vmatmul.mubr.bf16.gmra.mrb[12].mxu1 %v2885_v38 }
 0x30c   : > { %v6315_v0 = vpack.c.bf16 %v2746_v20, %v2743_v12  ;;  %v2192_v39 = vpop.f32.mrb[116].mxu0 }
 0x30d   : > { %v2888_v14 = vpack.c.bf16 %v2723_v34, %v2720_v43  ;;  %v2193_v51 = vadd.f32 %v2192_v39, %v6075_v60  ;;  %v2194_v62 = vpop.f32.mrb[117].mxu0 }
 0x30e   : > { %v2195_v41 = vadd.f32 %v2194_v62, %v6081_v27  ;;  %v2196_v26 = vpop.f32.mrb[118].mxu0  ;;  %v2487_v30 = vpop.f32.mrb[164].mxu1 }
 0x30f   : > { %v2197_v1 = vadd.f32 %v2196_v26, %v6075_v60  ;;  %v2488_v36 = vadd.f32 %v2487_v30, %v6172_v25  ;;  %v2198_v48 = vpop.f32.mrb[119].mxu0  ;;  %v2489_v31 = vpop.f32.mrb[165].mxu1  ;;  %4633 = vmatprep.mubr.bf16.mxu1 %v2888_v14  ;;  %v2748_v22 = vmax.f32 %v2193_v51, 0.0 }
 0x310   : > { %v2199_v46 = vadd.f32 %v2198_v48, %v6081_v27  ;;  %v2490_v29 = vpop.f32.mrb[166].mxu1  ;;  %v2749_v10 = vmax.f32 %v2195_v41, 0.0 }
 0x311   : > { %v2751_v18 = vmax.f32 %v2197_v1, 0.0  ;;  %v2491_v59 = vadd.f32 %v2490_v29, %v6172_v25  ;;  %v2492_v50 = vpop.f32.mrb[167].mxu1  ;;  %3247 = vmatmul.mubr.bf16.gmra.mrb[224].mxu0 %v6260_v3  ;;  %v2726_v57 = vmax.f32 %v2488_v36, 0.0 }
 0x312   : > { %v2752_v32 = vmax.f32 %v2199_v46, 0.0  ;;  %3254 = vmatprep.mubr.bf16.mxu0 %v6277_v13 }
 0x313   : > { %v6325_v54 = vpack.c.bf16 %v2751_v18, %v2748_v22  ;;  %v2729_v19 = vmax.f32 %v2491_v59, 0.0 }
 0x314   : > { %v6327_v45 = vpack.c.bf16 %v2752_v32, %v2749_v10  ;;  %v2202_v55 = vpop.f32.mrb[120].mxu0 }
 0x315   : > { %v2891_v49 = vpack.c.bf16 %v2729_v19, %v2726_v57  ;;  %v2203_v42 = vadd.f32 %v2202_v55, %v6075_v60  ;;  %v2204_v11 = vpop.f32.mrb[121].mxu0 }
 0x316   : > { %v2205_v52 = vadd.f32 %v2204_v11, %v6081_v27  ;;  %v2206_v37 = vpop.f32.mrb[122].mxu0  ;;  %v2495_v63 = vpop.f32.mrb[168].mxu1 }
 0x317   : > { %v2207_v3 = vadd.f32 %v2206_v37, %v6075_v60  ;;  %v2496_v53 = vadd.f32 %v2495_v63, %v6172_v25  ;;  %v2208_v13 = vpop.f32.mrb[123].mxu0  ;;  %v2497_v40 = vpop.f32.mrb[169].mxu1  ;;  %4634 = vmatmul.mubr.bf16.gmra.mrb[16].mxu1 %v2891_v49  ;;  %v2754_v6 = vmax.f32 %v2203_v42, 0.0 }
 0x318   : > { %v2209_v38 = vadd.f32 %v2208_v13, %v6081_v27  ;;  %v2498_v23 = vpop.f32.mrb[170].mxu1  ;;  %v2755_v4 = vmax.f32 %v2205_v52, 0.0 }
 0x319   : > { %v2757_v21 = vmax.f32 %v2207_v3, 0.0  ;;  %v2499_v24 = vadd.f32 %v2498_v23, %v6172_v25  ;;  %v2500_v7 = vpop.f32.mrb[171].mxu1  ;;  %3255 = vmatmul.mubr.bf16.gmra.mrb[228].mxu0 %v6274_v2  ;;  %v2732_v33 = vmax.f32 %v2496_v53, 0.0 }
 0x31a   : > { %v2758_v5 = vmax.f32 %v2209_v38, 0.0  ;;  %3262 = vmatprep.mubr.bf16.mxu0 %v6291_v44 }
 0x31b   : > { %v6337_v17 = vpack.c.bf16 %v2757_v21, %v2754_v6  ;;  %v2735_v28 = vmax.f32 %v2499_v24, 0.0 }
 0x31c   : > { %v6339_v8 = vpack.c.bf16 %v2758_v5, %v2755_v4  ;;  %v2212_v61 = vpop.f32.mrb[124].mxu0 }
 0x31d   : > { %v2894_v9 = vpack.c.bf16 %v2735_v28, %v2732_v33  ;;  %v2213_v56 = vadd.f32 %v2212_v61, %v6075_v60  ;;  %v2214_v15 = vpop.f32.mrb[125].mxu0 }
 0x31e   : > { %v2215_v12 = vadd.f32 %v2214_v15, %v6081_v27  ;;  %v2216_v20 = vpop.f32.mrb[126].mxu0  ;;  %v2503_v43 = vpop.f32.mrb[172].mxu1 }
 0x31f   : > { %v2217_v2 = vadd.f32 %v2216_v20, %v6075_v60  ;;  %v2504_v34 = vadd.f32 %v2503_v43, %v6172_v25  ;;  %v2218_v44 = vpop.f32.mrb[127].mxu0  ;;  %v2505_v39 = vpop.f32.mrb[173].mxu1  ;;  %4637 = vmatprep.mubr.bf16.mxu1 %v2894_v9  ;;  %v2760_v62 = vmax.f32 %v2213_v56, 0.0 }
 0x320   : > { %v2219_v14 = vadd.f32 %v2218_v44, %v6081_v27  ;;  %v2506_v51 = vpop.f32.mrb[174].mxu1  ;;  %v2761_v1 = vmax.f32 %v2215_v12, 0.0 }
 0x321   : > { %v2763_v41 = vmax.f32 %v2217_v2, 0.0  ;;  %v2507_v26 = vadd.f32 %v2506_v51, %v6172_v25  ;;  %v2508_v30 = vpop.f32.mrb[175].mxu1  ;;  %3263 = vmatmul.mubr.bf16.gmra.mrb[232].mxu0 %v6288_v35  ;;  %v2738_v31 = vmax.f32 %v2504_v34, 0.0 }
 0x322   : > { %v2764_v36 = vmax.f32 %v2219_v14, 0.0  ;;  %3270 = vmatprep.mubr.bf16.mxu0 %v6303_v16 }
 0x323   : > { %v6349_v48 = vpack.c.bf16 %v2763_v41, %v2760_v62  ;;  %v2741_v46 = vmax.f32 %v2507_v26, 0.0 }
 0x324   : > { %v6351_v29 = vpack.c.bf16 %v2764_v36, %v2761_v1  ;;  %v2222_v22 = vpop.f32.mrb[128].mxu0 }
 0x325   : > { %v2897_v18 = vpack.c.bf16 %v2741_v46, %v2738_v31  ;;  %v2223_v59 = vadd.f32 %v2222_v22, %v6075_v60  ;;  %v2224_v50 = vpop.f32.mrb[129].mxu0 }
 0x326   : > { %v2225_v10 = vadd.f32 %v2224_v50, %v6081_v27  ;;  %v2226_v32 = vpop.f32.mrb[130].mxu0  ;;  %v2511_v57 = vpop.f32.mrb[176].mxu1 }
 0x327   : > { %v2227_v35 = vadd.f32 %v2226_v32, %v6075_v60  ;;  %v2512_v19 = vadd.f32 %v2511_v57, %v6172_v25  ;;  %v2228_v16 = vpop.f32.mrb[131].mxu0  ;;  %v2513_v55 = vpop.f32.mrb[177].mxu1  ;;  %4638 = vmatmul.mubr.bf16.gmra.mrb[20].mxu1 %v2897_v18  ;;  %v2766_v11 = vmax.f32 %v2223_v59, 0.0 }
 0x328   : > { %v2229_v49 = vadd.f32 %v2228_v16, %v6081_v27  ;;  %v2514_v42 = vpop.f32.mrb[178].mxu1  ;;  %v2767_v3 = vmax.f32 %v2225_v10, 0.0 }
 0x329   : > { %v2769_v52 = vmax.f32 %v2227_v35, 0.0  ;;  %v2515_v37 = vadd.f32 %v2514_v42, %v6172_v25  ;;  %v2516_v63 = vpop.f32.mrb[179].mxu1  ;;  %3271 = vmatmul.mubr.bf16.gmra.mrb[236].mxu0 %v6301_v47  ;;  %v2744_v40 = vmax.f32 %v2512_v19, 0.0 }
 0x32a   : > { %v2770_v53 = vmax.f32 %v2229_v49, 0.0  ;;  %3278 = vmatprep.mubr.bf16.mxu0 %v6315_v0 }
 0x32b   : > { %v6361_v13 = vpack.c.bf16 %v2769_v52, %v2766_v11  ;;  %v2747_v38 = vmax.f32 %v2515_v37, 0.0 }
 0x32c   : > { %v6363_v23 = vpack.c.bf16 %v2770_v53, %v2767_v3  ;;  %v2232_v6 = vpop.f32.mrb[132].mxu0 }
 0x32d   : > { %v2900_v21 = vpack.c.bf16 %v2747_v38, %v2744_v40  ;;  %v2233_v24 = vadd.f32 %v2232_v6, %v6075_v60  ;;  %v2234_v7 = vpop.f32.mrb[133].mxu0 }
 0x32e   : > { %v2235_v4 = vadd.f32 %v2234_v7, %v6081_v27  ;;  %v2236_v5 = vpop.f32.mrb[134].mxu0  ;;  %v2519_v33 = vpop.f32.mrb[180].mxu1 }
 0x32f   : > { %v2237_v47 = vadd.f32 %v2236_v5, %v6075_v60  ;;  %v2520_v28 = vadd.f32 %v2519_v33, %v6172_v25  ;;  %v2238_v0 = vpop.f32.mrb[135].mxu0  ;;  %v2521_v61 = vpop.f32.mrb[181].mxu1  ;;  %4641 = vmatprep.mubr.bf16.mxu1 %v2900_v21  ;;  %v2772_v15 = vmax.f32 %v2233_v24, 0.0 }
 0x330   : > { %v2239_v9 = vadd.f32 %v2238_v0, %v6081_v27  ;;  %v2522_v56 = vpop.f32.mrb[182].mxu1  ;;  %v2773_v2 = vmax.f32 %v2235_v4, 0.0 }
 0x331   : > { %v2775_v12 = vmax.f32 %v2237_v47, 0.0  ;;  %v2523_v20 = vadd.f32 %v2522_v56, %v6172_v25  ;;  %v2524_v43 = vpop.f32.mrb[183].mxu1  ;;  %3279 = vmatmul.mubr.bf16.gmra.mrb[240].mxu0 %v6313_v58  ;;  %v2750_v39 = vmax.f32 %v2520_v28, 0.0 }
 0x332   : > { %v2776_v34 = vmax.f32 %v2239_v9, 0.0  ;;  %3286 = vmatprep.mubr.bf16.mxu0 %v6327_v45 }
 0x333   : > { %v6373_v44 = vpack.c.bf16 %v2775_v12, %v2772_v15  ;;  %v2753_v14 = vmax.f32 %v2523_v20, 0.0 }
 0x334   : > { %v6375_v51 = vpack.c.bf16 %v2776_v34, %v2773_v2  ;;  %v2242_v62 = vpop.f32.mrb[136].mxu0 }
 0x335   : > { %v2903_v41 = vpack.c.bf16 %v2753_v14, %v2750_v39  ;;  %v2243_v26 = vadd.f32 %v2242_v62, %v6075_v60  ;;  %v2244_v30 = vpop.f32.mrb[137].mxu0 }
 0x336   : > { %v2245_v1 = vadd.f32 %v2244_v30, %v6081_v27  ;;  %v2246_v36 = vpop.f32.mrb[138].mxu0  ;;  %v2527_v31 = vpop.f32.mrb[184].mxu1 }
 0x337   : > { %v2247_v58 = vadd.f32 %v2246_v36, %v6075_v60  ;;  %v2528_v46 = vadd.f32 %v2527_v31, %v6172_v25  ;;  %v2248_v45 = vpop.f32.mrb[139].mxu0  ;;  %v2529_v22 = vpop.f32.mrb[185].mxu1  ;;  %4642 = vmatmul.mubr.bf16.gmra.mrb[24].mxu1 %v2903_v41  ;;  %v2778_v50 = vmax.f32 %v2243_v26, 0.0 }
 0x338   : > { %v2249_v18 = vadd.f32 %v2248_v45, %v6081_v27  ;;  %v2530_v59 = vpop.f32.mrb[186].mxu1  ;;  %v2779_v35 = vmax.f32 %v2245_v1, 0.0 }
 0x339   : > { %v2781_v10 = vmax.f32 %v2247_v58, 0.0  ;;  %v2531_v32 = vadd.f32 %v2530_v59, %v6172_v25  ;;  %v2532_v57 = vpop.f32.mrb[187].mxu1  ;;  %3287 = vmatmul.mubr.bf16.gmra.mrb[244].mxu0 %v6325_v54  ;;  %v2756_v55 = vmax.f32 %v2528_v46, 0.0 }
 0x33a   : > { %v2782_v19 = vmax.f32 %v2249_v18, 0.0  ;;  %3294 = vmatprep.mubr.bf16.mxu0 %v6339_v8 }
 0x33b   : > { %v6385_v16 = vpack.c.bf16 %v2781_v10, %v2778_v50  ;;  %v2759_v49 = vmax.f32 %v2531_v32, 0.0 }
 0x33c   : > { %v6387_v42 = vpack.c.bf16 %v2782_v19, %v2779_v35  ;;  %v2252_v11 = vpop.f32.mrb[140].mxu0 }
 0x33d   : > { %v2906_v52 = vpack.c.bf16 %v2759_v49, %v2756_v55  ;;  %v2253_v37 = vadd.f32 %v2252_v11, %v6075_v60  ;;  %v2254_v63 = vpop.f32.mrb[141].mxu0 }
 0x33e   : > { %v2255_v3 = vadd.f32 %v2254_v63, %v6081_v27  ;;  %v2256_v53 = vpop.f32.mrb[142].mxu0  ;;  %v2535_v40 = vpop.f32.mrb[188].mxu1 }
 0x33f   : > { %v2257_v54 = vadd.f32 %v2256_v53, %v6075_v60  ;;  %v2536_v38 = vadd.f32 %v2535_v40, %v6172_v25  ;;  %v2258_v8 = vpop.f32.mrb[143].mxu0  ;;  %v2537_v6 = vpop.f32.mrb[189].mxu1  ;;  %4645 = vmatprep.mubr.bf16.mxu1 %v2906_v52  ;;  %v2784_v7 = vmax.f32 %v2253_v37, 0.0 }
 0x340   : > { %v2259_v21 = vadd.f32 %v2258_v8, %v6081_v27  ;;  %v2538_v24 = vpop.f32.mrb[190].mxu1  ;;  %v2785_v47 = vmax.f32 %v2255_v3, 0.0 }
 0x341   : > { %v2787_v4 = vmax.f32 %v2257_v54, 0.0  ;;  %v2539_v5 = vadd.f32 %v2538_v24, %v6172_v25  ;;  %v2540_v33 = vpop.f32.mrb[191].mxu1  ;;  %3295 = vmatmul.mubr.bf16.gmra.mrb[248].mxu0 %v6337_v17  ;;  %v2762_v61 = vmax.f32 %v2536_v38, 0.0 }
 0x342   : > { %v2788_v28 = vmax.f32 %v2259_v21, 0.0  ;;  %3302 = vmatprep.mubr.bf16.mxu0 %v6351_v29 }
 0x343   : > { %v6397_v0 = vpack.c.bf16 %v2787_v4, %v2784_v7  ;;  %v2765_v9 = vmax.f32 %v2539_v5, 0.0 }
 0x344   : > { %v6399_v56 = vpack.c.bf16 %v2788_v28, %v2785_v47  ;;  %v2262_v15 = vpop.f32.mrb[144].mxu0 }
 0x345   : > { %v2909_v12 = vpack.c.bf16 %v2765_v9, %v2762_v61  ;;  %v2263_v20 = vadd.f32 %v2262_v15, %v6075_v60  ;;  %v2264_v43 = vpop.f32.mrb[145].mxu0 }
 0x346   : > { %v2265_v2 = vadd.f32 %v2264_v43, %v6081_v27  ;;  %v2266_v34 = vpop.f32.mrb[146].mxu0  ;;  %v2543_v39 = vpop.f32.mrb[192].mxu1 }
 0x347   : > { %v2267_v17 = vadd.f32 %v2266_v34, %v6075_v60  ;;  %v2544_v14 = vadd.f32 %v2543_v39, %v6172_v25  ;;  %v2268_v29 = vpop.f32.mrb[147].mxu0  ;;  %v2545_v62 = vpop.f32.mrb[193].mxu1  ;;  %4646 = vmatmul.mubr.bf16.gmra.mrb[28].mxu1 %v2909_v12  ;;  %v2790_v30 = vmax.f32 %v2263_v20, 0.0 }
 0x348   : > { %v2269_v41 = vadd.f32 %v2268_v29, %v6081_v27  ;;  %v2546_v26 = vpop.f32.mrb[194].mxu1  ;;  %v2791_v58 = vmax.f32 %v2265_v2, 0.0 }
 0x349   : > { %v2793_v1 = vmax.f32 %v2267_v17, 0.0  ;;  %v2547_v36 = vadd.f32 %v2546_v26, %v6172_v25  ;;  %v2548_v31 = vpop.f32.mrb[195].mxu1  ;;  %3303 = vmatmul.mubr.bf16.gmra.mrb[252].mxu0 %v6349_v48  ;;  %v2768_v22 = vmax.f32 %v2544_v14, 0.0 }
 0x34a   : > { %v2794_v46 = vmax.f32 %v2269_v41, 0.0  ;;  %3310 = vmatprep.mubr.bf16.mxu0 %v6363_v23 }
 0x34b   : > { %v6409_v45 = vpack.c.bf16 %v2793_v1, %v2790_v30  ;;  %v2771_v18 = vmax.f32 %v2547_v36, 0.0 }
 0x34c   : > { %v6411_v59 = vpack.c.bf16 %v2794_v46, %v2791_v58  ;;  %v2272_v50 = vpop.f32.mrb[148].mxu0 }
 0x34d   : > { %v2912_v10 = vpack.c.bf16 %v2771_v18, %v2768_v22  ;;  %v2273_v32 = vadd.f32 %v2272_v50, %v6075_v60  ;;  %v2274_v57 = vpop.f32.mrb[149].mxu0 }
 0x34e   : > { %v2275_v35 = vadd.f32 %v2274_v57, %v6081_v27  ;;  %v2276_v19 = vpop.f32.mrb[150].mxu0  ;;  %v2551_v55 = vpop.f32.mrb[196].mxu1 }
 0x34f   : > { %v2277_v48 = vadd.f32 %v2276_v19, %v6075_v60  ;;  %v2552_v49 = vadd.f32 %v2551_v55, %v6172_v25  ;;  %v2278_v23 = vpop.f32.mrb[151].mxu0  ;;  %v2553_v11 = vpop.f32.mrb[197].mxu1  ;;  %4649 = vmatprep.mubr.bf16.mxu1 %v2912_v10  ;;  %v2796_v63 = vmax.f32 %v2273_v32, 0.0 }
 0x350   : > { %v2279_v52 = vadd.f32 %v2278_v23, %v6081_v27  ;;  %v2554_v37 = vpop.f32.mrb[198].mxu1  ;;  %v2797_v54 = vmax.f32 %v2275_v35, 0.0 }
 0x351   : > { %v2799_v3 = vmax.f32 %v2277_v48, 0.0  ;;  %v2555_v53 = vadd.f32 %v2554_v37, %v6172_v25  ;;  %v2556_v40 = vpop.f32.mrb[199].mxu1  ;;  %3311 = vmatmul.mubr.bf16.gmra.mrb[0].mxu0 %v6361_v13  ;;  %v2774_v6 = vmax.f32 %v2552_v49, 0.0 }
 0x352   : > { %v2800_v38 = vmax.f32 %v2279_v52, 0.0  ;;  %3318 = vmatprep.mubr.bf16.mxu0 %v6375_v51 }
 0x353   : > { %v6421_v8 = vpack.c.bf16 %v2799_v3, %v2796_v63  ;;  %v2777_v21 = vmax.f32 %v2555_v53, 0.0 }
 0x354   : > { %v6423_v24 = vpack.c.bf16 %v2800_v38, %v2797_v54  ;;  %v2282_v7 = vpop.f32.mrb[152].mxu0 }
 0x355   : > { %v2915_v4 = vpack.c.bf16 %v2777_v21, %v2774_v6  ;;  %v2283_v5 = vadd.f32 %v2282_v7, %v6075_v60  ;;  %v2284_v33 = vpop.f32.mrb[153].mxu0 }
 0x356   : > { %v2285_v47 = vadd.f32 %v2284_v33, %v6081_v27  ;;  %v2286_v28 = vpop.f32.mrb[154].mxu0  ;;  %v2559_v61 = vpop.f32.mrb[200].mxu1 }
 0x357   : > { %v2287_v13 = vadd.f32 %v2286_v28, %v6075_v60  ;;  %v2560_v9 = vadd.f32 %v2559_v61, %v6172_v25  ;;  %v2288_v51 = vpop.f32.mrb[155].mxu0  ;;  %v2561_v15 = vpop.f32.mrb[201].mxu1  ;;  %4650 = vmatmul.mubr.bf16.gmra.mrb[32].mxu1 %v2915_v4  ;;  %v2802_v43 = vmax.f32 %v2283_v5, 0.0 }
 0x358   : > { %v2289_v12 = vadd.f32 %v2288_v51, %v6081_v27  ;;  %v2562_v20 = vpop.f32.mrb[202].mxu1  ;;  %v2803_v17 = vmax.f32 %v2285_v47, 0.0 }
 0x359   : > { %v2805_v2 = vmax.f32 %v2287_v13, 0.0  ;;  %v2563_v34 = vadd.f32 %v2562_v20, %v6172_v25  ;;  %v2564_v39 = vpop.f32.mrb[203].mxu1  ;;  %3319 = vmatmul.mubr.bf16.gmra.mrb[4].mxu0 %v6373_v44  ;;  %v2780_v62 = vmax.f32 %v2560_v9, 0.0 }
 0x35a   : > { %v2806_v14 = vmax.f32 %v2289_v12, 0.0  ;;  %3326 = vmatprep.mubr.bf16.mxu0 %v6387_v42 }
 0x35b   : > { %v6433_v29 = vpack.c.bf16 %v2805_v2, %v2802_v43  ;;  %v2783_v41 = vmax.f32 %v2563_v34, 0.0 }
 0x35c   : > { %v6435_v26 = vpack.c.bf16 %v2806_v14, %v2803_v17  ;;  %v2292_v30 = vpop.f32.mrb[156].mxu0 }
 0x35d   : > { %v2918_v1 = vpack.c.bf16 %v2783_v41, %v2780_v62  ;;  %v2293_v36 = vadd.f32 %v2292_v30, %v6075_v60  ;;  %v2294_v31 = vpop.f32.mrb[157].mxu0 }
 0x35e   : > { %v2295_v58 = vadd.f32 %v2294_v31, %v6081_v27  ;;  %v2296_v46 = vpop.f32.mrb[158].mxu0  ;;  %v2567_v22 = vpop.f32.mrb[204].mxu1 }
 0x35f   : > { %v2297_v44 = vadd.f32 %v2296_v46, %v6075_v60  ;;  %v2568_v18 = vadd.f32 %v2567_v22, %v6172_v25  ;;  %v2298_v42 = vpop.f32.mrb[159].mxu0  ;;  %v2569_v50 = vpop.f32.mrb[205].mxu1  ;;  %4653 = vmatprep.mubr.bf16.mxu1 %v2918_v1  ;;  %v2808_v57 = vmax.f32 %v2293_v36, 0.0 }
 0x360   : > { %v2299_v10 = vadd.f32 %v2298_v42, %v6081_v27  ;;  %v2570_v32 = vpop.f32.mrb[206].mxu1  ;;  %v2809_v48 = vmax.f32 %v2295_v58, 0.0 }
 0x361   : > { %v2811_v35 = vmax.f32 %v2297_v44, 0.0  ;;  %v2571_v19 = vadd.f32 %v2570_v32, %v6172_v25  ;;  %v2572_v55 = vpop.f32.mrb[207].mxu1  ;;  %3327 = vmatmul.mubr.bf16.gmra.mrb[8].mxu0 %v6385_v16  ;;  %v2786_v11 = vmax.f32 %v2568_v18, 0.0 }
 0x362   : > { %v2812_v49 = vmax.f32 %v2299_v10, 0.0  ;;  %3334 = vmatprep.mubr.bf16.mxu0 %v6399_v56 }
 0x363   : > { %v6445_v23 = vpack.c.bf16 %v2811_v35, %v2808_v57  ;;  %v2789_v52 = vmax.f32 %v2571_v19, 0.0 }
 0x364   : > { %v6447_v37 = vpack.c.bf16 %v2812_v49, %v2809_v48  ;;  %v2302_v63 = vpop.f32.mrb[160].mxu0 }
 0x365   : > { %v2921_v3 = vpack.c.bf16 %v2789_v52, %v2786_v11  ;;  %v2303_v53 = vadd.f32 %v2302_v63, %v6075_v60  ;;  %v2304_v40 = vpop.f32.mrb[161].mxu0 }
 0x366   : > { %v2305_v54 = vadd.f32 %v2304_v40, %v6081_v27  ;;  %v2306_v38 = vpop.f32.mrb[162].mxu0  ;;  %v2575_v6 = vpop.f32.mrb[208].mxu1 }
 0x367   : > { %v2307_v16 = vadd.f32 %v2306_v38, %v6075_v60  ;;  %v2576_v21 = vadd.f32 %v2575_v6, %v6172_v25  ;;  %v2308_v56 = vpop.f32.mrb[163].mxu0  ;;  %v2577_v7 = vpop.f32.mrb[209].mxu1  ;;  %4654 = vmatmul.mubr.bf16.gmra.mrb[36].mxu1 %v2921_v3  ;;  %v2814_v33 = vmax.f32 %v2303_v53, 0.0 }
 0x368   : > { %v2309_v4 = vadd.f32 %v2308_v56, %v6081_v27  ;;  %v2578_v5 = vpop.f32.mrb[210].mxu1  ;;  %v2815_v13 = vmax.f32 %v2305_v54, 0.0 }
 0x369   : > { %v2817_v47 = vmax.f32 %v2307_v16, 0.0  ;;  %v2579_v28 = vadd.f32 %v2578_v5, %v6172_v25  ;;  %v2580_v61 = vpop.f32.mrb[211].mxu1  ;;  %3335 = vmatmul.mubr.bf16.gmra.mrb[12].mxu0 %v6397_v0  ;;  %v2792_v15 = vmax.f32 %v2576_v21, 0.0 }
 0x36a   : > { %v2818_v9 = vmax.f32 %v2309_v4, 0.0  ;;  %3342 = vmatprep.mubr.bf16.mxu0 %v6411_v59 }
 0x36b   : > { %v6457_v51 = vpack.c.bf16 %v2817_v47, %v2814_v33  ;;  %v2795_v12 = vmax.f32 %v2579_v28, 0.0 }
 0x36c   : > { %v6459_v20 = vpack.c.bf16 %v2818_v9, %v2815_v13  ;;  %v2312_v43 = vpop.f32.mrb[164].mxu0 }
 0x36d   : > { %v2924_v2 = vpack.c.bf16 %v2795_v12, %v2792_v15  ;;  %v2313_v34 = vadd.f32 %v2312_v43, %v6075_v60  ;;  %v2314_v39 = vpop.f32.mrb[165].mxu0 }
 0x36e   : > { %v2315_v17 = vadd.f32 %v2314_v39, %v6081_v27  ;;  %v2316_v14 = vpop.f32.mrb[166].mxu0  ;;  %v2583_v62 = vpop.f32.mrb[212].mxu1 }
 0x36f   : > { %v2317_v0 = vadd.f32 %v2316_v14, %v6075_v60  ;;  %v2584_v41 = vadd.f32 %v2583_v62, %v6172_v25  ;;  %v2318_v59 = vpop.f32.mrb[167].mxu0  ;;  %v2585_v30 = vpop.f32.mrb[213].mxu1  ;;  %4657 = vmatprep.mubr.bf16.mxu1 %v2924_v2  ;;  %v2820_v31 = vmax.f32 %v2313_v34, 0.0 }
 0x370   : > { %v2319_v1 = vadd.f32 %v2318_v59, %v6081_v27  ;;  %v2586_v36 = vpop.f32.mrb[214].mxu1  ;;  %v2821_v44 = vmax.f32 %v2315_v17, 0.0 }
 0x371   : > { %v2823_v58 = vmax.f32 %v2317_v0, 0.0  ;;  %v2587_v46 = vadd.f32 %v2586_v36, %v6172_v25  ;;  %v2588_v22 = vpop.f32.mrb[215].mxu1  ;;  %3343 = vmatmul.mubr.bf16.gmra.mrb[16].mxu0 %v6409_v45  ;;  %v2798_v50 = vmax.f32 %v2584_v41, 0.0 }
 0x372   : > { %v2824_v18 = vmax.f32 %v2319_v1, 0.0  ;;  %3350 = vmatprep.mubr.bf16.mxu0 %v6423_v24 }
 0x373   : > { %v6469_v42 = vpack.c.bf16 %v2823_v58, %v2820_v31  ;;  %v2801_v10 = vmax.f32 %v2587_v46, 0.0 }
 0x374   : > { %v6471_v32 = vpack.c.bf16 %v2824_v18, %v2821_v44  ;;  %v2322_v57 = vpop.f32.mrb[168].mxu0 }
 0x375   : > { %v2927_v35 = vpack.c.bf16 %v2801_v10, %v2798_v50  ;;  %v2323_v19 = vadd.f32 %v2322_v57, %v6075_v60  ;;  %v2324_v55 = vpop.f32.mrb[169].mxu0 }
 0x376   : > { %v2325_v48 = vadd.f32 %v2324_v55, %v6081_v27  ;;  %v2326_v49 = vpop.f32.mrb[170].mxu0  ;;  %v2591_v11 = vpop.f32.mrb[216].mxu1 }
 0x377   : > { %v2327_v45 = vadd.f32 %v2326_v49, %v6075_v60  ;;  %v2592_v52 = vadd.f32 %v2591_v11, %v6172_v25  ;;  %v2328_v24 = vpop.f32.mrb[171].mxu0  ;;  %v2593_v63 = vpop.f32.mrb[217].mxu1  ;;  %4658 = vmatmul.mubr.bf16.gmra.mrb[40].mxu1 %v2927_v35  ;;  %v2826_v40 = vmax.f32 %v2323_v19, 0.0 }
 0x378   : > { %v2329_v3 = vadd.f32 %v2328_v24, %v6081_v27  ;;  %v2594_v53 = vpop.f32.mrb[218].mxu1  ;;  %v2827_v16 = vmax.f32 %v2325_v48, 0.0 }
 0x379   : > { %v2829_v54 = vmax.f32 %v2327_v45, 0.0  ;;  %v2595_v38 = vadd.f32 %v2594_v53, %v6172_v25  ;;  %v2596_v6 = vpop.f32.mrb[219].mxu1  ;;  %3351 = vmatmul.mubr.bf16.gmra.mrb[20].mxu0 %v6421_v8  ;;  %v2804_v7 = vmax.f32 %v2592_v52, 0.0 }
 0x37a   : > { %v2830_v21 = vmax.f32 %v2329_v3, 0.0  ;;  %3358 = vmatprep.mubr.bf16.mxu0 %v6435_v26 }
 0x37b   : > { %v6481_v56 = vpack.c.bf16 %v2829_v54, %v2826_v40  ;;  %v2807_v4 = vmax.f32 %v2595_v38, 0.0 }
 0x37c   : > { %v6483_v5 = vpack.c.bf16 %v2830_v21, %v2827_v16  ;;  %v2332_v33 = vpop.f32.mrb[172].mxu0 }
 0x37d   : > { %v2930_v47 = vpack.c.bf16 %v2807_v4, %v2804_v7  ;;  %v2333_v28 = vadd.f32 %v2332_v33, %v6075_v60  ;;  %v2334_v61 = vpop.f32.mrb[173].mxu0 }
 0x37e   : > { %v2335_v13 = vadd.f32 %v2334_v61, %v6081_v27  ;;  %v2336_v9 = vpop.f32.mrb[174].mxu0  ;;  %v2599_v15 = vpop.f32.mrb[220].mxu1 }
 0x37f   : > { %v2337_v8 = vadd.f32 %v2336_v9, %v6075_v60  ;;  %v2600_v12 = vadd.f32 %v2599_v15, %v6172_v25  ;;  %v2338_v26 = vpop.f32.mrb[175].mxu0  ;;  %v2601_v43 = vpop.f32.mrb[221].mxu1  ;;  %4661 = vmatprep.mubr.bf16.mxu1 %v2930_v47  ;;  %v2832_v39 = vmax.f32 %v2333_v28, 0.0 }
 0x380   : > { %v2339_v2 = vadd.f32 %v2338_v26, %v6081_v27  ;;  %v2602_v34 = vpop.f32.mrb[222].mxu1  ;;  %v2833_v0 = vmax.f32 %v2335_v13, 0.0 }
 0x381   : > { %v2835_v17 = vmax.f32 %v2337_v8, 0.0  ;;  %v2603_v14 = vadd.f32 %v2602_v34, %v6172_v25  ;;  %v2604_v62 = vpop.f32.mrb[223].mxu1  ;;  %3359 = vmatmul.mubr.bf16.gmra.mrb[24].mxu0 %v6433_v29  ;;  %v2810_v30 = vmax.f32 %v2600_v12, 0.0 }
 0x382   : > { %v2836_v41 = vmax.f32 %v2339_v2, 0.0  ;;  %3366 = vmatprep.mubr.bf16.mxu0 %v6447_v37 }
 0x383   : > { %v6493_v59 = vpack.c.bf16 %v2835_v17, %v2832_v39  ;;  %v2813_v1 = vmax.f32 %v2603_v14, 0.0 }
 0x384   : > { %v6495_v36 = vpack.c.bf16 %v2836_v41, %v2833_v0  ;;  %v2342_v31 = vpop.f32.mrb[176].mxu0 }
 0x385   : > { %v2933_v58 = vpack.c.bf16 %v2813_v1, %v2810_v30  ;;  %v2343_v46 = vadd.f32 %v2342_v31, %v6075_v60  ;;  %v2344_v22 = vpop.f32.mrb[177].mxu0 }
 0x386   : > { %v2345_v44 = vadd.f32 %v2344_v22, %v6081_v27  ;;  %v2346_v18 = vpop.f32.mrb[178].mxu0  ;;  %v2607_v50 = vpop.f32.mrb[224].mxu1 }
 0x387   : > { %v2347_v29 = vadd.f32 %v2346_v18, %v6075_v60  ;;  %v2608_v10 = vadd.f32 %v2607_v50, %v6172_v25  ;;  %v2348_v37 = vpop.f32.mrb[179].mxu0  ;;  %v2609_v57 = vpop.f32.mrb[225].mxu1  ;;  %4662 = vmatmul.mubr.bf16.gmra.mrb[44].mxu1 %v2933_v58  ;;  %v2838_v55 = vmax.f32 %v2343_v46, 0.0 }
 0x388   : > { %v2349_v35 = vadd.f32 %v2348_v37, %v6081_v27  ;;  %v2610_v19 = vpop.f32.mrb[226].mxu1  ;;  %v2839_v45 = vmax.f32 %v2345_v44, 0.0 }
 0x389   : > { %v2841_v48 = vmax.f32 %v2347_v29, 0.0  ;;  %v2611_v49 = vadd.f32 %v2610_v19, %v6172_v25  ;;  %v2612_v11 = vpop.f32.mrb[227].mxu1  ;;  %3367 = vmatmul.mubr.bf16.gmra.mrb[28].mxu0 %v6445_v23  ;;  %v2816_v63 = vmax.f32 %v2608_v10, 0.0 }
 0x38a   : > { %v2842_v52 = vmax.f32 %v2349_v35, 0.0  ;;  %3374 = vmatprep.mubr.bf16.mxu0 %v6459_v20 }
 0x38b   : > { %v6505_v24 = vpack.c.bf16 %v2841_v48, %v2838_v55  ;;  %v2819_v3 = vmax.f32 %v2611_v49, 0.0 }
 0x38c   : > { %v6507_v53 = vpack.c.bf16 %v2842_v52, %v2839_v45  ;;  %v2352_v40 = vpop.f32.mrb[180].mxu0 }
 0x38d   : > { %v2936_v54 = vpack.c.bf16 %v2819_v3, %v2816_v63  ;;  %v2353_v38 = vadd.f32 %v2352_v40, %v6075_v60  ;;  %v2354_v6 = vpop.f32.mrb[181].mxu0 }
 0x38e   : > { %v2355_v16 = vadd.f32 %v2354_v6, %v6081_v27  ;;  %v2356_v21 = vpop.f32.mrb[182].mxu0  ;;  %v2615_v7 = vpop.f32.mrb[228].mxu1 }
 0x38f   : > { %v2357_v23 = vadd.f32 %v2356_v21, %v6075_v60  ;;  %v2616_v4 = vadd.f32 %v2615_v7, %v6172_v25  ;;  %v2358_v20 = vpop.f32.mrb[183].mxu0  ;;  %v2617_v33 = vpop.f32.mrb[229].mxu1  ;;  %4665 = vmatprep.mubr.bf16.mxu1 %v2936_v54  ;;  %v2844_v61 = vmax.f32 %v2353_v38, 0.0 }
 0x390   : > { %v2359_v47 = vadd.f32 %v2358_v20, %v6081_v27  ;;  %v2618_v28 = vpop.f32.mrb[230].mxu1  ;;  %v2845_v8 = vmax.f32 %v2355_v16, 0.0 }
 0x391   : > { %v2847_v13 = vmax.f32 %v2357_v23, 0.0  ;;  %v2619_v9 = vadd.f32 %v2618_v28, %v6172_v25  ;;  %v2620_v15 = vpop.f32.mrb[231].mxu1  ;;  %3375 = vmatmul.mubr.bf16.gmra.mrb[32].mxu0 %v6457_v51  ;;  %v2822_v43 = vmax.f32 %v2616_v4, 0.0 }
 0x392   : > { %v2848_v12 = vmax.f32 %v2359_v47, 0.0  ;;  %3382 = vmatprep.mubr.bf16.mxu0 %v6471_v32 }
 0x393   : > { %v6517_v26 = vpack.c.bf16 %v2847_v13, %v2844_v61  ;;  %v2825_v2 = vmax.f32 %v2619_v9, 0.0 }
 0x394   : > { %v6519_v34 = vpack.c.bf16 %v2848_v12, %v2845_v8  ;;  %v2362_v39 = vpop.f32.mrb[184].mxu0 }
 0x395   : > { %v2939_v17 = vpack.c.bf16 %v2825_v2, %v2822_v43  ;;  %v2363_v14 = vadd.f32 %v2362_v39, %v6075_v60  ;;  %v2364_v62 = vpop.f32.mrb[185].mxu0 }
 0x396   : > { %v2365_v0 = vadd.f32 %v2364_v62, %v6081_v27  ;;  %v2366_v41 = vpop.f32.mrb[186].mxu0  ;;  %v2623_v30 = vpop.f32.mrb[232].mxu1 }
 0x397   : > { %v2367_v51 = vadd.f32 %v2366_v41, %v6075_v60  ;;  %v2624_v1 = vadd.f32 %v2623_v30, %v6172_v25  ;;  %v2368_v32 = vpop.f32.mrb[187].mxu0  ;;  %v2625_v31 = vpop.f32.mrb[233].mxu1  ;;  %4666 = vmatmul.mubr.bf16.gmra.mrb[48].mxu1 %v2939_v17  ;;  %v2850_v22 = vmax.f32 %v2363_v14, 0.0 }
 0x398   : > { %v2369_v58 = vadd.f32 %v2368_v32, %v6081_v27  ;;  %v2626_v46 = vpop.f32.mrb[234].mxu1  ;;  %v2851_v29 = vmax.f32 %v2365_v0, 0.0 }
 0x399   : > { %v2853_v44 = vmax.f32 %v2367_v51, 0.0  ;;  %v2627_v18 = vadd.f32 %v2626_v46, %v6172_v25  ;;  %v2628_v50 = vpop.f32.mrb[235].mxu1  ;;  %3383 = vmatmul.mubr.bf16.gmra.mrb[36].mxu0 %v6469_v42  ;;  %v2828_v57 = vmax.f32 %v2624_v1, 0.0 }
 0x39a   : > { %v2854_v10 = vmax.f32 %v2369_v58, 0.0  ;;  %3390 = vmatprep.mubr.bf16.mxu0 %v6483_v5 }
 0x39b   : > { %v6529_v37 = vpack.c.bf16 %v2853_v44, %v2850_v22  ;;  %v2831_v35 = vmax.f32 %v2627_v18, 0.0 }
 0x39c   : > { %v6531_v19 = vpack.c.bf16 %v2854_v10, %v2851_v29  ;;  %v2372_v55 = vpop.f32.mrb[188].mxu0 }
 0x39d   : > { %v2942_v48 = vpack.c.bf16 %v2831_v35, %v2828_v57  ;;  %v2373_v49 = vadd.f32 %v2372_v55, %v6075_v60  ;;  %v2374_v11 = vpop.f32.mrb[189].mxu0 }
 0x39e   : > { %v2375_v45 = vadd.f32 %v2374_v11, %v6081_v27  ;;  %v2376_v52 = vpop.f32.mrb[190].mxu0  ;;  %v2631_v63 = vpop.f32.mrb[236].mxu1 }
 0x39f   : > { %v2377_v42 = vadd.f32 %v2376_v52, %v6075_v60  ;;  %v2632_v3 = vadd.f32 %v2631_v63, %v6172_v25  ;;  %v2378_v5 = vpop.f32.mrb[191].mxu0  ;;  %v2633_v40 = vpop.f32.mrb[237].mxu1  ;;  %4669 = vmatprep.mubr.bf16.mxu1 %v2942_v48  ;;  %v2856_v6 = vmax.f32 %v2373_v49, 0.0 }
 0x3a0   : > { %v2379_v54 = vadd.f32 %v2378_v5, %v6081_v27  ;;  %v2634_v38 = vpop.f32.mrb[238].mxu1  ;;  %v2857_v23 = vmax.f32 %v2375_v45, 0.0 }
 0x3a1   : > { %v2859_v16 = vmax.f32 %v2377_v42, 0.0  ;;  %v2635_v21 = vadd.f32 %v2634_v38, %v6172_v25  ;;  %v2636_v7 = vpop.f32.mrb[239].mxu1  ;;  %3391 = vmatmul.mubr.bf16.gmra.mrb[40].mxu0 %v6481_v56  ;;  %v2834_v20 = vmax.f32 %v2632_v3, 0.0 }
 0x3a2   : > { %v2860_v4 = vmax.f32 %v2379_v54, 0.0  ;;  %3398 = vmatprep.mubr.bf16.mxu0 %v6495_v36 }
 0x3a3   : > { %v6541_v60 = vpack.c.bf16 %v2859_v16, %v2856_v6  ;;  %v2837_v33 = vmax.f32 %v2635_v21, 0.0 }
 0x3a4   : > { %v2956_v47 = vpack.c.bf16 %v2860_v4, %v2857_v23  ;;  %v6543_v28 = vpop.f32.mrb[192].mxu0  ;;  %v6570_v4 = vld [vmem:[#allocation2] ss:$0 sm:$0xff] }
 0x3a5   : > { %v2945_v27 = vpack.c.bf16 %v2837_v33, %v2834_v20  ;;  %v3186_v61 = vpop.f32.mrb[193].mxu0 }
 0x3a6   : > { %v2639_v13 = vpop.f32.mrb[240].mxu1  ;;  %v6545_v9 = vpop.f32.mrb[194].mxu0 }
 0x3a7   : > { %v2640_v15 = vadd.f32 %v2639_v13, %v6172_v25  ;;  %v2641_v8 = vpop.f32.mrb[241].mxu1  ;;  %v3189_v56 = vpop.f32.mrb[195].mxu0  ;;  %4670 = vmatmul.mubr.bf16.gmra.mrb[52].mxu1 %v2945_v27 }
 0x3a8   : > { %v2642_v12 = vpop.f32.mrb[242].mxu1 }
 0x3a9   : > { %v2643_v36 = vadd.f32 %v2642_v12, %v6172_v25  ;;  %v2644_v43 = vpop.f32.mrb[243].mxu1  ;;  %3399 = vmatmul.mubr.bf16.gmra.mrb[44].mxu0 %v6493_v59  ;;  %v2840_v2 = vmax.f32 %v2640_v15, 0.0 }
 0x3aa   : > { %3406 = vmatprep.mubr.bf16.mxu0 %v6507_v53 }
 0x3ab   : > { %v2843_v39 = vmax.f32 %v2643_v36, 0.0 }
 0x3ac   : > { %v3192_v17 = vpop.f32.mrb[196].mxu0 }
 0x3ad   : > { %v2948_v14 = vpack.c.bf16 %v2843_v39, %v2840_v2  ;;  %v3194_v62 = vpop.f32.mrb[197].mxu0 }
 0x3ae   : > { %v2647_v0 = vpop.f32.mrb[244].mxu1  ;;  %v3195_v41 = vpop.f32.mrb[198].mxu0 }
 0x3af   : > { %v2648_v30 = vadd.f32 %v2647_v0, %v6172_v25  ;;  %v2649_v51 = vpop.f32.mrb[245].mxu1  ;;  %v3197_v1 = vpop.f32.mrb[199].mxu0  ;;  %4673 = vmatprep.mubr.bf16.mxu1 %v2948_v14 }
 0x3b0   : > { %v2650_v32 = vpop.f32.mrb[246].mxu1 }
 0x3b1   : > { %v2651_v31 = vadd.f32 %v2650_v32, %v6172_v25  ;;  %v2652_v58 = vpop.f32.mrb[247].mxu1  ;;  %3407 = vmatmul.mubr.bf16.gmra.mrb[48].mxu0 %v6505_v24  ;;  %v2846_v59 = vmax.f32 %v2648_v30, 0.0 }
 0x3b2   : > { %3414 = vmatprep.mubr.bf16.mxu0 %v6519_v34 }
 0x3b3   : > { %v2849_v53 = vmax.f32 %v2651_v31, 0.0 }
 0x3b4   : > { %v6555_v46 = vpop.f32.mrb[200].mxu0 }
 0x3b5   : > { %v2951_v22 = vpack.c.bf16 %v2849_v53, %v2846_v59  ;;  %v3202_v44 = vpop.f32.mrb[201].mxu0 }
 0x3b6   : > { %v2655_v18 = vpop.f32.mrb[248].mxu1  ;;  %v6557_v50 = vpop.f32.mrb[202].mxu0 }
 0x3b7   : > { %v2656_v29 = vadd.f32 %v2655_v18, %v6172_v25  ;;  %v2657_v10 = vpop.f32.mrb[249].mxu1  ;;  %v3205_v57 = vpop.f32.mrb[203].mxu0  ;;  %4674 = vmatmul.mubr.bf16.gmra.mrb[56].mxu1 %v2951_v22 }
 0x3b8   : > { %v2658_v35 = vpop.f32.mrb[250].mxu1 }
 0x3b9   : > { %v2659_v55 = vadd.f32 %v2658_v35, %v6172_v25  ;;  %v2660_v24 = vpop.f32.mrb[251].mxu1  ;;  %3415 = vmatmul.mubr.bf16.gmra.mrb[52].mxu0 %v6517_v26  ;;  %v2852_v34 = vmax.f32 %v2656_v29, 0.0 }
 0x3ba   : > { %3422 = vmatprep.mubr.bf16.mxu0 %v6531_v19 }
 0x3bb   : > { %v2855_v48 = vmax.f32 %v2659_v55, 0.0 }
 0x3bc   : > { %v3208_v49 = vpop.f32.mrb[204].mxu0 }
 0x3bd   : > { %v2954_v11 = vpack.c.bf16 %v2855_v48, %v2852_v34  ;;  %v3210_v45 = vpop.f32.mrb[205].mxu0 }
 0x3be   : > { %v2663_v52 = vpop.f32.mrb[252].mxu1  ;;  %v3211_v63 = vpop.f32.mrb[206].mxu0 }
 0x3bf   : > { %v2664_v42 = vadd.f32 %v2663_v52, %v6172_v25  ;;  %v2665_v3 = vpop.f32.mrb[253].mxu1  ;;  %v3213_v5 = vpop.f32.mrb[207].mxu0  ;;  %4677 = vmatprep.mubr.bf16.mxu1 %v2954_v11 }
 0x3c0   : > { %v2666_v40 = vpop.f32.mrb[254].mxu1 }
 0x3c1   : > { %v2667_v54 = vadd.f32 %v2666_v40, %v6172_v25  ;;  %v2668_v38 = vpop.f32.mrb[255].mxu1  ;;  %3423 = vmatmul.mubr.bf16.gmra.mrb[56].mxu0 %v6529_v37  ;;  %v2858_v26 = vmax.f32 %v2664_v42, 0.0 }
 0x3c2   : > { %3430 = vmatprep.mubr.bf16.mxu0 %v2956_v47 }
 0x3c3   : > { %v2861_v19 = vmax.f32 %v2667_v54, 0.0 }
 0x3c4   : > { %v6566_v6 = vpop.f32.mrb[208].mxu0 }
 0x3c5   : > { %v2957_v16 = vpack.c.bf16 %v2861_v19, %v2858_v26  ;;  %v3218_v21 = vpop.f32.mrb[209].mxu0 }
 0x3c6   : > { %v6568_v7 = vpop.f32.mrb[210].mxu0  ;;  %v4619_v23 = vpop.f32.mrb[0].mxu1 }
 0x3c7   : > { %v3482_v20 = vadd.f32 %v4619_v23, %v3192_v17  ;;  %v3221_v33 = vpop.f32.mrb[211].mxu0  ;;  %v3473_v27 = vpop.f32.mrb[1].mxu1  ;;  %4678 = vmatmul.mubr.bf16.gmra.mrb[60].mxu1 %v2957_v16 }
 0x3c8   : > { %v3474_v25 = vadd.f32 %v3473_v27, %v6543_v28  ;;  %v4620_v61 = vpop.f32.mrb[2].mxu1 }
 0x3c9   : > { %v3737_v37 = vadd.f32 %v6570_v4, %v3482_v20  ;;  %v3485_v47 = vadd.f32 %v4620_v61, %v3195_v41  ;;  %3431 = vmatmul.mubr.bf16.gmra.mrb[60].mxu0 %v6541_v60  ;;  %v3476_v13 = vpop.f32.mrb[3].mxu1 }
 0x3ca   : > { %v3735_v15 = vadd.f32 %v6570_v4, %v3474_v25  ;;  %v3477_v8 = vadd.f32 %v3476_v13, %v6545_v9 }
 0x3cb   : > { %v3801_v56 = vsub.f32 0.0, %v3737_v37  ;;  %v3738_v12 = vadd.f32 %v6570_v4, %v3485_v47 }
 0x3cc   : > { %v3799_v36 = vsub.f32 0.0, %v3735_v15  ;;  %v3736_v43 = vadd.f32 %v6570_v4, %v3477_v8  ;;  %v3224_v2 = vpop.f32.mrb[212].mxu0 }
 0x3cd   : > { %v3867_v39 = vmul.f32 1.442695, %v3801_v56  ;;  %v3802_v28 = vsub.f32 0.0, %v3738_v12  ;;  %v3226_v17 = vpop.f32.mrb[213].mxu0 }
 0x3ce   : > { %v3863_v14 = vmul.f32 1.442695, %v3799_v36  ;;  %v3800_v62 = vsub.f32 0.0, %v3736_v43  ;;  %v3227_v0 = vpop.f32.mrb[214].mxu0  ;;  %v4623_v41 = vpop.f32.mrb[4].mxu1 }
 0x3cf   : > { %4783 = vpow2.f32 %v3867_v39  ;;  %v3869_v60 = vmul.f32 1.442695, %v3802_v28  ;;  %v3498_v30 = vadd.f32 %v4623_v41, %v3208_v49  ;;  %v3229_v51 = vpop.f32.mrb[215].mxu0  ;;  %v3489_v1 = vpop.f32.mrb[5].mxu1 }
 0x3d0   : > { %4785 = vpow2.f32 %v3863_v14  ;;  %v3865_v9 = vmul.f32 1.442695, %v3800_v62  ;;  %v3490_v32 = vadd.f32 %v3489_v1, %v6555_v46  ;;  %v4624_v31 = vpop.f32.mrb[6].mxu1 }
 0x3d1   : > { %4787 = vpow2.f32 %v3869_v60  ;;  %v3741_v58 = vadd.f32 %v6570_v4, %v3498_v30  ;;  %v3501_v59 = vadd.f32 %v4624_v31, %v3211_v63  ;;  %v3492_v53 = vpop.f32.mrb[7].mxu1 }
 0x3d2   : > { %4789 = vpow2.f32 %v3865_v9  ;;  %v3739_v22 = vadd.f32 %v6570_v4, %v3490_v32  ;;  %v3493_v44 = vadd.f32 %v3492_v53, %v6557_v50 }
 0x3d3   : > { %v3805_v18 = vsub.f32 0.0, %v3741_v58  ;;  %v3742_v29 = vadd.f32 %v6570_v4, %v3501_v59 }
 0x3d4   : > { %v3803_v10 = vsub.f32 0.0, %v3739_v22  ;;  %v3740_v57 = vadd.f32 %v6570_v4, %v3493_v44  ;;  %v3232_v35 = vpop.f32.mrb[216].mxu0 }
 0x3d5   : > { %v3875_v55 = vmul.f32 1.442695, %v3805_v18  ;;  %v3806_v46 = vsub.f32 0.0, %v3742_v29  ;;  %v3234_v24 = vpop.f32.mrb[217].mxu0 }
 0x3d6   : > { %v3871_v34 = vmul.f32 1.442695, %v3803_v10  ;;  %v3804_v48 = vsub.f32 0.0, %v3740_v57  ;;  %v3235_v49 = vpop.f32.mrb[218].mxu0  ;;  %v4627_v11 = vpop.f32.mrb[8].mxu1 }
 0x3d7   : > { %4791 = vpow2.f32 %v3875_v55  ;;  %v3877_v45 = vmul.f32 1.442695, %v3806_v46  ;;  %v3514_v52 = vadd.f32 %v4627_v11, %v3224_v2  ;;  %v3237_v63 = vpop.f32.mrb[219].mxu0  ;;  %v3505_v42 = vpop.f32.mrb[9].mxu1 }
 0x3d8   : > { %4793 = vpow2.f32 %v3871_v34  ;;  %v3873_v50 = vmul.f32 1.442695, %v3804_v48  ;;  %v3506_v3 = vadd.f32 %v3505_v42, %v6566_v6  ;;  %v4628_v5 = vpop.f32.mrb[10].mxu1 }
 0x3d9   : > { %v4784_v40 = vpop.eup %4783  ;;  %4795 = vpow2.f32 %v3877_v45  ;;  %v3745_v54 = vadd.f32 %v6570_v4, %v3514_v52  ;;  %v3517_v38 = vadd.f32 %v4628_v5, %v3227_v0  ;;  %v3508_v26 = vpop.f32.mrb[11].mxu1 }
 0x3da   : > { %v4786_v19 = vpop.eup %4785  ;;  %v3993_v16 = vadd.f32 1.0, %v4784_v40  ;;  %4797 = vpow2.f32 %v3873_v50  ;;  %v3743_v21 = vadd.f32 %v6570_v4, %v3506_v3  ;;  %v3509_v23 = vadd.f32 %v3508_v26, %v6568_v7 }
 0x3db   : > { %v4788_v20 = vpop.eup %4787  ;;  %v3991_v33 = vadd.f32 1.0, %v4786_v19  ;;  %v3809_v27 = vsub.f32 0.0, %v3745_v54  ;;  %v3746_v25 = vadd.f32 %v6570_v4, %v3517_v38 }
 0x3dc   : > { %v4790_v6 = vpop.eup %4789  ;;  %4799 = vrcp.f32 %v3993_v16  ;;  %v3994_v61 = vadd.f32 1.0, %v4788_v20  ;;  %v3807_v37 = vsub.f32 0.0, %v3743_v21  ;;  %v3744_v47 = vadd.f32 %v6570_v4, %v3509_v23  ;;  %v3240_v13 = vpop.f32.mrb[220].mxu0 }
 0x3dd   : > { %4801 = vrcp.f32 %v3991_v33  ;;  %v3992_v15 = vadd.f32 1.0, %v4790_v6  ;;  %v3883_v8 = vmul.f32 1.442695, %v3809_v27  ;;  %v3810_v56 = vsub.f32 0.0, %v3746_v25  ;;  %v3242_v12 = vpop.f32.mrb[221].mxu0 }
 0x3de   : > { %4803 = vrcp.f32 %v3994_v61  ;;  %v3879_v36 = vmul.f32 1.442695, %v3807_v37  ;;  %v3808_v7 = vsub.f32 0.0, %v3744_v47  ;;  %v3243_v43 = vpop.f32.mrb[222].mxu0  ;;  %v4631_v2 = vpop.f32.mrb[12].mxu1 }
 0x3df   : > { %4805 = vrcp.f32 %v3992_v15  ;;  %v3885_v39 = vmul.f32 1.442695, %v3810_v56  ;;  %v3530_v28 = vadd.f32 %v4631_v2, %v3240_v13  ;;  %v3245_v17 = vpop.f32.mrb[223].mxu0  ;;  %v3521_v14 = vpop.f32.mrb[13].mxu1 }
 0x3e0   : > { %4807 = vpow2.f32 %v3883_v8  ;;  %v3881_v62 = vmul.f32 1.442695, %v3808_v7  ;;  %v3522_v0 = vadd.f32 %v3521_v14, %v3232_v35  ;;  %v4632_v41 = vpop.f32.mrb[14].mxu1 }
 0x3e1   : > { %v4792_v60 = vpop.eup %4791  ;;  %4809 = vpow2.f32 %v3879_v36  ;;  %v3749_v30 = vadd.f32 %v6570_v4, %v3530_v28  ;;  %v3533_v51 = vadd.f32 %v4632_v41, %v3243_v43  ;;  %v3524_v1 = vpop.f32.mrb[15].mxu1 }
 0x3e2   : > { %v4794_v9 = vpop.eup %4793  ;;  %v3997_v32 = vadd.f32 1.0, %v4792_v60  ;;  %4811 = vpow2.f32 %v3885_v39  ;;  %v3747_v31 = vadd.f32 %v6570_v4, %v3522_v0  ;;  %v3525_v58 = vadd.f32 %v3524_v1, %v3235_v49 }
 0x3e3   : > { %v4796_v59 = vpop.eup %4795  ;;  %v3995_v53 = vadd.f32 1.0, %v4794_v9  ;;  %4813 = vpow2.f32 %v3881_v62  ;;  %v3813_v22 = vsub.f32 0.0, %v3749_v30  ;;  %v3750_v44 = vadd.f32 %v6570_v4, %v3533_v51 }
 0x3e4   : > { %v4798_v18 = vpop.eup %4797  ;;  %4815 = vrcp.f32 %v3997_v32  ;;  %v3998_v29 = vadd.f32 1.0, %v4796_v59  ;;  %v3811_v10 = vsub.f32 0.0, %v3747_v31  ;;  %v3748_v57 = vadd.f32 %v6570_v4, %v3525_v58  ;;  %v3248_v35 = vpop.f32.mrb[224].mxu0 }
 0x3e5   : > { %4817 = vrcp.f32 %v3995_v53  ;;  %v3996_v55 = vadd.f32 1.0, %v4798_v18  ;;  %v3891_v46 = vmul.f32 1.442695, %v3813_v22  ;;  %v3814_v24 = vsub.f32 0.0, %v3750_v44  ;;  %v3250_v34 = vpop.f32.mrb[225].mxu0 }
 0x3e6   : > { %v4800_v48 = vpop.eup %4799  ;;  %4819 = vrcp.f32 %v3998_v29  ;;  %v3887_v49 = vmul.f32 1.442695, %v3811_v10  ;;  %v3812_v11 = vsub.f32 0.0, %v3748_v57  ;;  %v3251_v45 = vpop.f32.mrb[226].mxu0 }
 0x3e7   : > { %v4802_v52 = vpop.eup %4801  ;;  %4122 = vst.msk [vmem:[%s6599_s22 + $0x10] sm:$0xff] %vm4119_vm3, %v4800_v48  ;;  %4821 = vrcp.f32 %v3996_v55  ;;  %v3893_v63 = vmul.f32 1.442695, %v3814_v24  ;;  %v3253_v42 = vpop.f32.mrb[227].mxu0 }
 0x3e8   : > { %v4804_v50 = vpop.eup %4803  ;;  %4120 = vst.msk [vmem:[%s6599_s22] sm:$0xff] %vm4119_vm3, %v4802_v52  ;;  %4823 = vpow2.f32 %v3891_v46  ;;  %v3889_v3 = vmul.f32 1.442695, %v3812_v11 }
 0x3e9   : > { %v4806_v5 = vpop.eup %4805  ;;  %4123 = vst.msk [vmem:[%s6599_s22 + $0x18] sm:$0xff] %vm4119_vm3, %v4804_v50  ;;  %4825 = vpow2.f32 %v3887_v49 }
 0x3ea   : > { %v4808_v40 = vpop.eup %4807  ;;  %4121 = vst.msk [vmem:[%s6599_s22 + $0x8] sm:$0xff] %vm4119_vm3, %v4806_v5  ;;  %4827 = vpow2.f32 %v3893_v63  ;;  %v4635_v54 = vpop.f32.mrb[16].mxu1 }
 0x3eb   : > { %v4810_v38 = vpop.eup %4809  ;;  %v4001_v26 = vadd.f32 1.0, %v4808_v40  ;;  %4829 = vpow2.f32 %v3889_v3  ;;  %v3537_v19 = vpop.f32.mrb[17].mxu1 }
 0x3ec   : > { %v4812_v16 = vpop.eup %4811  ;;  %v3999_v21 = vadd.f32 1.0, %v4810_v38  ;;  %v3538_v23 = vadd.f32 %v3537_v19, %v3248_v35  ;;  %v3256_v20 = vpop.f32.mrb[228].mxu0 }
 0x3ed   : > { %v4636_v33 = vpop.f32.mrb[18].mxu1  ;;  %v4814_v27 = vpop.eup %4813  ;;  %4831 = vrcp.f32 %v4001_v26  ;;  %v4002_v25 = vadd.f32 1.0, %v4812_v16  ;;  %v3546_v6 = vadd.f32 %v4635_v54, %v3256_v20 }
 0x3ee   : > { %v3258_v61 = vpop.f32.mrb[229].mxu0  ;;  %v3540_v37 = vpop.f32.mrb[19].mxu1  ;;  %4833 = vrcp.f32 %v3999_v21  ;;  %v4000_v13 = vadd.f32 1.0, %v4814_v27  ;;  %v3751_v15 = vadd.f32 %v6570_v4, %v3538_v23 }
 0x3ef   : > { %v4816_v47 = vpop.eup %4815  ;;  %v3541_v8 = vadd.f32 %v3540_v37, %v3251_v45  ;;  %v3259_v56 = vpop.f32.mrb[230].mxu0  ;;  %4835 = vrcp.f32 %v4002_v25  ;;  %v3753_v36 = vadd.f32 %v6570_v4, %v3546_v6 }
 0x3f0   : > { %v4818_v12 = vpop.eup %4817  ;;  %4126 = vst.msk [vmem:[%s6599_s22 + $0x30] sm:$0xff] %vm4119_vm3, %v4816_v47  ;;  %v3549_v7 = vadd.f32 %v4636_v33, %v3259_v56  ;;  %v3261_v43 = vpop.f32.mrb[231].mxu0  ;;  %4837 = vrcp.f32 %v4000_v13  ;;  %v3815_v39 = vsub.f32 0.0, %v3751_v15 }
 0x3f1   : > { %v4820_v2 = vpop.eup %4819  ;;  %4124 = vst.msk [vmem:[%s6599_s22 + $0x20] sm:$0xff] %vm4119_vm3, %v4818_v12  ;;  %v3752_v28 = vadd.f32 %v6570_v4, %v3541_v8  ;;  %v3817_v14 = vsub.f32 0.0, %v3753_v36 }
 0x3f2   : > { %v4822_v17 = vpop.eup %4821  ;;  %4127 = vst.msk [vmem:[%s6599_s22 + $0x38] sm:$0xff] %vm4119_vm3, %v4820_v2  ;;  %v3754_v62 = vadd.f32 %v6570_v4, %v3549_v7  ;;  %v3895_v41 = vmul.f32 1.442695, %v3815_v39 }
 0x3f3   : > { %v4824_v0 = vpop.eup %4823  ;;  %4125 = vst.msk [vmem:[%s6599_s22 + $0x28] sm:$0xff] %vm4119_vm3, %v4822_v17  ;;  %v3816_v60 = vsub.f32 0.0, %v3752_v28  ;;  %v3899_v53 = vmul.f32 1.442695, %v3817_v14 }
 0x3f4   : > { %v4826_v30 = vpop.eup %4825  ;;  %v4005_v51 = vadd.f32 1.0, %v4824_v0  ;;  %v3818_v1 = vsub.f32 0.0, %v3754_v62  ;;  %4839 = vpow2.f32 %v3895_v41  ;;  %v3264_v31 = vpop.f32.mrb[232].mxu0 }
 0x3f5   : > { %v4828_v9 = vpop.eup %4827  ;;  %v4003_v32 = vadd.f32 1.0, %v4826_v30  ;;  %v3266_v22 = vpop.f32.mrb[233].mxu0  ;;  %v3897_v18 = vmul.f32 1.442695, %v3816_v60 }
 0x3f6   : > { %v4830_v58 = vpop.eup %4829  ;;  %4841 = vrcp.f32 %v4005_v51  ;;  %v4006_v59 = vadd.f32 1.0, %v4828_v9  ;;  %v3267_v29 = vpop.f32.mrb[234].mxu0  ;;  %v3901_v57 = vmul.f32 1.442695, %v3818_v1 }
 0x3f7   : > { %4843 = vrcp.f32 %v4003_v32  ;;  %v4004_v44 = vadd.f32 1.0, %v4830_v58  ;;  %v4832_v10 = vpop.eup %4831  ;;  %v3269_v35 = vpop.f32.mrb[235].mxu0 }
 0x3f8   : > { %4845 = vrcp.f32 %v4006_v59  ;;  %v4834_v55 = vpop.eup %4833  ;;  %4130 = vst.msk [vmem:[%s6599_s22 + $0x50] sm:$0xff] %vm4119_vm3, %v4832_v10 }
 0x3f9   : > { %4847 = vrcp.f32 %v4004_v44  ;;  %v4836_v46 = vpop.eup %4835  ;;  %4128 = vst.msk [vmem:[%s6599_s22 + $0x40] sm:$0xff] %vm4119_vm3, %v4834_v55 }
 0x3fa   : > { %4849 = vpow2.f32 %v3899_v53  ;;  %v4838_v24 = vpop.eup %4837  ;;  %4131 = vst.msk [vmem:[%s6599_s22 + $0x58] sm:$0xff] %vm4119_vm3, %v4836_v46  ;;  %v4639_v34 = vpop.f32.mrb[20].mxu1 }
 0x3fb   : > { %4851 = vpow2.f32 %v3897_v18  ;;  %4129 = vst.msk [vmem:[%s6599_s22 + $0x48] sm:$0xff] %vm4119_vm3, %v4838_v24  ;;  %v3553_v48 = vpop.f32.mrb[21].mxu1 }
 0x3fc   : > { %4853 = vpow2.f32 %v3901_v57  ;;  %v3554_v49 = vadd.f32 %v3553_v48, %v3264_v31  ;;  %v3272_v11 = vpop.f32.mrb[236].mxu0  ;;  %v4640_v45 = vpop.f32.mrb[22].mxu1 }
 0x3fd   : > { %v3562_v52 = vadd.f32 %v4639_v34, %v3272_v11  ;;  %v3274_v63 = vpop.f32.mrb[237].mxu0  ;;  %v3556_v42 = vpop.f32.mrb[23].mxu1 }
 0x3fe   : > { %v4840_v50 = vpop.eup %4839  ;;  %v3755_v3 = vadd.f32 %v6570_v4, %v3554_v49  ;;  %v3557_v5 = vadd.f32 %v3556_v42, %v3267_v29  ;;  %v3275_v40 = vpop.f32.mrb[238].mxu0 }
 0x3ff   : > { %v4007_v38 = vadd.f32 1.0, %v4840_v50  ;;  %v3757_v26 = vadd.f32 %v6570_v4, %v3562_v52  ;;  %v3565_v19 = vadd.f32 %v4640_v45, %v3275_v40  ;;  %v3277_v16 = vpop.f32.mrb[239].mxu0 }
 0x400   : > { %v4842_v54 = vpop.eup %4841  ;;  %v3819_v23 = vsub.f32 0.0, %v3755_v3  ;;  %v3756_v20 = vadd.f32 %v6570_v4, %v3557_v5 }
 0x401   : > { %v4844_v21 = vpop.eup %4843  ;;  %4134 = vst.msk [vmem:[%s6599_s22 + $0x70] sm:$0xff] %vm4119_vm3, %v4842_v54  ;;  %4855 = vrcp.f32 %v4007_v38  ;;  %v3821_v27 = vsub.f32 0.0, %v3757_v26  ;;  %v3758_v25 = vadd.f32 %v6570_v4, %v3565_v19 }
 0x402   : > { %v4846_v33 = vpop.eup %4845  ;;  %4132 = vst.msk [vmem:[%s6599_s22 + $0x60] sm:$0xff] %vm4119_vm3, %v4844_v21  ;;  %v3903_v61 = vmul.f32 1.442695, %v3819_v23  ;;  %v3820_v37 = vsub.f32 0.0, %v3756_v20 }
 0x403   : > { %v4848_v6 = vpop.eup %4847  ;;  %4135 = vst.msk [vmem:[%s6599_s22 + $0x78] sm:$0xff] %vm4119_vm3, %v4846_v33  ;;  %v3907_v13 = vmul.f32 1.442695, %v3821_v27  ;;  %v3822_v15 = vsub.f32 0.0, %v3758_v25 }
 0x404   : > { %v4850_v47 = vpop.eup %4849  ;;  %4133 = vst.msk [vmem:[%s6599_s22 + $0x68] sm:$0xff] %vm4119_vm3, %v4848_v6  ;;  %4857 = vpow2.f32 %v3903_v61  ;;  %v3280_v12 = vpop.f32.mrb[240].mxu0  ;;  %v3905_v43 = vmul.f32 1.442695, %v3820_v37 }
 0x405   : > { %v4852_v8 = vpop.eup %4851  ;;  %v4009_v56 = vadd.f32 1.0, %v4850_v47  ;;  %4859 = vpow2.f32 %v3907_v13  ;;  %v3282_v2 = vpop.f32.mrb[241].mxu0  ;;  %v3909_v28 = vmul.f32 1.442695, %v3822_v15 }
 0x406   : > { %v4854_v36 = vpop.eup %4853  ;;  %v4008_v7 = vadd.f32 1.0, %v4852_v8  ;;  %v3283_v17 = vpop.f32.mrb[242].mxu0 }
 0x407   : > { %4861 = vrcp.f32 %v4009_v56  ;;  %v4010_v39 = vadd.f32 1.0, %v4854_v36  ;;  %v3285_v14 = vpop.f32.mrb[243].mxu0 }
 0x408   : > { %4863 = vrcp.f32 %v4008_v7 }
 0x409   : > { %4865 = vrcp.f32 %v4010_v39 }
 0x40a   : > { %4867 = vpow2.f32 %v3905_v43  ;;  %v4643_v62 = vpop.f32.mrb[24].mxu1 }
 0x40b   : > { %4869 = vpow2.f32 %v3909_v28  ;;  %v4856_v0 = vpop.eup %4855  ;;  %v3569_v41 = vpop.f32.mrb[25].mxu1 }
 0x40c   : > { %4136 = vst.msk [vmem:[%s6599_s22 + $0x80] sm:$0xff] %vm4119_vm3, %v4856_v0  ;;  %v3570_v60 = vadd.f32 %v3569_v41, %v3280_v12  ;;  %v3288_v30 = vpop.f32.mrb[244].mxu0  ;;  %v4644_v51 = vpop.f32.mrb[26].mxu1 }
 0x40d   : > { %v3578_v1 = vadd.f32 %v4643_v62, %v3288_v30  ;;  %v3290_v9 = vpop.f32.mrb[245].mxu0  ;;  %v3572_v32 = vpop.f32.mrb[27].mxu1 }
 0x40e   : > { %v4858_v31 = vpop.eup %4857  ;;  %v3759_v58 = vadd.f32 %v6570_v4, %v3570_v60  ;;  %v3573_v59 = vadd.f32 %v3572_v32, %v3283_v17  ;;  %v3291_v53 = vpop.f32.mrb[246].mxu0 }
 0x40f   : > { %v4860_v22 = vpop.eup %4859  ;;  %v4011_v44 = vadd.f32 1.0, %v4858_v31  ;;  %v3761_v18 = vadd.f32 %v6570_v4, %v3578_v1  ;;  %v3581_v29 = vadd.f32 %v4644_v51, %v3291_v53  ;;  %v3293_v10 = vpop.f32.mrb[247].mxu0 }
 0x410   : > { %v4013_v35 = vadd.f32 1.0, %v4860_v22  ;;  %v3823_v55 = vsub.f32 0.0, %v3759_v58  ;;  %v3760_v46 = vadd.f32 %v6570_v4, %v3573_v59 }
 0x411   : > { %v4862_v57 = vpop.eup %4861  ;;  %4871 = vrcp.f32 %v4011_v44  ;;  %v3825_v34 = vsub.f32 0.0, %v3761_v18  ;;  %v3762_v48 = vadd.f32 %v6570_v4, %v3581_v29 }
 0x412   : > { %v4864_v24 = vpop.eup %4863  ;;  %4138 = vst.msk [vmem:[%s6599_s22 + $0x90] sm:$0xff] %vm4119_vm3, %v4862_v57  ;;  %4873 = vrcp.f32 %v4013_v35  ;;  %v3911_v11 = vmul.f32 1.442695, %v3823_v55  ;;  %v3824_v45 = vsub.f32 0.0, %v3760_v46 }
 0x413   : > { %v4866_v49 = vpop.eup %4865  ;;  %4137 = vst.msk [vmem:[%s6599_s22 + $0x88] sm:$0xff] %vm4119_vm3, %v4864_v24  ;;  %v3915_v63 = vmul.f32 1.442695, %v3825_v34  ;;  %v3826_v42 = vsub.f32 0.0, %v3762_v48 }
 0x414   : > { %v4868_v52 = vpop.eup %4867  ;;  %4139 = vst.msk [vmem:[%s6599_s22 + $0x98] sm:$0xff] %vm4119_vm3, %v4866_v49  ;;  %4875 = vpow2.f32 %v3911_v11  ;;  %v3913_v5 = vmul.f32 1.442695, %v3824_v45  ;;  %v3296_v40 = vpop.f32.mrb[248].mxu0 }
 0x415   : > { %v4870_v50 = vpop.eup %4869  ;;  %v4012_v3 = vadd.f32 1.0, %v4868_v52  ;;  %4877 = vpow2.f32 %v3915_v63  ;;  %v3917_v38 = vmul.f32 1.442695, %v3826_v42  ;;  %v3298_v26 = vpop.f32.mrb[249].mxu0 }
 0x416   : > { %v4014_v54 = vadd.f32 1.0, %v4870_v50  ;;  %v3299_v19 = vpop.f32.mrb[250].mxu0 }
 0x417   : > { %4879 = vrcp.f32 %v4012_v3  ;;  %v3301_v16 = vpop.f32.mrb[251].mxu0 }
 0x418   : > { %4881 = vrcp.f32 %v4014_v54 }
 0x419   : > { %4883 = vpow2.f32 %v3913_v5 }
 0x41a   : > { %4885 = vpow2.f32 %v3917_v38  ;;  %v4647_v21 = vpop.f32.mrb[28].mxu1 }
 0x41b   : > { %v4872_v23 = vpop.eup %4871  ;;  %v3585_v20 = vpop.f32.mrb[29].mxu1 }
 0x41c   : > { %v4874_v33 = vpop.eup %4873  ;;  %4140 = vst.msk [vmem:[%s6599_s22 + $0xa0] sm:$0xff] %vm4119_vm3, %v4872_v23  ;;  %v3586_v27 = vadd.f32 %v3585_v20, %v3296_v40  ;;  %v3304_v25 = vpop.f32.mrb[252].mxu0 }
 0x41d   : > { %v4648_v6 = vpop.f32.mrb[30].mxu1  ;;  %4142 = vst.msk [vmem:[%s6599_s22 + $0xb0] sm:$0xff] %vm4119_vm3, %v4874_v33  ;;  %v3594_v61 = vadd.f32 %v4647_v21, %v3304_v25  ;;  %v3306_v37 = vpop.f32.mrb[253].mxu0 }
 0x41e   : > { %v3588_v47 = vpop.f32.mrb[31].mxu1  ;;  %v4876_v13 = vpop.eup %4875  ;;  %v3763_v15 = vadd.f32 %v6570_v4, %v3586_v27 }
 0x41f   : > { %v3589_v8 = vadd.f32 %v3588_v47, %v3299_v19  ;;  %v3307_v56 = vpop.f32.mrb[254].mxu0  ;;  %v4878_v12 = vpop.eup %4877  ;;  %v4015_v36 = vadd.f32 1.0, %v4876_v13  ;;  %v3765_v7 = vadd.f32 %v6570_v4, %v3594_v61 }
 0x420   : > { %v3597_v43 = vadd.f32 %v4648_v6, %v3307_v56  ;;  %v3309_v2 = vpop.f32.mrb[255].mxu0  ;;  %v4017_v28 = vadd.f32 1.0, %v4878_v12  ;;  %v3827_v17 = vsub.f32 0.0, %v3763_v15 }
 0x421   : > { %v4880_v39 = vpop.eup %4879  ;;  %v3764_v14 = vadd.f32 %v6570_v4, %v3589_v8  ;;  %4887 = vrcp.f32 %v4015_v36  ;;  %v3829_v0 = vsub.f32 0.0, %v3765_v7 }
 0x422   : > { %v4882_v62 = vpop.eup %4881  ;;  %4141 = vst.msk [vmem:[%s6599_s22 + $0xa8] sm:$0xff] %vm4119_vm3, %v4880_v39  ;;  %v3766_v41 = vadd.f32 %v6570_v4, %v3597_v43  ;;  %4889 = vrcp.f32 %v4017_v28  ;;  %v3919_v30 = vmul.f32 1.442695, %v3827_v17 }
 0x423   : > { %v4884_v60 = vpop.eup %4883  ;;  %4143 = vst.msk [vmem:[%s6599_s22 + $0xb8] sm:$0xff] %vm4119_vm3, %v4882_v62  ;;  %v3828_v51 = vsub.f32 0.0, %v3764_v14  ;;  %v3923_v32 = vmul.f32 1.442695, %v3829_v0 }
 0x424   : > { %v4886_v1 = vpop.eup %4885  ;;  %v4016_v9 = vadd.f32 1.0, %v4884_v60  ;;  %v3830_v31 = vsub.f32 0.0, %v3766_v41  ;;  %4891 = vpow2.f32 %v3919_v30  ;;  %v3312_v53 = vpop.f32.mrb[0].mxu0 }
 0x425   : > { %v4018_v58 = vadd.f32 1.0, %v4886_v1  ;;  %v3921_v59 = vmul.f32 1.442695, %v3828_v51  ;;  %v3314_v44 = vpop.f32.mrb[1].mxu0 }
 0x426   : > { %4893 = vrcp.f32 %v4016_v9  ;;  %v3925_v22 = vmul.f32 1.442695, %v3830_v31  ;;  %v3315_v18 = vpop.f32.mrb[2].mxu0 }
 0x427   : > { %4895 = vrcp.f32 %v4018_v58  ;;  %v3317_v29 = vpop.f32.mrb[3].mxu0 }
 0x428   : > { %4897 = vpow2.f32 %v3923_v32 }
 0x429   : > { %4899 = vpow2.f32 %v3921_v59 }
 0x42a   : > { %4901 = vpow2.f32 %v3925_v22  ;;  %v4651_v10 = vpop.f32.mrb[32].mxu1 }
 0x42b   : > { %v4888_v57 = vpop.eup %4887  ;;  %v3601_v35 = vpop.f32.mrb[33].mxu1 }
 0x42c   : > { %v4890_v55 = vpop.eup %4889  ;;  %4144 = vst.msk [vmem:[%s6599_s22 + $0xc0] sm:$0xff] %vm4119_vm3, %v4888_v57  ;;  %v3602_v46 = vadd.f32 %v3601_v35, %v3312_v53  ;;  %v3320_v24 = vpop.f32.mrb[4].mxu0 }
 0x42d   : > { %v4652_v34 = vpop.f32.mrb[34].mxu1  ;;  %4146 = vst.msk [vmem:[%s6599_s22 + $0xd0] sm:$0xff] %vm4119_vm3, %v4890_v55  ;;  %v3610_v48 = vadd.f32 %v4651_v10, %v3320_v24  ;;  %v3322_v49 = vpop.f32.mrb[5].mxu0 }
 0x42e   : > { %v3604_v11 = vpop.f32.mrb[35].mxu1  ;;  %v4892_v45 = vpop.eup %4891  ;;  %v3767_v52 = vadd.f32 %v6570_v4, %v3602_v46 }
 0x42f   : > { %v3605_v63 = vadd.f32 %v3604_v11, %v3315_v18  ;;  %v3323_v42 = vpop.f32.mrb[6].mxu0  ;;  %v4019_v3 = vadd.f32 1.0, %v4892_v45  ;;  %v3769_v5 = vadd.f32 %v6570_v4, %v3610_v48 }
 0x430   : > { %v4894_v50 = vpop.eup %4893  ;;  %v3613_v40 = vadd.f32 %v4652_v34, %v3323_v42  ;;  %v3325_v54 = vpop.f32.mrb[7].mxu0  ;;  %v3831_v26 = vsub.f32 0.0, %v3767_v52 }
 0x431   : > { %v4896_v38 = vpop.eup %4895  ;;  %4145 = vst.msk [vmem:[%s6599_s22 + $0xc8] sm:$0xff] %vm4119_vm3, %v4894_v50  ;;  %v3768_v19 = vadd.f32 %v6570_v4, %v3605_v63  ;;  %4903 = vrcp.f32 %v4019_v3  ;;  %v3833_v21 = vsub.f32 0.0, %v3769_v5 }
 0x432   : > { %v4898_v16 = vpop.eup %4897  ;;  %4147 = vst.msk [vmem:[%s6599_s22 + $0xd8] sm:$0xff] %vm4119_vm3, %v4896_v38  ;;  %v3770_v23 = vadd.f32 %v6570_v4, %v3613_v40  ;;  %v3927_v61 = vmul.f32 1.442695, %v3831_v26 }
 0x433   : > { %v4900_v20 = vpop.eup %4899  ;;  %v4021_v33 = vadd.f32 1.0, %v4898_v16  ;;  %v3832_v27 = vsub.f32 0.0, %v3768_v19  ;;  %v3931_v13 = vmul.f32 1.442695, %v3833_v21 }
 0x434   : > { %v4902_v25 = vpop.eup %4901  ;;  %v4020_v6 = vadd.f32 1.0, %v4900_v20  ;;  %v3834_v37 = vsub.f32 0.0, %v3770_v23  ;;  %v3328_v15 = vpop.f32.mrb[8].mxu0 }
 0x435   : > { %4905 = vrcp.f32 %v4021_v33  ;;  %v4022_v47 = vadd.f32 1.0, %v4902_v25  ;;  %v3929_v8 = vmul.f32 1.442695, %v3832_v27  ;;  %v3330_v56 = vpop.f32.mrb[9].mxu0 }
 0x436   : > { %4907 = vrcp.f32 %v4020_v6  ;;  %v3933_v12 = vmul.f32 1.442695, %v3834_v37  ;;  %v3331_v36 = vpop.f32.mrb[10].mxu0 }
 0x437   : > { %4909 = vrcp.f32 %v4022_v47  ;;  %v3333_v7 = vpop.f32.mrb[11].mxu0 }
 0x438   : > { %4911 = vpow2.f32 %v3927_v61 }
 0x439   : > { %4913 = vpow2.f32 %v3931_v13 }
 0x43a   : > { %4915 = vpow2.f32 %v3929_v8  ;;  %v4655_v43 = vpop.f32.mrb[36].mxu1 }
 0x43b   : > { %4917 = vpow2.f32 %v3933_v12  ;;  %v4904_v2 = vpop.eup %4903  ;;  %v3617_v39 = vpop.f32.mrb[37].mxu1 }
 0x43c   : > { %4148 = vst.msk [vmem:[%s6599_s22 + $0xe0] sm:$0xff] %vm4119_vm3, %v4904_v2  ;;  %v3618_v28 = vadd.f32 %v3617_v39, %v3328_v15  ;;  %v3336_v17 = vpop.f32.mrb[12].mxu0  ;;  %v4656_v14 = vpop.f32.mrb[38].mxu1 }
 0x43d   : > { %v3626_v62 = vadd.f32 %v4655_v43, %v3336_v17  ;;  %v3338_v0 = vpop.f32.mrb[13].mxu0  ;;  %v3620_v41 = vpop.f32.mrb[39].mxu1 }
 0x43e   : > { %v3771_v30 = vadd.f32 %v6570_v4, %v3618_v28  ;;  %v3621_v51 = vadd.f32 %v3620_v41, %v3331_v36  ;;  %v3339_v1 = vpop.f32.mrb[14].mxu0 }
 0x43f   : > { %v4906_v60 = vpop.eup %4905  ;;  %v3773_v32 = vadd.f32 %v6570_v4, %v3626_v62  ;;  %v3629_v31 = vadd.f32 %v4656_v14, %v3339_v1  ;;  %v3341_v58 = vpop.f32.mrb[15].mxu0 }
 0x440   : > { %v4908_v9 = vpop.eup %4907  ;;  %4150 = vst.msk [vmem:[%s6599_s22 + $0xf0] sm:$0xff] %vm4119_vm3, %v4906_v60  ;;  %v3835_v53 = vsub.f32 0.0, %v3771_v30  ;;  %v3772_v22 = vadd.f32 %v6570_v4, %v3621_v51 }
 0x441   : > { %v4910_v59 = vpop.eup %4909  ;;  %4149 = vst.msk [vmem:[%s6599_s22 + $0xe8] sm:$0xff] %vm4119_vm3, %v4908_v9  ;;  %v3837_v18 = vsub.f32 0.0, %v3773_v32  ;;  %v3774_v29 = vadd.f32 %v6570_v4, %v3629_v31 }
 0x442   : > { %v4912_v44 = vpop.eup %4911  ;;  %4151 = vst.msk [vmem:[%s6599_s22 + $0xf8] sm:$0xff] %vm4119_vm3, %v4910_v59  ;;  %v3836_v35 = vsub.f32 0.0, %v3772_v22  ;;  %v3935_v49 = vmul.f32 1.442695, %v3835_v53 }
 0x443   : > { %v4914_v10 = vpop.eup %4913  ;;  %v4023_v57 = vadd.f32 1.0, %v4912_v44  ;;  %v3838_v24 = vsub.f32 0.0, %v3774_v29  ;;  %v3939_v52 = vmul.f32 1.442695, %v3837_v18 }
 0x444   : > { %v4916_v55 = vpop.eup %4915  ;;  %v4025_v46 = vadd.f32 1.0, %v4914_v10  ;;  %v3344_v11 = vpop.f32.mrb[16].mxu0  ;;  %v3937_v42 = vmul.f32 1.442695, %v3836_v35  ;;  %v6702_v35 = vld [vmem:[#allocation2] ss:$0 sm:$0xff] }
 0x445   : > { %v4918_v34 = vpop.eup %4917  ;;  %4919 = vrcp.f32 %v4023_v57  ;;  %v4024_v48 = vadd.f32 1.0, %v4916_v55  ;;  %v3346_v63 = vpop.f32.mrb[17].mxu0  ;;  %v3941_v3 = vmul.f32 1.442695, %v3838_v24 }
 0x446   : > { %4921 = vrcp.f32 %v4025_v46  ;;  %v4026_v45 = vadd.f32 1.0, %v4918_v34  ;;  %v3347_v50 = vpop.f32.mrb[18].mxu0 }
 0x447   : > { %4923 = vrcp.f32 %v4024_v48  ;;  %v3349_v5 = vpop.f32.mrb[19].mxu0 }
 0x448   : > { %4925 = vrcp.f32 %v4026_v45 }
 0x449   : > { %4927 = vpow2.f32 %v3935_v49 }
 0x44a   : > { %4929 = vpow2.f32 %v3939_v52  ;;  %v4659_v40 = vpop.f32.mrb[40].mxu1 }
 0x44b   : > { %4931 = vpow2.f32 %v3937_v42  ;;  %v3633_v54 = vpop.f32.mrb[41].mxu1 }
 0x44c   : > { %4933 = vpow2.f32 %v3941_v3  ;;  %v3634_v38 = vadd.f32 %v3633_v54, %v3344_v11  ;;  %v3352_v26 = vpop.f32.mrb[20].mxu0  ;;  %v4660_v19 = vpop.f32.mrb[42].mxu1 }
 0x44d   : > { %v3642_v16 = vadd.f32 %v4659_v40, %v3352_v26  ;;  %v3354_v21 = vpop.f32.mrb[21].mxu0  ;;  %v3636_v23 = vpop.f32.mrb[43].mxu1 }
 0x44e   : > { %v3775_v33 = vadd.f32 %v6570_v4, %v3634_v38  ;;  %v3637_v27 = vadd.f32 %v3636_v23, %v3347_v50  ;;  %v3355_v25 = vpop.f32.mrb[22].mxu0 }
 0x44f   : > { %v4920_v20 = vpop.eup %4919  ;;  %v3777_v61 = vadd.f32 %v6570_v4, %v3642_v16  ;;  %v3645_v37 = vadd.f32 %v4660_v19, %v3355_v25  ;;  %v3357_v47 = vpop.f32.mrb[23].mxu0 }
 0x450   : > { %v4922_v6 = vpop.eup %4921  ;;  %4152 = vst.msk [vmem:[%s6599_s22 + $0x100] sm:$0xff] %vm4119_vm3, %v4920_v20  ;;  %v3839_v15 = vsub.f32 0.0, %v3775_v33  ;;  %v3776_v8 = vadd.f32 %v6570_v4, %v3637_v27 }
 0x451   : > { %v4924_v13 = vpop.eup %4923  ;;  %4154 = vst.msk [vmem:[%s6599_s22 + $0x110] sm:$0xff] %vm4119_vm3, %v4922_v6  ;;  %v3841_v12 = vsub.f32 0.0, %v3777_v61  ;;  %v3778_v36 = vadd.f32 %v6570_v4, %v3645_v37 }
 0x452   : > { %v4926_v56 = vpop.eup %4925  ;;  %4153 = vst.msk [vmem:[%s6599_s22 + $0x108] sm:$0xff] %vm4119_vm3, %v4924_v13  ;;  %v3943_v43 = vmul.f32 1.442695, %v3839_v15  ;;  %v3840_v2 = vsub.f32 0.0, %v3776_v8 }
 0x453   : > { %v4928_v7 = vpop.eup %4927  ;;  %4155 = vst.msk [vmem:[%s6599_s22 + $0x118] sm:$0xff] %vm4119_vm3, %v4926_v56  ;;  %v3842_v17 = vsub.f32 0.0, %v3778_v36  ;;  %v3947_v30 = vmul.f32 1.442695, %v3841_v12 }
 0x454   : > { %v4930_v39 = vpop.eup %4929  ;;  %v4027_v28 = vadd.f32 1.0, %v4928_v7  ;;  %4935 = vpow2.f32 %v3943_v43  ;;  %v3360_v0 = vpop.f32.mrb[24].mxu0  ;;  %v3945_v4 = vmul.f32 1.442695, %v3840_v2 }
 0x455   : > { %v4932_v14 = vpop.eup %4931  ;;  %v4029_v62 = vadd.f32 1.0, %v4930_v39  ;;  %v3362_v51 = vpop.f32.mrb[25].mxu0  ;;  %v3949_v32 = vmul.f32 1.442695, %v3842_v17 }
 0x456   : > { %v4934_v41 = vpop.eup %4933  ;;  %4937 = vrcp.f32 %v4027_v28  ;;  %v4028_v60 = vadd.f32 1.0, %v4932_v14  ;;  %v3363_v9 = vpop.f32.mrb[26].mxu0 }
 0x457   : > { %4939 = vrcp.f32 %v4029_v62  ;;  %v4030_v1 = vadd.f32 1.0, %v4934_v41  ;;  %v3365_v31 = vpop.f32.mrb[27].mxu0 }
 0x458   : > { %4941 = vrcp.f32 %v4028_v60 }
 0x459   : > { %4943 = vrcp.f32 %v4030_v1 }
 0x45a   : > { %4945 = vpow2.f32 %v3947_v30  ;;  %v4663_v58 = vpop.f32.mrb[44].mxu1 }
 0x45b   : > { %4947 = vpow2.f32 %v3945_v4  ;;  %v3649_v59 = vpop.f32.mrb[45].mxu1 }
 0x45c   : > { %4949 = vpow2.f32 %v3949_v32  ;;  %v3650_v53 = vadd.f32 %v3649_v59, %v3360_v0  ;;  %v3368_v22 = vpop.f32.mrb[28].mxu0  ;;  %v4664_v44 = vpop.f32.mrb[46].mxu1 }
 0x45d   : > { %v3658_v18 = vadd.f32 %v4663_v58, %v3368_v22  ;;  %v3370_v29 = vpop.f32.mrb[29].mxu0  ;;  %v3652_v10 = vpop.f32.mrb[47].mxu1 }
 0x45e   : > { %v4936_v57 = vpop.eup %4935  ;;  %v3779_v55 = vadd.f32 %v6702_v35, %v3650_v53  ;;  %v3653_v46 = vadd.f32 %v3652_v10, %v3363_v9  ;;  %v3371_v24 = vpop.f32.mrb[30].mxu0 }
 0x45f   : > { %v4031_v48 = vadd.f32 1.0, %v4936_v57  ;;  %v3781_v49 = vadd.f32 %v6702_v35, %v3658_v18  ;;  %v3661_v11 = vadd.f32 %v4664_v44, %v3371_v24  ;;  %v3373_v45 = vpop.f32.mrb[31].mxu0 }
 0x460   : > { %v4938_v34 = vpop.eup %4937  ;;  %v3843_v63 = vsub.f32 0.0, %v3779_v55  ;;  %v3780_v42 = vadd.f32 %v6702_v35, %v3653_v46 }
 0x461   : > { %v4940_v52 = vpop.eup %4939  ;;  %4156 = vst.msk [vmem:[%s6599_s22 + $0x120] sm:$0xff] %vm4119_vm3, %v4938_v34  ;;  %4951 = vrcp.f32 %v4031_v48  ;;  %v3845_v3 = vsub.f32 0.0, %v3781_v49  ;;  %v3782_v5 = vadd.f32 %v6702_v35, %v3661_v11 }
 0x462   : > { %v4942_v50 = vpop.eup %4941  ;;  %4158 = vst.msk [vmem:[%s6599_s22 + $0x130] sm:$0xff] %vm4119_vm3, %v4940_v52  ;;  %v3951_v54 = vmul.f32 1.442695, %v3843_v63  ;;  %v3844_v38 = vsub.f32 0.0, %v3780_v42 }
 0x463   : > { %v4944_v40 = vpop.eup %4943  ;;  %4157 = vst.msk [vmem:[%s6599_s22 + $0x128] sm:$0xff] %vm4119_vm3, %v4942_v50  ;;  %v3955_v19 = vmul.f32 1.442695, %v3845_v3  ;;  %v3846_v16 = vsub.f32 0.0, %v3782_v5 }
 0x464   : > { %v4946_v26 = vpop.eup %4945  ;;  %4159 = vst.msk [vmem:[%s6599_s22 + $0x138] sm:$0xff] %vm4119_vm3, %v4944_v40  ;;  %4953 = vpow2.f32 %v3951_v54  ;;  %v3376_v20 = vpop.f32.mrb[32].mxu0  ;;  %v3953_v25 = vmul.f32 1.442695, %v3844_v38 }
 0x465   : > { %v4948_v21 = vpop.eup %4947  ;;  %v4033_v23 = vadd.f32 1.0, %v4946_v26  ;;  %4955 = vpow2.f32 %v3955_v19  ;;  %v3378_v6 = vpop.f32.mrb[33].mxu0  ;;  %v3957_v37 = vmul.f32 1.442695, %v3846_v16 }
 0x466   : > { %v4950_v33 = vpop.eup %4949  ;;  %v4032_v27 = vadd.f32 1.0, %v4948_v21  ;;  %v3379_v47 = vpop.f32.mrb[34].mxu0 }
 0x467   : > { %4957 = vrcp.f32 %v4033_v23  ;;  %v4034_v61 = vadd.f32 1.0, %v4950_v33  ;;  %v3381_v13 = vpop.f32.mrb[35].mxu0 }
 0x468   : > { %4959 = vrcp.f32 %v4032_v27 }
 0x469   : > { %4961 = vrcp.f32 %v4034_v61 }
 0x46a   : > { %4963 = vpow2.f32 %v3953_v25  ;;  %v4667_v15 = vpop.f32.mrb[48].mxu1 }
 0x46b   : > { %4965 = vpow2.f32 %v3957_v37  ;;  %v4952_v8 = vpop.eup %4951  ;;  %v3665_v56 = vpop.f32.mrb[49].mxu1 }
 0x46c   : > { %4160 = vst.msk [vmem:[%s6599_s22 + $0x140] sm:$0xff] %vm4119_vm3, %v4952_v8  ;;  %v3666_v12 = vadd.f32 %v3665_v56, %v3376_v20  ;;  %v3384_v36 = vpop.f32.mrb[36].mxu0  ;;  %v4668_v7 = vpop.f32.mrb[50].mxu1 }
 0x46d   : > { %v3674_v43 = vadd.f32 %v4667_v15, %v3384_v36  ;;  %v3386_v2 = vpop.f32.mrb[37].mxu0  ;;  %v3668_v39 = vpop.f32.mrb[51].mxu1 }
 0x46e   : > { %v4954_v28 = vpop.eup %4953  ;;  %v3783_v17 = vadd.f32 %v6702_v35, %v3666_v12  ;;  %v3669_v14 = vadd.f32 %v3668_v39, %v3379_v47  ;;  %v3387_v62 = vpop.f32.mrb[38].mxu0 }
 0x46f   : > { %v4956_v0 = vpop.eup %4955  ;;  %v4035_v41 = vadd.f32 1.0, %v4954_v28  ;;  %v3785_v60 = vadd.f32 %v6702_v35, %v3674_v43  ;;  %v3677_v30 = vadd.f32 %v4668_v7, %v3387_v62  ;;  %v3389_v51 = vpop.f32.mrb[39].mxu0 }
 0x470   : > { %v4037_v4 = vadd.f32 1.0, %v4956_v0  ;;  %v3847_v9 = vsub.f32 0.0, %v3783_v17  ;;  %v3784_v32 = vadd.f32 %v6702_v35, %v3669_v14 }
 0x471   : > { %v4958_v1 = vpop.eup %4957  ;;  %4967 = vrcp.f32 %v4035_v41  ;;  %v3849_v58 = vsub.f32 0.0, %v3785_v60  ;;  %v3786_v59 = vadd.f32 %v6702_v35, %v3677_v30 }
 0x472   : > { %v4960_v31 = vpop.eup %4959  ;;  %4162 = vst.msk [vmem:[%s6599_s22 + $0x150] sm:$0xff] %vm4119_vm3, %v4958_v1  ;;  %4969 = vrcp.f32 %v4037_v4  ;;  %v3959_v22 = vmul.f32 1.442695, %v3847_v9  ;;  %v3848_v44 = vsub.f32 0.0, %v3784_v32 }
 0x473   : > { %v4962_v53 = vpop.eup %4961  ;;  %4161 = vst.msk [vmem:[%s6599_s22 + $0x148] sm:$0xff] %vm4119_vm3, %v4960_v31  ;;  %v3963_v29 = vmul.f32 1.442695, %v3849_v58  ;;  %v3850_v10 = vsub.f32 0.0, %v3786_v59 }
 0x474   : > { %v4964_v18 = vpop.eup %4963  ;;  %4163 = vst.msk [vmem:[%s6599_s22 + $0x158] sm:$0xff] %vm4119_vm3, %v4962_v53  ;;  %4971 = vpow2.f32 %v3959_v22  ;;  %v3961_v46 = vmul.f32 1.442695, %v3848_v44  ;;  %v3392_v24 = vpop.f32.mrb[40].mxu0 }
 0x475   : > { %v4966_v57 = vpop.eup %4965  ;;  %v4036_v55 = vadd.f32 1.0, %v4964_v18  ;;  %4973 = vpow2.f32 %v3963_v29  ;;  %v3965_v48 = vmul.f32 1.442695, %v3850_v10  ;;  %v3394_v49 = vpop.f32.mrb[41].mxu0 }
 0x476   : > { %v4038_v34 = vadd.f32 1.0, %v4966_v57  ;;  %v3395_v11 = vpop.f32.mrb[42].mxu0 }
 0x477   : > { %4975 = vrcp.f32 %v4036_v55  ;;  %v3397_v45 = vpop.f32.mrb[43].mxu0 }
 0x478   : > { %4977 = vrcp.f32 %v4038_v34 }
 0x479   : > { %4979 = vpow2.f32 %v3961_v46 }
 0x47a   : > { %4981 = vpow2.f32 %v3965_v48  ;;  %v4671_v52 = vpop.f32.mrb[52].mxu1 }
 0x47b   : > { %v4968_v63 = vpop.eup %4967  ;;  %v3681_v42 = vpop.f32.mrb[53].mxu1 }
 0x47c   : > { %v4970_v50 = vpop.eup %4969  ;;  %4164 = vst.msk [vmem:[%s6599_s22 + $0x160] sm:$0xff] %vm4119_vm3, %v4968_v63  ;;  %v3682_v3 = vadd.f32 %v3681_v42, %v3392_v24  ;;  %v3400_v5 = vpop.f32.mrb[44].mxu0 }
 0x47d   : > { %v4672_v40 = vpop.f32.mrb[54].mxu1  ;;  %4166 = vst.msk [vmem:[%s6599_s22 + $0x170] sm:$0xff] %vm4119_vm3, %v4970_v50  ;;  %v3690_v54 = vadd.f32 %v4671_v52, %v3400_v5  ;;  %v3402_v38 = vpop.f32.mrb[45].mxu0 }
 0x47e   : > { %v3684_v26 = vpop.f32.mrb[55].mxu1  ;;  %v4972_v19 = vpop.eup %4971  ;;  %v3787_v16 = vadd.f32 %v6702_v35, %v3682_v3 }
 0x47f   : > { %v3685_v21 = vadd.f32 %v3684_v26, %v3395_v11  ;;  %v3403_v23 = vpop.f32.mrb[46].mxu0  ;;  %v4974_v20 = vpop.eup %4973  ;;  %v4039_v33 = vadd.f32 1.0, %v4972_v19  ;;  %v3789_v27 = vadd.f32 %v6702_v35, %v3690_v54 }
 0x480   : > { %v3693_v25 = vadd.f32 %v4672_v40, %v3403_v23  ;;  %v3405_v6 = vpop.f32.mrb[47].mxu0  ;;  %v4041_v37 = vadd.f32 1.0, %v4974_v20  ;;  %v3851_v47 = vsub.f32 0.0, %v3787_v16 }
 0x481   : > { %v4976_v61 = vpop.eup %4975  ;;  %v3788_v13 = vadd.f32 %v6702_v35, %v3685_v21  ;;  %4983 = vrcp.f32 %v4039_v33  ;;  %v3853_v8 = vsub.f32 0.0, %v3789_v27 }
 0x482   : > { %v4978_v15 = vpop.eup %4977  ;;  %4165 = vst.msk [vmem:[%s6599_s22 + $0x168] sm:$0xff] %vm4119_vm3, %v4976_v61  ;;  %v3790_v56 = vadd.f32 %v6702_v35, %v3693_v25  ;;  %4985 = vrcp.f32 %v4041_v37  ;;  %v3967_v36 = vmul.f32 1.442695, %v3851_v47 }
 0x483   : > { %v4980_v12 = vpop.eup %4979  ;;  %4167 = vst.msk [vmem:[%s6599_s22 + $0x178] sm:$0xff] %vm4119_vm3, %v4978_v15  ;;  %v3852_v7 = vsub.f32 0.0, %v3788_v13  ;;  %v3971_v39 = vmul.f32 1.442695, %v3853_v8 }
 0x484   : > { %v4982_v43 = vpop.eup %4981  ;;  %v4040_v2 = vadd.f32 1.0, %v4980_v12  ;;  %v3854_v28 = vsub.f32 0.0, %v3790_v56  ;;  %4987 = vpow2.f32 %v3967_v36  ;;  %v3408_v62 = vpop.f32.mrb[48].mxu0 }
 0x485   : > { %v4042_v17 = vadd.f32 1.0, %v4982_v43  ;;  %v3969_v14 = vmul.f32 1.442695, %v3852_v7  ;;  %v3410_v41 = vpop.f32.mrb[49].mxu0 }
 0x486   : > { %4989 = vrcp.f32 %v4040_v2  ;;  %v3973_v0 = vmul.f32 1.442695, %v3854_v28  ;;  %v3411_v60 = vpop.f32.mrb[50].mxu0 }
 0x487   : > { %4991 = vrcp.f32 %v4042_v17  ;;  %v3413_v30 = vpop.f32.mrb[51].mxu0 }
 0x488   : > { %4993 = vpow2.f32 %v3971_v39 }
 0x489   : > { %4995 = vpow2.f32 %v3969_v14 }
 0x48a   : > { %4997 = vpow2.f32 %v3973_v0  ;;  %v4675_v51 = vpop.f32.mrb[56].mxu1 }
 0x48b   : > { %v4984_v1 = vpop.eup %4983  ;;  %v3697_v4 = vpop.f32.mrb[57].mxu1 }
 0x48c   : > { %v4986_v9 = vpop.eup %4985  ;;  %4168 = vst.msk [vmem:[%s6599_s22 + $0x180] sm:$0xff] %vm4119_vm3, %v4984_v1  ;;  %v3698_v32 = vadd.f32 %v3697_v4, %v3408_v62  ;;  %v3416_v31 = vpop.f32.mrb[52].mxu0 }
 0x48d   : > { %v4676_v58 = vpop.f32.mrb[58].mxu1  ;;  %4170 = vst.msk [vmem:[%s6599_s22 + $0x190] sm:$0xff] %vm4119_vm3, %v4986_v9  ;;  %v3706_v59 = vadd.f32 %v4675_v51, %v3416_v31  ;;  %v3418_v53 = vpop.f32.mrb[53].mxu0 }
 0x48e   : > { %v3700_v22 = vpop.f32.mrb[59].mxu1  ;;  %v4988_v44 = vpop.eup %4987  ;;  %v3791_v18 = vadd.f32 %v6702_v35, %v3698_v32 }
 0x48f   : > { %v3701_v29 = vadd.f32 %v3700_v22, %v3411_v60  ;;  %v3419_v10 = vpop.f32.mrb[54].mxu0  ;;  %v4043_v55 = vadd.f32 1.0, %v4988_v44  ;;  %v3793_v46 = vadd.f32 %v6702_v35, %v3706_v59 }
 0x490   : > { %v4990_v57 = vpop.eup %4989  ;;  %v3709_v24 = vadd.f32 %v4676_v58, %v3419_v10  ;;  %v3421_v34 = vpop.f32.mrb[55].mxu0  ;;  %v3855_v49 = vsub.f32 0.0, %v3791_v18 }
 0x491   : > { %v4992_v48 = vpop.eup %4991  ;;  %4169 = vst.msk [vmem:[%s6599_s22 + $0x188] sm:$0xff] %vm4119_vm3, %v4990_v57  ;;  %v3792_v11 = vadd.f32 %v6702_v35, %v3701_v29  ;;  %4999 = vrcp.f32 %v4043_v55  ;;  %v3857_v52 = vsub.f32 0.0, %v3793_v46 }
 0x492   : > { %v4994_v45 = vpop.eup %4993  ;;  %4171 = vst.msk [vmem:[%s6599_s22 + $0x198] sm:$0xff] %vm4119_vm3, %v4992_v48  ;;  %v3794_v63 = vadd.f32 %v6702_v35, %v3709_v24  ;;  %v3975_v54 = vmul.f32 1.442695, %v3855_v49 }
 0x493   : > { %v4996_v42 = vpop.eup %4995  ;;  %v4045_v50 = vadd.f32 1.0, %v4994_v45  ;;  %v3856_v3 = vsub.f32 0.0, %v3792_v11  ;;  %v3979_v19 = vmul.f32 1.442695, %v3857_v52 }
 0x494   : > { %v4998_v5 = vpop.eup %4997  ;;  %v4044_v40 = vadd.f32 1.0, %v4996_v42  ;;  %v3858_v38 = vsub.f32 0.0, %v3794_v63  ;;  %v3424_v16 = vpop.f32.mrb[56].mxu0 }
 0x495   : > { %5001 = vrcp.f32 %v4045_v50  ;;  %v4046_v26 = vadd.f32 1.0, %v4998_v5  ;;  %v3977_v21 = vmul.f32 1.442695, %v3856_v3  ;;  %v3426_v23 = vpop.f32.mrb[57].mxu0 }
 0x496   : > { %5003 = vrcp.f32 %v4044_v40  ;;  %v3981_v20 = vmul.f32 1.442695, %v3858_v38  ;;  %v3427_v33 = vpop.f32.mrb[58].mxu0 }
 0x497   : > { %5005 = vrcp.f32 %v4046_v26  ;;  %v3429_v27 = vpop.f32.mrb[59].mxu0 }
 0x498   : > { %5007 = vpow2.f32 %v3975_v54 }
 0x499   : > { %5009 = vpow2.f32 %v3979_v19 }
 0x49a   : > { %5011 = vpow2.f32 %v3977_v21  ;;  %v4679_v25 = vpop.f32.mrb[60].mxu1 }
 0x49b   : > { %5013 = vpow2.f32 %v3981_v20  ;;  %v5000_v6 = vpop.eup %4999  ;;  %v3713_v61 = vpop.f32.mrb[61].mxu1 }
 0x49c   : > { %4172 = vst.msk [vmem:[%s6599_s22 + $0x1a0] sm:$0xff] %vm4119_vm3, %v5000_v6  ;;  %v3714_v37 = vadd.f32 %v3713_v61, %v3424_v16  ;;  %v3432_v47 = vpop.f32.mrb[60].mxu0  ;;  %v4680_v13 = vpop.f32.mrb[62].mxu1 }
 0x49d   : > { %v3722_v15 = vadd.f32 %v4679_v25, %v3432_v47  ;;  %v3434_v8 = vpop.f32.mrb[61].mxu0  ;;  %v3716_v56 = vpop.f32.mrb[63].mxu1 }
 0x49e   : > { %v3795_v36 = vadd.f32 %v6702_v35, %v3714_v37  ;;  %v3717_v7 = vadd.f32 %v3716_v56, %v3427_v33  ;;  %v3435_v43 = vpop.f32.mrb[62].mxu0 }
 0x49f   : > { %v5002_v12 = vpop.eup %5001  ;;  %v3797_v39 = vadd.f32 %v6702_v35, %v3722_v15  ;;  %v3725_v28 = vadd.f32 %v4680_v13, %v3435_v43  ;;  %v3437_v17 = vpop.f32.mrb[63].mxu0 }
 0x4a0   : > { %v5004_v2 = vpop.eup %5003  ;;  %4174 = vst.msk [vmem:[%s6599_s22 + $0x1b0] sm:$0xff] %vm4119_vm3, %v5002_v12  ;;  %v3859_v62 = vsub.f32 0.0, %v3795_v36  ;;  %v3796_v0 = vadd.f32 %v6702_v35, %v3717_v7 }
 0x4a1   : > { %v5006_v14 = vpop.eup %5005  ;;  %4173 = vst.msk [vmem:[%s6599_s22 + $0x1a8] sm:$0xff] %vm4119_vm3, %v5004_v2  ;;  %v3861_v60 = vsub.f32 0.0, %v3797_v39  ;;  %v3798_v30 = vadd.f32 %v6702_v35, %v3725_v28 }
 0x4a2   : > { %v5008_v41 = vpop.eup %5007  ;;  %4175 = vst.msk [vmem:[%s6599_s22 + $0x1b8] sm:$0xff] %vm4119_vm3, %v5006_v14  ;;  %v3860_v4 = vsub.f32 0.0, %v3796_v0  ;;  %v3983_v53 = vmul.f32 1.442695, %v3859_v62 }
 0x4a3   : > { %v5010_v51 = vpop.eup %5009  ;;  %v4047_v1 = vadd.f32 1.0, %v5008_v41  ;;  %v3862_v31 = vsub.f32 0.0, %v3798_v30  ;;  %v3987_v44 = vmul.f32 1.442695, %v3861_v60 }
 0x4a4   : > { %v5012_v9 = vpop.eup %5011  ;;  %v4049_v32 = vadd.f32 1.0, %v5010_v51  ;;  %v3985_v18 = vmul.f32 1.442695, %v3860_v4 }
 0x4a5   : > { %v5014_v58 = vpop.eup %5013  ;;  %5015 = vrcp.f32 %v4047_v1  ;;  %v4048_v59 = vadd.f32 1.0, %v5012_v9  ;;  %v3989_v35 = vmul.f32 1.442695, %v3862_v31 }
 0x4a6   : > { %5017 = vrcp.f32 %v4049_v32  ;;  %v4050_v22 = vadd.f32 1.0, %v5014_v58 }
 0x4a7   : > { %5019 = vrcp.f32 %v4048_v59 }
 0x4a8   : > { %5021 = vrcp.f32 %v4050_v22 }
 0x4a9   : > { %5023 = vpow2.f32 %v3983_v53 }
 0x4aa   : > { %5025 = vpow2.f32 %v3987_v44 }
 0x4ab   : > { %5027 = vpow2.f32 %v3985_v18 }
 0x4ac   : > { %5029 = vpow2.f32 %v3989_v35 }
 0x4af   : > { %v5016_v29 = vpop.eup %5015 }
 0x4b0   : > { %v5018_v10 = vpop.eup %5017  ;;  %4176 = vst.msk [vmem:[%s6599_s22 + $0x1c0] sm:$0xff] %vm4119_vm3, %v5016_v29 }
 0x4b1   : > { %v5020_v57 = vpop.eup %5019  ;;  %4178 = vst.msk [vmem:[%s6599_s22 + $0x1d0] sm:$0xff] %vm4119_vm3, %v5018_v10 }
 0x4b2   : > { %v5022_v55 = vpop.eup %5021  ;;  %4177 = vst.msk [vmem:[%s6599_s22 + $0x1c8] sm:$0xff] %vm4119_vm3, %v5020_v57 }
 0x4b3   : > { %v5024_v46 = vpop.eup %5023  ;;  %4179 = vst.msk [vmem:[%s6599_s22 + $0x1d8] sm:$0xff] %vm4119_vm3, %v5022_v55 }
 0x4b4   : > { %v5026_v24 = vpop.eup %5025  ;;  %v4051_v34 = vadd.f32 1.0, %v5024_v46 }
 0x4b5   : > { %v5028_v48 = vpop.eup %5027  ;;  %v4053_v49 = vadd.f32 1.0, %v5026_v24 }
 0x4b6   : > { %v5030_v11 = vpop.eup %5029  ;;  %5031 = vrcp.f32 %v4051_v34  ;;  %v4052_v45 = vadd.f32 1.0, %v5028_v48 }
 0x4b7   : > { %5033 = vrcp.f32 %v4053_v49  ;;  %v4054_v52 = vadd.f32 1.0, %v5030_v11 }
 0x4b8   : > { %5035 = vrcp.f32 %v4052_v45 }
 0x4b9   : > { %5037 = vrcp.f32 %v4054_v52 }
 0x4c0   : > { %v5032_v63 = vpop.eup %5031 }
 0x4c1   : > { %v5034_v42 = vpop.eup %5033  ;;  %4180 = vst.msk [vmem:[%s6599_s22 + $0x1e0] sm:$0xff] %vm4119_vm3, %v5032_v63 }
 0x4c2   : > { %v5036_v50 = vpop.eup %5035  ;;  %4182 = vst.msk [vmem:[%s6599_s22 + $0x1f0] sm:$0xff] %vm4119_vm3, %v5034_v42 }
 0x4c3   : > { %v5038_v3 = vpop.eup %5037  ;;  %4181 = vst.msk [vmem:[%s6599_s22 + $0x1e8] sm:$0xff] %vm4119_vm3, %v5036_v50 }
 0x4c4   : > { %4183 = vst.msk [vmem:[%s6599_s22 + $0x1f8] sm:$0xff] %vm4119_vm3, %v5038_v3 }
 0x4c5 PF: > { %s21_s11 = sadd.s32 1, %s5046_s11  }
 0x4c6   : > { %p18_p4 = scmp.ge.s32.totalorder %s21_s11, 4  }
 0x4c8   :  { %20 = sbr.rel (!%p18_p4) target bundleno = 3 (0x3), region = 86 }

</bundles_post_ra>
